<compile_context>
chip_gen: v7x
topology: tpu7x:2x2x1
jax: 0.10.0
libtpu: 0.0.40
codegen_flags: <defaults>
</compile_context>

<pallas_src>
import functools

import jax
import jax.numpy as jnp
from jax.experimental import pallas as pl
from jax.experimental.pallas import tpu as pltpu

LANE = 128


# ----------------------------- small helpers --------------------------------

def _round_up(n, m):
    return ((n + m - 1) // m) * m


def _vmem_budget():
    """Per-generation VMEM budget (v7x: 64 MiB physical, v5e/v6e: 128 MiB)."""
    phys = 64 * 1024 * 1024
    try:
        phys = int(pltpu.get_tpu_info().vmem_capacity_bytes)
    except Exception:
        pass
    return min(int(phys * 3 // 4), 100 * 1024 * 1024)


def _pick_row_tile(H, W, Cp, budget_bytes):
    """Even full-res row tile for kernels 2/3 from a VMEM budget.

    ~96 bytes of VMEM per (row, W, Cp) element covers the double-buffered
    x / [lx|ll] / out blocks plus the in-kernel f32/bf16 temporaries.
    """
    per_row = max(W * Cp * 96, 1)
    tr = int(min(budget_bytes // per_row, H, 512))
    tr = max(tr - (tr % 2), 2)
    return tr


def _bn_fold(gamma, beta, mean, var, eps=1e-5):
    scale = gamma / jnp.sqrt(var + eps)
    shift = beta - mean * scale
    return scale, shift


def _pad2d(w, rows, cols):
    return jnp.pad(w, ((0, rows - w.shape[0]), (0, cols - w.shape[1])))


# ----------------------------- kernels ---------------------------------------

def _low_kernel(xp_ref, y_ref, w1_ref, wyb_ref, sh1_ref,
                lx_ref, ll_ref, ps_ref, *, trl, wh, cp, hh, pad_rows):
    """lx = conv1x1(avgpool(x)); ll = BN(cat_conv([lx, conv1x1(y)])) with the
    1x1 convs + cat_conv + BN folded into two matmuls (one N=2*cp, one N=cp);
    also emits the per-tile spatial partial sum of ll for CA1's GAP."""
    f32 = jnp.float32
    xp = xp_ref[0].reshape(trl * wh, cp)
    yb = y_ref[0].reshape(trl * wh, cp)

    t = jnp.dot(xp, w1_ref[...], preferred_element_type=f32)        # (M, 2cp)
    lx = t[:, :cp]
    ll = (t[:, cp:]
          + jnp.dot(yb, wyb_ref[...], preferred_element_type=f32)
          + sh1_ref[...])

    lx_ref[0] = lx.reshape(trl, wh, cp).astype(lx_ref.dtype)
    ll3 = ll.reshape(trl, wh, cp)
    ll_ref[0] = ll3.astype(ll_ref.dtype)

    if pad_rows:  # exclude zero-padded tiling rows from the global average pool
        row = (pl.program_id(1) * trl
               + jax.lax.broadcasted_iota(jnp.int32, (trl, wh, cp), 0))
        ll3 = jnp.where(row < hh, ll3, 0.0)
    s = jnp.sum(jnp.sum(ll3, axis=0), axis=0, keepdims=True)        # (1, cp)
    ps_ref[0, 0] = jnp.broadcast_to(s * 0.125, (8, cp))


def _high_kernel(xm_ref, xt_ref, xb_ref, lm_ref, lt_ref, lb_ref,
                 wk_ref, bhx_ref, wout_ref,
                 out_ref, ps_ref, *, tr, w, cp, h_img, pad_rows):
    """Fused: row-direction 2x bilinear upsample of [lx | ll*gate1],
    d = x - lx_up, 3x3 conv (+ folded BN2/bias) over a 1-row halo as three
    K=3*cp matmuls, out = out1([h_x, ll_up*gate1]) as one K=2*cp matmul, plus
    the per-tile partial sum of out for CA2's GAP."""
    f32, bf16 = jnp.float32, jnp.bfloat16
    trl = tr // 2
    i = pl.program_id(1)

    # halo'd full-res x rows: global rows [i*tr-1, i*tr+tr]
    xh = jnp.concatenate([xt_ref[0], xm_ref[0], xb_ref[0]], axis=0).astype(f32)

    # halo'd low-res [lx | ll*gate1] rows: low-res rows [i*trl-1, i*trl+trl]
    L = jnp.concatenate([lt_ref[0], lm_ref[0], lb_ref[0]], axis=0).astype(f32)

    # 2x bilinear row upsample (half-pixel / align_corners=False; edge clamp
    # comes from the clamped halo index maps + edge-padded low-res input)
    up_e = 0.25 * L[0:trl] + 0.75 * L[1:trl + 1]                    # rows 2k
    up_o = 0.75 * L[1:trl + 1] + 0.25 * L[2:trl + 2]                # rows 2k+1
    up_m = jnp.concatenate([up_e[:, None], up_o[:, None]],
                           axis=1).reshape(tr, w, 2 * cp)
    up_t = 0.75 * L[0:1] + 0.25 * L[1:2]                            # row i*tr-1
    up_b = 0.25 * L[trl:trl + 1] + 0.75 * L[trl + 1:trl + 2]        # row i*tr+tr
    up = jnp.concatenate([up_t, up_m, up_b], axis=0)                # (tr+2, w, 2cp)
    lx_up = up[:, :, :cp]
    ll_up = up[1:tr + 1, :, cp:]                                    # gate1 already folded

    # d = x - lx_up, zeroed outside the valid image rows (3x3 zero padding at
    # the top/bottom image edge + any tiling row padding)
    row = (i * tr - 1
           + jax.lax.broadcasted_iota(jnp.int32, (tr + 2, w, cp), 0))
    d = jnp.where(jnp.logical_and(row >= 0, row < h_img), xh - lx_up, 0.0)

    # column-shifted copies for kx = 0 / 2 (zero at the left/right image edge)
    # TODO(synk): pltpu.roll + an iota mask would route these through the XLU.
    zcol = jnp.zeros((tr + 2, 1, cp), f32)
    d_l = jnp.concatenate([zcol, d[:, :w - 1, :]], axis=1)          # d[., c-1, .]
    d_r = jnp.concatenate([d[:, 1:, :], zcol], axis=1)              # d[., c+1, .]
    dcat = jnp.concatenate([d_l, d, d_r], axis=-1).astype(bf16)     # (tr+2, w, 3cp)

    # 3x3 conv + folded BN2/bias: three K=3*cp matmuls over row-shifted views
    hx = jnp.zeros((tr * w, cp), f32) + bhx_ref[...]
    for ky in range(3):
        hx = hx + jnp.dot(dcat[ky:ky + tr].reshape(tr * w, 3 * cp),
                          wk_ref[ky], preferred_element_type=f32)

    # out1([h_x, ll*gate1]) as a single K=2*cp matmul
    hl = jnp.concatenate([hx.astype(bf16),
                          ll_up.reshape(tr * w, cp).astype(bf16)], axis=-1)
    out = jnp.dot(hl, wout_ref[...], preferred_element_type=f32)
    out3 = out.reshape(tr, w, cp)
    out_ref[0] = out3.astype(out_ref.dtype)

    # (masked) partial sum for CA2's global average pool
    if pad_rows:
        orow = i * tr + jax.lax.broadcasted_iota(jnp.int32, (tr, w, cp), 0)
        out3 = jnp.where(orow < h_img, out3, 0.0)
    s = jnp.sum(jnp.sum(out3, axis=0), axis=0, keepdims=True)       # (1, cp)
    ps_ref[0, 0] = jnp.broadcast_to(s * 0.125, (8, cp))


def _gate_residual_kernel(o_ref, x_ref, g_ref, f_ref):
    """final = out * sigmoid(sigmoid(ca2(out))) + x  (gate precomputed in XLA)."""
    f32 = jnp.float32
    f_ref[0] = o_ref[0].astype(f32) * g_ref[0, 0] + x_ref[0].astype(f32)


# ----------------------------- forward ---------------------------------------

def du2_forward(params, x_nchw, y_nchw):
    f32, bf16 = jnp.float32, jnp.bfloat16
    x = jnp.transpose(x_nchw, (0, 2, 3, 1)).astype(f32)            # NCHW -> NHWC
    y = jnp.transpose(y_nchw, (0, 2, 3, 1)).astype(f32)
    B, H, W, C = x.shape
    assert H % 2 == 0 and W % 2 == 0
    Hh, Wh = H // 2, W // 2
    assert y.shape == (B, Hh, Wh, C), "this port assumes y spatial == x spatial // 2"
    # TODO(synk): the torch branch resizing l_x onto l_y before cat_conv is a
    # no-op under this shape relationship (AvgPool2d(2) already matches y).

    Cp = _round_up(C, LANE)
    # TODO(synk): if the production channel count is much smaller than 128,
    # lane padding inflates HBM traffic ~Cp/C; pack spatial into lanes instead.

    budget = _vmem_budget()
    TR = _pick_row_tile(H, W, Cp, budget)                          # full-res rows / tile (even)
    TRl = TR // 2
    n_t = -(-H // TR)
    Hp, Hhp = n_t * TR, n_t * TRl
    pad_rows = Hp > H

    # ---- trace-time weight folding + lane padding (tiny) --------------------
    s1, sh1 = _bn_fold(params["bn1_g"], params["bn1_b"], params["bn1_m"], params["bn1_v"])
    wxa = params["wx"] @ (params["wcat_a"] * s1[None, :])          # cat_conv + BN1 folded
    wyb = params["wy"] @ (params["wcat_b"] * s1[None, :])
    s2, sh2 = _bn_fold(params["bn2_g"], params["bn2_b"], params["bn2_m"], params["bn2_v"])
    whx = params["whx"] * s2[None, None, None, :]                  # (ky,kx,Cin,Cout) * BN2
    bhx = params["bhx"] * s2 + sh2

    w1cat = jnp.concatenate([_pad2d(params["wx"], Cp, Cp), _pad2d(wxa, Cp, Cp)],
                            axis=1).astype(bf16)                   # (Cp, 2Cp): N=2*Cp dot
    wyb_p = _pad2d(wyb, Cp, Cp).astype(bf16)
    sh1_p = jnp.pad(sh1, (0, Cp - C)).reshape(1, Cp).astype(f32)
    wk_p = jnp.pad(whx, ((0, 0), (0, 0), (0, Cp - C), (0, Cp - C))
                   ).reshape(3, 3 * Cp, Cp).astype(bf16)           # per-ky K=3*Cp weights
    bhx_p = jnp.pad(bhx, (0, Cp - C)).reshape(1, Cp).astype(f32)
    wout_cat = jnp.concatenate([_pad2d(params["wout_a"], Cp, Cp),
                                _pad2d(params["wout_b"], Cp, Cp)],
                               axis=0).astype(bf16)                # (2Cp, Cp): K=2*Cp dot

    def channel_gate(gap_c, w1, b1, w2, b2):
        # ChannelAttention ends in Sigmoid; the torch forward applies
        # self.sigmoid(...) on top of it -> double sigmoid is intentional.
        a = jnp.maximum(gap_c @ w1 + b1, 0.0)
        g = jax.nn.sigmoid(jax.nn.sigmoid(a @ w2 + b2))
        return jnp.pad(g, ((0, 0), (0, Cp - C)))                   # (B, Cp)

    # ---- inputs: NHWC, lane/row pad, bf16 transport (XLA glue) --------------
    x_b = jnp.pad(x, ((0, 0), (0, Hp - H), (0, 0), (0, Cp - C))).astype(bf16)
    y_b = jnp.pad(y, ((0, 0), (0, Hhp - Hh), (0, 0), (0, Cp - C))).astype(bf16)
    x_pool = x.reshape(B, Hh, 2, Wh, 2, C).mean(axis=(2, 4))       # AvgPool2d(2)
    xp_b = jnp.pad(x_pool, ((0, 0), (0, Hhp - Hh), (0, 0), (0, Cp - C))).astype(bf16)

    cp_all = pltpu.CompilerParams(dimension_semantics=("parallel", "parallel"),
                                  vmem_limit_bytes=budget)
    wfull = lambda a: pl.BlockSpec(a.shape, lambda b, i: (0,) * a.ndim)
    low_spec = pl.BlockSpec((1, TRl, Wh, Cp), lambda b, i: (b, i, 0, 0))
    psum_spec = pl.BlockSpec((1, 1, 8, Cp), lambda b, i: (b, i, 0, 0))

    # ---- kernel 1: low branch (folded 1x1s + BN1) + CA1 GAP partials --------
    M1 = B * Hhp * Wh
    lx, ll, ps1 = pl.pallas_call(
        functools.partial(_low_kernel, trl=TRl, wh=Wh, cp=Cp, hh=Hh, pad_rows=pad_rows),
        grid=(B, n_t),
        in_specs=[low_spec, low_spec, wfull(w1cat), wfull(wyb_p), wfull(sh1_p)],
        out_specs=(low_spec, low_spec, psum_spec),
        out_shape=(jax.ShapeDtypeStruct((B, Hhp, Wh, Cp), bf16),
                   jax.ShapeDtypeStruct((B, Hhp, Wh, Cp), bf16),
                   jax.ShapeDtypeStruct((B, n_t, 8, Cp), f32)),
        compiler_params=cp_all,
        cost_estimate=pl.CostEstimate(flops=6 * M1 * Cp * Cp, transcendentals=0,
                                      bytes_accessed=8 * M1 * Cp + 6 * Cp * Cp),
    )(xp_b, y_b, w1cat, wyb_p, sh1_p)

    # ---- CA1 gate (tiny XLA) + width-direction half of the 2x upsample ------
    gap1 = ps1.sum(axis=(1, 2))[:, :C] / float(Hh * Wh)
    gate1 = channel_gate(gap1, params["ca1_w1"], params["ca1_b1"],
                         params["ca1_w2"], params["ca1_b2"])
    lxw = jax.image.resize(lx[:, :Hh].astype(f32), (B, Hh, W, Cp), "bilinear")
    llw = jax.image.resize(ll[:, :Hh].astype(f32), (B, Hh, W, Cp), "bilinear")
    lw = jnp.concatenate([lxw, llw * gate1[:, None, None, :]], axis=-1).astype(bf16)
    if pad_rows:   # edge-replicate so the in-kernel row halo clamps correctly
        lw = jnp.pad(lw, ((0, 0), (0, Hhp - Hh), (0, 0), (0, 0)), mode="edge")
    # TODO(synk): the width-direction upsample could also be fused in-kernel
    # (sublane interleave); kept in XLA on the half-resolution arrays.

    # ---- kernel 2: row upsample + (x - lx_up) + 3x3 conv + out1 + CA2 partials
    xmid = pl.BlockSpec((1, TR, W, Cp), lambda b, i: (b, i, 0, 0))
    xtop = pl.BlockSpec((1, 1, W, Cp),
                        lambda b, i: (b, jnp.maximum(i * TR - 1, 0), 0, 0))
    xbot = pl.BlockSpec((1, 1, W, Cp),
                        lambda b, i: (b, jnp.minimum(i * TR + TR, Hp - 1), 0, 0))
    lmid = pl.BlockSpec((1, TRl, W, 2 * Cp), lambda b, i: (b, i, 0, 0))
    ltop = pl.BlockSpec((1, 1, W, 2 * Cp),
                        lambda b, i: (b, jnp.maximum(i * TRl - 1, 0), 0, 0))
    lbot = pl.BlockSpec((1, 1, W, 2 * Cp),
                        lambda b, i: (b, jnp.minimum(i * TRl + TRl, Hhp - 1), 0, 0))

    M2 = B * Hp * W
    out, ps2 = pl.pallas_call(
        functools.partial(_high_kernel, tr=TR, w=W, cp=Cp, h_img=H, pad_rows=pad_rows),
        grid=(B, n_t),
        in_specs=[xmid, xtop, xbot, lmid, ltop, lbot,
                  wfull(wk_p), wfull(bhx_p), wfull(wout_cat)],
        out_specs=(pl.BlockSpec((1, TR, W, Cp), lambda b, i: (b, i, 0, 0)), psum_spec),
        out_shape=(jax.ShapeDtypeStruct((B, Hp, W, Cp), bf16),
                   jax.ShapeDtypeStruct((B, n_t, 8, Cp), f32)),
        compiler_params=cp_all,
        cost_estimate=pl.CostEstimate(flops=22 * M2 * Cp * Cp, transcendentals=0,
                                      bytes_accessed=6 * M2 * Cp + 11 * Cp * Cp),
    )(x_b, x_b, x_b, lw, lw, lw, wk_p, bhx_p, wout_cat)

    # ---- CA2 gate (tiny XLA) + kernel 3: apply gate + residual --------------
    gap2 = ps2.sum(axis=(1, 2))[:, :C] / float(H * W)
    gate2 = channel_gate(gap2, params["ca2_w1"], params["ca2_b1"],
                         params["ca2_w2"], params["ca2_b2"]).reshape(B, 1, 1, Cp)

    final = pl.pallas_call(
        _gate_residual_kernel,
        grid=(B, n_t),
        in_specs=[xmid, xmid,
                  pl.BlockSpec((1, 1, 1, Cp), lambda b, i: (b, 0, 0, 0))],
        out_specs=pl.BlockSpec((1, TR, W, Cp), lambda b, i: (b, i, 0, 0)),
        out_shape=jax.ShapeDtypeStruct((B, Hp, W, Cp), f32),
        compiler_params=cp_all,
        cost_estimate=pl.CostEstimate(flops=2 * M2 * Cp, transcendentals=0,
                                      bytes_accessed=8 * M2 * Cp),
    )(out, x_b, gate2)

    res = final[:, :H, :, :C]
    return jnp.transpose(res, (0, 3, 1, 2))                        # NHWC -> NCHW


# ----------------------------- pure-JAX reference ----------------------------

def du2_reference(params, x_nchw, y_nchw):
    x = jnp.transpose(x_nchw, (0, 2, 3, 1)).astype(jnp.float32)
    y = jnp.transpose(y_nchw, (0, 2, 3, 1)).astype(jnp.float32)
    B, H, W, C = x.shape
    Hh, Wh = H // 2, W // 2

    def bn(t, g, b, m, v, eps=1e-5):
        return (t - m) / jnp.sqrt(v + eps) * g + b

    def ca(t, w1, b1, w2, b2):
        gap = t.mean(axis=(1, 2))
        a = jnp.maximum(gap @ w1 + b1, 0.0)
        return jax.nn.sigmoid(a @ w2 + b2)          # ChannelAttention ends in Sigmoid

    x_pool = x.reshape(B, Hh, 2, Wh, 2, C).mean(axis=(2, 4))
    lx = x_pool @ params["wx"]
    ly = y @ params["wy"]
    ll = lx @ params["wcat_a"] + ly @ params["wcat_b"]
    ll = bn(ll, params["bn1_g"], params["bn1_b"], params["bn1_m"], params["bn1_v"])
    ll = ll * jax.nn.sigmoid(ca(ll, params["ca1_w1"], params["ca1_b1"],
                                params["ca1_w2"], params["ca1_b2"]))[:, None, None, :]
    lx_up = jax.image.resize(lx, (B, H, W, C), "bilinear")
    ll_up = jax.image.resize(ll, (B, H, W, C), "bilinear")
    d = x - lx_up
    dp = jnp.pad(d, ((0, 0), (1, 1), (1, 1), (0, 0)))
    h = sum(dp[:, ky:ky + H, kx:kx + W, :] @ params["whx"][ky, kx]
            for ky in range(3) for kx in range(3)) + params["bhx"]
    h = bn(h, params["bn2_g"], params["bn2_b"], params["bn2_m"], params["bn2_v"])
    out = h @ params["wout_a"] + ll_up @ params["wout_b"]
    out = out * jax.nn.sigmoid(ca(out, params["ca2_w1"], params["ca2_b1"],
                                  params["ca2_w2"], params["ca2_b2"]))[:, None, None, :] + x
    return jnp.transpose(out, (0, 3, 1, 2))


# ----------------------------- params -----------------------------------------

def init_params(C, reduction=8, key=jax.random.PRNGKey(1)):
    Cr = max(C // reduction, 1)
    ks = jax.random.split(key, 24)

    def n(i, shape, s=0.2):
        return (s * jax.random.normal(ks[i], shape)).astype(jnp.float32)

    return {
        # 1x1 convs stored as (Cin, Cout) matmul weights
        "wx": n(0, (C, C)), "wy": n(1, (C, C)),
        "wcat_a": n(2, (C, C)), "wcat_b": n(3, (C, C)),
        # BatchNorm after cat_conv (eval mode)
        "bn1_g": 1.0 + n(4, (C,), 0.1), "bn1_b": n(5, (C,), 0.1),
        "bn1_m": n(6, (C,), 0.1), "bn1_v": 1.0 + 0.1 * jax.random.uniform(ks[7], (C,)),
        # ChannelAttention 1
        "ca1_w1": n(8, (C, Cr)), "ca1_b1": n(9, (1, Cr), 0.1),
        "ca1_w2": n(10, (Cr, C)), "ca1_b2": n(11, (1, C), 0.1),
        # hx: 3x3 conv stored as (ky, kx, Cin, Cout) + bias + BN
        "whx": n(12, (3, 3, C, C)), "bhx": n(13, (C,), 0.1),
        "bn2_g": 1.0 + n(14, (C,), 0.1), "bn2_b": n(15, (C,), 0.1),
        "bn2_m": n(16, (C,), 0.1), "bn2_v": 1.0 + 0.1 * jax.random.uniform(ks[17], (C,)),
        # out1 1x1 conv (split for concat halves: h_x then ll)
        "wout_a": n(18, (C, C)), "wout_b": n(19, (C, C)),
        # ChannelAttention 2
        "ca2_w1": n(20, (C, Cr)), "ca2_b1": n(21, (1, Cr), 0.1),
        "ca2_w2": n(22, (Cr, C)), "ca2_b2": n(23, (1, C), 0.1),
    }


# ----------------------------- main -------------------------------------------

if __name__ == "__main__":
    B, C, H, W = 2, 16, 16, 16
    kx, ky = jax.random.split(jax.random.PRNGKey(0))
    x = jax.random.normal(kx, (B, C, H, W), dtype=jnp.float32)            # NCHW
    y = jax.random.normal(ky, (B, C, H // 2, W // 2), dtype=jnp.float32)  # NCHW

    params = init_params(C)
    out = jax.jit(du2_forward)(params, x, y)
    out = jax.block_until_ready(out)

    assert out.shape == (B, C, H, W) and out.dtype == jnp.float32
    assert bool(jnp.all(jnp.isfinite(out)))
    ref = du2_reference(params, x, y)
    assert bool(jnp.allclose(out, ref, atol=2e-1, rtol=1e-1)), \
        float(jnp.max(jnp.abs(out - ref)))
    print("KERNEL_OK")
</pallas_src>

<mosaic_0001>
module attributes {stable_mosaic.version = 11 : i64} {
  func.func @_low_kernel(%arg0: i32, %arg1: i32, %arg2: memref<1x8x8x128xbf16, #tpu.memory_space<vmem>>, %arg3: memref<1x8x8x128xbf16, #tpu.memory_space<vmem>>, %arg4: memref<128x256xbf16, #tpu.memory_space<vmem>>, %arg5: memref<128x128xbf16, #tpu.memory_space<vmem>>, %arg6: memref<1x128xf32, #tpu.memory_space<vmem>>, %arg7: memref<1x8x8x128xbf16, #tpu.memory_space<vmem>>, %arg8: memref<1x8x8x128xbf16, #tpu.memory_space<vmem>>, %arg9: memref<1x1x8x128xf32, #tpu.memory_space<vmem>>) attributes {dimension_semantics = [#tpu.dimension_semantics<parallel>, #tpu.dimension_semantics<parallel>], iteration_bounds = array<i64: 2, 1>, scalar_prefetch = 0 : i64, scratch_operands = 0 : i64, tpu.core_type = #tpu.core_type<tc>, window_params = [{transform_indices = @transform_0, window_bounds = array<i64: 1, 8, 8, 128>}, {transform_indices = @transform_1, window_bounds = array<i64: 1, 8, 8, 128>}, {pipeline_mode = #tpu.pipeline_mode<synchronous>, transform_indices = @transform_2, window_bounds = array<i64: 128, 256>}, {pipeline_mode = #tpu.pipeline_mode<synchronous>, transform_indices = @transform_3, window_bounds = array<i64: 128, 128>}, {pipeline_mode = #tpu.pipeline_mode<synchronous>, transform_indices = @transform_4, window_bounds = array<i64: 1, 128>}, {transform_indices = @transform_5, window_bounds = array<i64: 1, 8, 8, 128>}, {transform_indices = @transform_6, window_bounds = array<i64: 1, 8, 8, 128>}, {transform_indices = @transform_7, window_bounds = array<i64: 1, 1, 8, 128>}]} {
    %c0 = arith.constant 0 : index
    %c0_0 = arith.constant 0 : index
    %c0_1 = arith.constant 0 : index
    %c0_2 = arith.constant 0 : index
    %0 = vector.load %arg2[%c0, %c0_0, %c0_1, %c0_2] : memref<1x8x8x128xbf16, #tpu.memory_space<vmem>>, vector<1x8x8x128xbf16>
    %1 = vector.shape_cast %0 : vector<1x8x8x128xbf16> to vector<8x8x128xbf16>
    %2 = vector.shape_cast %1 : vector<8x8x128xbf16> to vector<64x128xbf16>
    %c0_3 = arith.constant 0 : index
    %c0_4 = arith.constant 0 : index
    %c0_5 = arith.constant 0 : index
    %c0_6 = arith.constant 0 : index
    %3 = vector.load %arg3[%c0_3, %c0_4, %c0_5, %c0_6] : memref<1x8x8x128xbf16, #tpu.memory_space<vmem>>, vector<1x8x8x128xbf16>
    %4 = vector.shape_cast %3 : vector<1x8x8x128xbf16> to vector<8x8x128xbf16>
    %5 = vector.shape_cast %4 : vector<8x8x128xbf16> to vector<64x128xbf16>
    %c0_7 = arith.constant 0 : index
    %c0_8 = arith.constant 0 : index
    %6 = vector.load %arg4[%c0_7, %c0_8] : memref<128x256xbf16, #tpu.memory_space<vmem>>, vector<128x256xbf16>
    %cst = arith.constant dense<0.000000e+00> : vector<64x256xf32>
    %7 = tpu.matmul %2, %6, %cst {dimension_numbers = #tpu.dot_dimension_numbers<[1], [0], [0], [1], [0, 0, 1, 1], [], []>} : vector<64x128xbf16>, vector<128x256xbf16>, vector<64x256xf32> -> vector<64x256xf32>
    %8 = vector.extract_strided_slice %7 {offsets = [0, 0], sizes = [64, 128], strides = [1, 1]} : vector<64x256xf32> to vector<64x128xf32>
    %9 = vector.extract_strided_slice %7 {offsets = [0, 128], sizes = [64, 128], strides = [1, 1]} : vector<64x256xf32> to vector<64x128xf32>
    %c0_9 = arith.constant 0 : index
    %c0_10 = arith.constant 0 : index
    %10 = vector.load %arg5[%c0_9, %c0_10] : memref<128x128xbf16, #tpu.memory_space<vmem>>, vector<128x128xbf16>
    %cst_11 = arith.constant dense<0.000000e+00> : vector<64x128xf32>
    %11 = tpu.matmul %5, %10, %cst_11 {dimension_numbers = #tpu.dot_dimension_numbers<[1], [0], [0], [1], [0, 0, 1, 1], [], []>} : vector<64x128xbf16>, vector<128x128xbf16>, vector<64x128xf32> -> vector<64x128xf32>
    %12 = arith.addf %9, %11 : vector<64x128xf32>
    %c0_12 = arith.constant 0 : index
    %c0_13 = arith.constant 0 : index
    %13 = vector.load %arg6[%c0_12, %c0_13] : memref<1x128xf32, #tpu.memory_space<vmem>>, vector<1x128xf32>
    %14 = vector.broadcast %13 : vector<1x128xf32> to vector<64x128xf32>
    %15 = arith.addf %12, %14 : vector<64x128xf32>
    %16 = vector.shape_cast %8 : vector<64x128xf32> to vector<8x8x128xf32>
    %17 = arith.truncf %16 : vector<8x8x128xf32> to vector<8x8x128xbf16>
    %c0_14 = arith.constant 0 : index
    %c0_15 = arith.constant 0 : index
    %c0_16 = arith.constant 0 : index
    %c0_17 = arith.constant 0 : index
    %18 = vector.load %arg7[%c0_14, %c0_15, %c0_16, %c0_17] : memref<1x8x8x128xbf16, #tpu.memory_space<vmem>>, vector<1x8x8x128xbf16>
    %19 = vector.shape_cast %18 : vector<1x8x8x128xbf16> to vector<8x8x128xbf16>
    %20 = vector.shape_cast %17 : vector<8x8x128xbf16> to vector<1x8x8x128xbf16>
    tpu.vector_store %arg7[%c0_14, %c0_15, %c0_16, %c0_17], %20 {strides = array<i32>} : memref<1x8x8x128xbf16, #tpu.memory_space<vmem>>, vector<1x8x8x128xbf16>,
    %21 = vector.shape_cast %15 : vector<64x128xf32> to vector<8x8x128xf32>
    %22 = arith.truncf %21 : vector<8x8x128xf32> to vector<8x8x128xbf16>
    %c0_18 = arith.constant 0 : index
    %c0_19 = arith.constant 0 : index
    %c0_20 = arith.constant 0 : index
    %c0_21 = arith.constant 0 : index
    %23 = vector.load %arg8[%c0_18, %c0_19, %c0_20, %c0_21] : memref<1x8x8x128xbf16, #tpu.memory_space<vmem>>, vector<1x8x8x128xbf16>
    %24 = vector.shape_cast %23 : vector<1x8x8x128xbf16> to vector<8x8x128xbf16>
    %25 = vector.shape_cast %22 : vector<8x8x128xbf16> to vector<1x8x8x128xbf16>
    tpu.vector_store %arg8[%c0_18, %c0_19, %c0_20, %c0_21], %25 {strides = array<i32>} : memref<1x8x8x128xbf16, #tpu.memory_space<vmem>>, vector<1x8x8x128xbf16>,
    %cst_22 = arith.constant dense<0.000000e+00> : vector<8x128xf32>
    %26 = vector.multi_reduction <add>, %21, %cst_22 [0] : vector<8x8x128xf32> to vector<8x128xf32>
    %cst_23 = arith.constant dense<0.000000e+00> : vector<128xf32>
    %27 = vector.multi_reduction <add>, %26, %cst_23 [0] : vector<8x128xf32> to vector<128xf32>
    %28 = vector.shape_cast %27 : vector<128xf32> to vector<1x128xf32>
    %cst_24 = arith.constant 1.250000e-01 : f32
    %29 = vector.broadcast %cst_24 : f32 to vector<1x128xf32>
    %30 = arith.mulf %28, %29 : vector<1x128xf32>
    %31 = vector.shape_cast %30 : vector<1x128xf32> to vector<1x128xf32>
    %32 = vector.broadcast %31 : vector<1x128xf32> to vector<8x128xf32>
    %c0_25 = arith.constant 0 : index
    %c0_26 = arith.constant 0 : index
    %c0_27 = arith.constant 0 : index
    %c0_28 = arith.constant 0 : index
    %33 = vector.load %arg9[%c0_25, %c0_26, %c0_27, %c0_28] : memref<1x1x8x128xf32, #tpu.memory_space<vmem>>, vector<1x1x8x128xf32>
    %34 = vector.shape_cast %33 : vector<1x1x8x128xf32> to vector<8x128xf32>
    %35 = vector.shape_cast %32 : vector<8x128xf32> to vector<1x1x8x128xf32>
    tpu.vector_store %arg9[%c0_25, %c0_26, %c0_27, %c0_28], %35 {strides = array<i32>} : memref<1x1x8x128xf32, #tpu.memory_space<vmem>>, vector<1x1x8x128xf32>,
    return
  }
  func.func @transform_0(%arg0: i32, %arg1: i32) -> (i32, i32, i32, i32) {
    %c0_i32 = arith.constant 0 : i32
    %c0_i32_0 = arith.constant 0 : i32
    %c0_i32_1 = arith.constant 0 : i32
    return %arg0, %arg1, %c0_i32, %c0_i32_0 : i32, i32, i32, i32
  }
  func.func @transform_1(%arg0: i32, %arg1: i32) -> (i32, i32, i32, i32) {
    %c0_i32 = arith.constant 0 : i32
    %c0_i32_0 = arith.constant 0 : i32
    %c0_i32_1 = arith.constant 0 : i32
    return %arg0, %arg1, %c0_i32, %c0_i32_0 : i32, i32, i32, i32
  }
  func.func @transform_2(%arg0: i32, %arg1: i32) -> (i32, i32) {
    %c0_i32 = arith.constant 0 : i32
    %c0_i32_0 = arith.constant 0 : i32
    %c0_i32_1 = arith.constant 0 : i32
    return %c0_i32, %c0_i32_0 : i32, i32
  }
  func.func @transform_3(%arg0: i32, %arg1: i32) -> (i32, i32) {
    %c0_i32 = arith.constant 0 : i32
    %c0_i32_0 = arith.constant 0 : i32
    %c0_i32_1 = arith.constant 0 : i32
    return %c0_i32, %c0_i32_0 : i32, i32
  }
  func.func @transform_4(%arg0: i32, %arg1: i32) -> (i32, i32) {
    %c0_i32 = arith.constant 0 : i32
    %c0_i32_0 = arith.constant 0 : i32
    %c0_i32_1 = arith.constant 0 : i32
    return %c0_i32, %c0_i32_0 : i32, i32
  }
  func.func @transform_5(%arg0: i32, %arg1: i32) -> (i32, i32, i32, i32) {
    %c0_i32 = arith.constant 0 : i32
    %c0_i32_0 = arith.constant 0 : i32
    %c0_i32_1 = arith.constant 0 : i32
    return %arg0, %arg1, %c0_i32, %c0_i32_0 : i32, i32, i32, i32
  }
  func.func @transform_6(%arg0: i32, %arg1: i32) -> (i32, i32, i32, i32) {
    %c0_i32 = arith.constant 0 : i32
    %c0_i32_0 = arith.constant 0 : i32
    %c0_i32_1 = arith.constant 0 : i32
    return %arg0, %arg1, %c0_i32, %c0_i32_0 : i32, i32, i32, i32
  }
  func.func @transform_7(%arg0: i32, %arg1: i32) -> (i32, i32, i32, i32) {
    %c0_i32 = arith.constant 0 : i32
    %c0_i32_0 = arith.constant 0 : i32
    %c0_i32_1 = arith.constant 0 : i32
    return %arg0, %arg1, %c0_i32, %c0_i32_0 : i32, i32, i32, i32
  }
}

module attributes {stable_mosaic.version = 11 : i64} {
  func.func @_gate_residual_kernel(%arg0: i32, %arg1: i32, %arg2: memref<1x16x16x128xbf16, #tpu.memory_space<vmem>>, %arg3: memref<1x16x16x128xbf16, #tpu.memory_space<vmem>>, %arg4: memref<1x1x1x128xf32, #tpu.memory_space<vmem>>, %arg5: memref<1x16x16x128xf32, #tpu.memory_space<vmem>>) attributes {dimension_semantics = [#tpu.dimension_semantics<parallel>, #tpu.dimension_semantics<parallel>], iteration_bounds = array<i64: 2, 1>, scalar_prefetch = 0 : i64, scratch_operands = 0 : i64, tpu.core_type = #tpu.core_type<tc>, window_params = [{transform_indices = @transform_0, window_bounds = array<i64: 1, 16, 16, 128>}, {transform_indices = @transform_1, window_bounds = array<i64: 1, 16, 16, 128>}, {transform_indices = @transform_2, window_bounds = array<i64: 1, 1, 1, 128>}, {transform_indices = @transform_3, window_bounds = array<i64: 1, 16, 16, 128>}]} {
    %c0 = arith.constant 0 : index
    %c0_0 = arith.constant 0 : index
    %c0_1 = arith.constant 0 : index
    %c0_2 = arith.constant 0 : index
    %0 = vector.load %arg2[%c0, %c0_0, %c0_1, %c0_2] : memref<1x16x16x128xbf16, #tpu.memory_space<vmem>>, vector<1x16x16x128xbf16>
    %1 = vector.shape_cast %0 : vector<1x16x16x128xbf16> to vector<16x16x128xbf16>
    %2 = arith.extf %1 : vector<16x16x128xbf16> to vector<16x16x128xf32>
    %c0_3 = arith.constant 0 : index
    %c0_4 = arith.constant 0 : index
    %c0_5 = arith.constant 0 : index
    %c0_6 = arith.constant 0 : index
    %3 = vector.load %arg4[%c0_3, %c0_4, %c0_5, %c0_6] : memref<1x1x1x128xf32, #tpu.memory_space<vmem>>, vector<1x1x1x128xf32>
    %4 = vector.shape_cast %3 : vector<1x1x1x128xf32> to vector<1x128xf32>
    %5 = vector.shape_cast %4 : vector<1x128xf32> to vector<1x1x128xf32>
    %6 = vector.broadcast %5 : vector<1x1x128xf32> to vector<16x16x128xf32>
    %7 = arith.mulf %2, %6 : vector<16x16x128xf32>
    %c0_7 = arith.constant 0 : index
    %c0_8 = arith.constant 0 : index
    %c0_9 = arith.constant 0 : index
    %c0_10 = arith.constant 0 : index
    %8 = vector.load %arg3[%c0_7, %c0_8, %c0_9, %c0_10] : memref<1x16x16x128xbf16, #tpu.memory_space<vmem>>, vector<1x16x16x128xbf16>
    %9 = vector.shape_cast %8 : vector<1x16x16x128xbf16> to vector<16x16x128xbf16>
    %10 = arith.extf %9 : vector<16x16x128xbf16> to vector<16x16x128xf32>
    %11 = arith.addf %7, %10 : vector<16x16x128xf32>
    %c0_11 = arith.constant 0 : index
    %c0_12 = arith.constant 0 : index
    %c0_13 = arith.constant 0 : index
    %c0_14 = arith.constant 0 : index
    %12 = vector.load %arg5[%c0_11, %c0_12, %c0_13, %c0_14] : memref<1x16x16x128xf32, #tpu.memory_space<vmem>>, vector<1x16x16x128xf32>
    %13 = vector.shape_cast %12 : vector<1x16x16x128xf32> to vector<16x16x128xf32>
    %14 = vector.shape_cast %11 : vector<16x16x128xf32> to vector<1x16x16x128xf32>
    tpu.vector_store %arg5[%c0_11, %c0_12, %c0_13, %c0_14], %14 {strides = array<i32>} : memref<1x16x16x128xf32, #tpu.memory_space<vmem>>, vector<1x16x16x128xf32>,
    return
  }
  func.func @transform_0(%arg0: i32, %arg1: i32) -> (i32, i32, i32, i32) {
    %c0_i32 = arith.constant 0 : i32
    %c0_i32_0 = arith.constant 0 : i32
    %c0_i32_1 = arith.constant 0 : i32
    return %arg0, %arg1, %c0_i32, %c0_i32_0 : i32, i32, i32, i32
  }
  func.func @transform_1(%arg0: i32, %arg1: i32) -> (i32, i32, i32, i32) {
    %c0_i32 = arith.constant 0 : i32
    %c0_i32_0 = arith.constant 0 : i32
    %c0_i32_1 = arith.constant 0 : i32
    return %arg0, %arg1, %c0_i32, %c0_i32_0 : i32, i32, i32, i32
  }
  func.func @transform_2(%arg0: i32, %arg1: i32) -> (i32, i32, i32, i32) {
    %c0_i32 = arith.constant 0 : i32
    %c0_i32_0 = arith.constant 0 : i32
    %c0_i32_1 = arith.constant 0 : i32
    %c0_i32_2 = arith.constant 0 : i32
    return %arg0, %c0_i32, %c0_i32_0, %c0_i32_1 : i32, i32, i32, i32
  }
  func.func @transform_3(%arg0: i32, %arg1: i32) -> (i32, i32, i32, i32) {
    %c0_i32 = arith.constant 0 : i32
    %c0_i32_0 = arith.constant 0 : i32
    %c0_i32_1 = arith.constant 0 : i32
    return %arg0, %arg1, %c0_i32, %c0_i32_0 : i32, i32, i32, i32
  }
}

module attributes {stable_mosaic.version = 11 : i64} {
  func.func @_high_kernel(%arg0: i32, %arg1: i32, %arg2: memref<1x16x16x128xbf16, #tpu.memory_space<vmem>>, %arg3: memref<1x1x16x128xbf16, #tpu.memory_space<vmem>>, %arg4: memref<1x1x16x128xbf16, #tpu.memory_space<vmem>>, %arg5: memref<1x8x16x256xbf16, #tpu.memory_space<vmem>>, %arg6: memref<1x1x16x256xbf16, #tpu.memory_space<vmem>>, %arg7: memref<1x1x16x256xbf16, #tpu.memory_space<vmem>>, %arg8: memref<3x384x128xbf16, #tpu.memory_space<vmem>>, %arg9: memref<1x128xf32, #tpu.memory_space<vmem>>, %arg10: memref<256x128xbf16, #tpu.memory_space<vmem>>, %arg11: memref<1x16x16x128xbf16, #tpu.memory_space<vmem>>, %arg12: memref<1x1x8x128xf32, #tpu.memory_space<vmem>>) attributes {dimension_semantics = [#tpu.dimension_semantics<parallel>, #tpu.dimension_semantics<parallel>], iteration_bounds = array<i64: 2, 1>, scalar_prefetch = 0 : i64, scratch_operands = 0 : i64, tpu.core_type = #tpu.core_type<tc>, window_params = [{transform_indices = @transform_0, window_bounds = array<i64: 1, 16, 16, 128>}, {transform_indices = @transform_1, window_bounds = array<i64: 1, 1, 16, 128>}, {transform_indices = @transform_2, window_bounds = array<i64: 1, 1, 16, 128>}, {transform_indices = @transform_3, window_bounds = array<i64: 1, 8, 16, 256>}, {transform_indices = @transform_4, window_bounds = array<i64: 1, 1, 16, 256>}, {transform_indices = @transform_5, window_bounds = array<i64: 1, 1, 16, 256>}, {pipeline_mode = #tpu.pipeline_mode<synchronous>, transform_indices = @transform_6, window_bounds = array<i64: 3, 384, 128>}, {pipeline_mode = #tpu.pipeline_mode<synchronous>, transform_indices = @transform_7, window_bounds = array<i64: 1, 128>}, {pipeline_mode = #tpu.pipeline_mode<synchronous>, transform_indices = @transform_8, window_bounds = array<i64: 256, 128>}, {transform_indices = @transform_9, window_bounds = array<i64: 1, 16, 16, 128>}, {transform_indices = @transform_10, window_bounds = array<i64: 1, 1, 8, 128>}]} {
    %c0 = arith.constant 0 : index
    %c0_0 = arith.constant 0 : index
    %c0_1 = arith.constant 0 : index
    %c0_2 = arith.constant 0 : index
    %0 = vector.load %arg3[%c0, %c0_0, %c0_1, %c0_2] : memref<1x1x16x128xbf16, #tpu.memory_space<vmem>>, vector<1x1x16x128xbf16>
    %1 = vector.shape_cast %0 : vector<1x1x16x128xbf16> to vector<1x16x128xbf16>
    %c0_3 = arith.constant 0 : index
    %c0_4 = arith.constant 0 : index
    %c0_5 = arith.constant 0 : index
    %c0_6 = arith.constant 0 : index
    %2 = vector.load %arg2[%c0_3, %c0_4, %c0_5, %c0_6] : memref<1x16x16x128xbf16, #tpu.memory_space<vmem>>, vector<1x16x16x128xbf16>
    %3 = vector.shape_cast %2 : vector<1x16x16x128xbf16> to vector<16x16x128xbf16>
    %c0_7 = arith.constant 0 : index
    %c0_8 = arith.constant 0 : index
    %c0_9 = arith.constant 0 : index
    %c0_10 = arith.constant 0 : index
    %4 = vector.load %arg4[%c0_7, %c0_8, %c0_9, %c0_10] : memref<1x1x16x128xbf16, #tpu.memory_space<vmem>>, vector<1x1x16x128xbf16>
    %5 = vector.shape_cast %4 : vector<1x1x16x128xbf16> to vector<1x16x128xbf16>
    %6 = tpu.concatenate %1, %3, %5 in 0 : vector<1x16x128xbf16>, vector<16x16x128xbf16>, vector<1x16x128xbf16> -> vector<18x16x128xbf16>
    %7 = arith.extf %6 : vector<18x16x128xbf16> to vector<18x16x128xf32>
    %c0_11 = arith.constant 0 : index
    %c0_12 = arith.constant 0 : index
    %c0_13 = arith.constant 0 : index
    %c0_14 = arith.constant 0 : index
    %8 = vector.load %arg6[%c0_11, %c0_12, %c0_13, %c0_14] : memref<1x1x16x256xbf16, #tpu.memory_space<vmem>>, vector<1x1x16x256xbf16>
    %9 = vector.shape_cast %8 : vector<1x1x16x256xbf16> to vector<1x16x256xbf16>
    %c0_15 = arith.constant 0 : index
    %c0_16 = arith.constant 0 : index
    %c0_17 = arith.constant 0 : index
    %c0_18 = arith.constant 0 : index
    %10 = vector.load %arg5[%c0_15, %c0_16, %c0_17, %c0_18] : memref<1x8x16x256xbf16, #tpu.memory_space<vmem>>, vector<1x8x16x256xbf16>
    %11 = vector.shape_cast %10 : vector<1x8x16x256xbf16> to vector<8x16x256xbf16>
    %c0_19 = arith.constant 0 : index
    %c0_20 = arith.constant 0 : index
    %c0_21 = arith.constant 0 : index
    %c0_22 = arith.constant 0 : index
    %12 = vector.load %arg7[%c0_19, %c0_20, %c0_21, %c0_22] : memref<1x1x16x256xbf16, #tpu.memory_space<vmem>>, vector<1x1x16x256xbf16>
    %13 = vector.shape_cast %12 : vector<1x1x16x256xbf16> to vector<1x16x256xbf16>
    %14 = tpu.concatenate %9, %11, %13 in 0 : vector<1x16x256xbf16>, vector<8x16x256xbf16>, vector<1x16x256xbf16> -> vector<10x16x256xbf16>
    %15 = arith.extf %14 : vector<10x16x256xbf16> to vector<10x16x256xf32>
    %16 = vector.extract_strided_slice %15 {offsets = [0, 0, 0], sizes = [8, 16, 256], strides = [1, 1, 1]} : vector<10x16x256xf32> to vector<8x16x256xf32>
    %cst = arith.constant 2.500000e-01 : f32
    %17 = vector.broadcast %cst : f32 to vector<8x16x256xf32>
    %18 = arith.mulf %17, %16 : vector<8x16x256xf32>
    %19 = vector.extract_strided_slice %15 {offsets = [1, 0, 0], sizes = [8, 16, 256], strides = [1, 1, 1]} : vector<10x16x256xf32> to vector<8x16x256xf32>
    %cst_23 = arith.constant 7.500000e-01 : f32
    %20 = vector.broadcast %cst_23 : f32 to vector<8x16x256xf32>
    %21 = arith.mulf %20, %19 : vector<8x16x256xf32>
    %22 = arith.addf %18, %21 : vector<8x16x256xf32>
    %23 = vector.extract_strided_slice %15 {offsets = [1, 0, 0], sizes = [8, 16, 256], strides = [1, 1, 1]} : vector<10x16x256xf32> to vector<8x16x256xf32>
    %cst_24 = arith.constant 7.500000e-01 : f32
    %24 = vector.broadcast %cst_24 : f32 to vector<8x16x256xf32>
    %25 = arith.mulf %24, %23 : vector<8x16x256xf32>
    %26 = vector.extract_strided_slice %15 {offsets = [2, 0, 0], sizes = [8, 16, 256], strides = [1, 1, 1]} : vector<10x16x256xf32> to vector<8x16x256xf32>
    %cst_25 = arith.constant 2.500000e-01 : f32
    %27 = vector.broadcast %cst_25 : f32 to vector<8x16x256xf32>
    %28 = arith.mulf %27, %26 : vector<8x16x256xf32>
    %29 = arith.addf %25, %28 : vector<8x16x256xf32>
    %30 = vector.shape_cast %22 : vector<8x16x256xf32> to vector<8x1x16x256xf32>
    %31 = vector.shape_cast %29 : vector<8x16x256xf32> to vector<8x1x16x256xf32>
    %32 = tpu.concatenate %30, %31 in 1 : vector<8x1x16x256xf32>, vector<8x1x16x256xf32> -> vector<8x2x16x256xf32>
    %33 = vector.shape_cast %32 : vector<8x2x16x256xf32> to vector<16x16x256xf32>
    %34 = vector.extract_strided_slice %15 {offsets = [0, 0, 0], sizes = [1, 16, 256], strides = [1, 1, 1]} : vector<10x16x256xf32> to vector<1x16x256xf32>
    %cst_26 = arith.constant 7.500000e-01 : f32
    %35 = vector.broadcast %cst_26 : f32 to vector<1x16x256xf32>
    %36 = arith.mulf %35, %34 : vector<1x16x256xf32>
    %37 = vector.extract_strided_slice %15 {offsets = [1, 0, 0], sizes = [1, 16, 256], strides = [1, 1, 1]} : vector<10x16x256xf32> to vector<1x16x256xf32>
    %cst_27 = arith.constant 2.500000e-01 : f32
    %38 = vector.broadcast %cst_27 : f32 to vector<1x16x256xf32>
    %39 = arith.mulf %38, %37 : vector<1x16x256xf32>
    %40 = arith.addf %36, %39 : vector<1x16x256xf32>
    %41 = vector.extract_strided_slice %15 {offsets = [8, 0, 0], sizes = [1, 16, 256], strides = [1, 1, 1]} : vector<10x16x256xf32> to vector<1x16x256xf32>
    %cst_28 = arith.constant 2.500000e-01 : f32
    %42 = vector.broadcast %cst_28 : f32 to vector<1x16x256xf32>
    %43 = arith.mulf %42, %41 : vector<1x16x256xf32>
    %44 = vector.extract_strided_slice %15 {offsets = [9, 0, 0], sizes = [1, 16, 256], strides = [1, 1, 1]} : vector<10x16x256xf32> to vector<1x16x256xf32>
    %cst_29 = arith.constant 7.500000e-01 : f32
    %45 = vector.broadcast %cst_29 : f32 to vector<1x16x256xf32>
    %46 = arith.mulf %45, %44 : vector<1x16x256xf32>
    %47 = arith.addf %43, %46 : vector<1x16x256xf32>
    %48 = tpu.concatenate %40, %33, %47 in 0 : vector<1x16x256xf32>, vector<16x16x256xf32>, vector<1x16x256xf32> -> vector<18x16x256xf32>
    %49 = vector.extract_strided_slice %48 {offsets = [0, 0, 0], sizes = [18, 16, 128], strides = [1, 1, 1]} : vector<18x16x256xf32> to vector<18x16x128xf32>
    %50 = vector.extract_strided_slice %48 {offsets = [1, 0, 128], sizes = [16, 16, 128], strides = [1, 1, 1]} : vector<18x16x256xf32> to vector<16x16x128xf32>
    %c16_i32 = arith.constant 16 : i32
    %51 = arith.muli %arg1, %c16_i32 : i32
    %c1_i32 = arith.constant 1 : i32
    %52 = arith.subi %51, %c1_i32 : i32
    %53 = tpu.iota {dimensions = array<i32: 0>} : vector<18x16x128xi32>
    %54 = vector.broadcast %52 : i32 to vector<18x16x128xi32>
    %55 = arith.addi %54, %53 : vector<18x16x128xi32>
    %c0_i32 = arith.constant 0 : i32
    %56 = vector.broadcast %c0_i32 : i32 to vector<18x16x128xi32>
    %57 = arith.cmpi sge, %55, %56 : vector<18x16x128xi32>
    %c16_i32_30 = arith.constant 16 : i32
    %58 = vector.broadcast %c16_i32_30 : i32 to vector<18x16x128xi32>
    %59 = arith.cmpi slt, %55, %58 : vector<18x16x128xi32>
    %60 = arith.andi %57, %59 : vector<18x16x128xi1>
    %61 = arith.subf %7, %49 : vector<18x16x128xf32>
    %cst_31 = arith.constant 0.000000e+00 : f32
    %62 = vector.broadcast %cst_31 : f32 to vector<18x16x128xf32>
    %63 = arith.select %60, %61, %62 : vector<18x16x128xi1>, vector<18x16x128xf32>
    %cst_32 = arith.constant 0.000000e+00 : f32
    %64 = vector.broadcast %cst_32 : f32 to vector<18x1x128xf32>
    %65 = vector.extract_strided_slice %63 {offsets = [0, 0, 0], sizes = [18, 15, 128], strides = [1, 1, 1]} : vector<18x16x128xf32> to vector<18x15x128xf32>
    %66 = tpu.concatenate %64, %65 in 1 : vector<18x1x128xf32>, vector<18x15x128xf32> -> vector<18x16x128xf32>
    %67 = vector.extract_strided_slice %63 {offsets = [0, 1, 0], sizes = [18, 15, 128], strides = [1, 1, 1]} : vector<18x16x128xf32> to vector<18x15x128xf32>
    %68 = tpu.concatenate %67, %64 in 1 : vector<18x15x128xf32>, vector<18x1x128xf32> -> vector<18x16x128xf32>
    %69 = tpu.concatenate %66, %63, %68 in 2 : vector<18x16x128xf32>, vector<18x16x128xf32>, vector<18x16x128xf32> -> vector<18x16x384xf32>
    %70 = arith.truncf %69 : vector<18x16x384xf32> to vector<18x16x384xbf16>
    %cst_33 = arith.constant 0.000000e+00 : f32
    %71 = vector.broadcast %cst_33 : f32 to vector<256x128xf32>
    %c0_34 = arith.constant 0 : index
    %c0_35 = arith.constant 0 : index
    %72 = vector.load %arg9[%c0_34, %c0_35] : memref<1x128xf32, #tpu.memory_space<vmem>>, vector<1x128xf32>
    %73 = vector.broadcast %72 : vector<1x128xf32> to vector<256x128xf32>
    %74 = arith.addf %71, %73 : vector<256x128xf32>
    %75 = vector.extract_strided_slice %70 {offsets = [0, 0, 0], sizes = [16, 16, 384], strides = [1, 1, 1]} : vector<18x16x384xbf16> to vector<16x16x384xbf16>
    %76 = vector.shape_cast %75 : vector<16x16x384xbf16> to vector<256x384xbf16>
    %c0_36 = arith.constant 0 : index
    %c0_37 = arith.constant 0 : index
    %c0_38 = arith.constant 0 : index
    %77 = vector.load %arg8[%c0_36, %c0_37, %c0_38] : memref<3x384x128xbf16, #tpu.memory_space<vmem>>, vector<1x384x128xbf16>
    %78 = vector.shape_cast %77 : vector<1x384x128xbf16> to vector<384x128xbf16>
    %cst_39 = arith.constant dense<0.000000e+00> : vector<256x128xf32>
    %79 = tpu.matmul %76, %78, %cst_39 {dimension_numbers = #tpu.dot_dimension_numbers<[1], [0], [0], [1], [0, 0, 1, 1], [], []>} : vector<256x384xbf16>, vector<384x128xbf16>, vector<256x128xf32> -> vector<256x128xf32>
    %80 = arith.addf %74, %79 : vector<256x128xf32>
    %81 = vector.extract_strided_slice %70 {offsets = [1, 0, 0], sizes = [16, 16, 384], strides = [1, 1, 1]} : vector<18x16x384xbf16> to vector<16x16x384xbf16>
    %82 = vector.shape_cast %81 : vector<16x16x384xbf16> to vector<256x384xbf16>
    %c1 = arith.constant 1 : index
    %c0_40 = arith.constant 0 : index
    %c0_41 = arith.constant 0 : index
    %83 = vector.load %arg8[%c1, %c0_40, %c0_41] : memref<3x384x128xbf16, #tpu.memory_space<vmem>>, vector<1x384x128xbf16>
    %84 = vector.shape_cast %83 : vector<1x384x128xbf16> to vector<384x128xbf16>
    %cst_42 = arith.constant dense<0.000000e+00> : vector<256x128xf32>
    %85 = tpu.matmul %82, %84, %cst_42 {dimension_numbers = #tpu.dot_dimension_numbers<[1], [0], [0], [1], [0, 0, 1, 1], [], []>} : vector<256x384xbf16>, vector<384x128xbf16>, vector<256x128xf32> -> vector<256x128xf32>
    %86 = arith.addf %80, %85 : vector<256x128xf32>
    %87 = vector.extract_strided_slice %70 {offsets = [2, 0, 0], sizes = [16, 16, 384], strides = [1, 1, 1]} : vector<18x16x384xbf16> to vector<16x16x384xbf16>
    %88 = vector.shape_cast %87 : vector<16x16x384xbf16> to vector<256x384xbf16>
    %c2 = arith.constant 2 : index
    %c0_43 = arith.constant 0 : index
    %c0_44 = arith.constant 0 : index
    %89 = vector.load %arg8[%c2, %c0_43, %c0_44] : memref<3x384x128xbf16, #tpu.memory_space<vmem>>, vector<1x384x128xbf16>
    %90 = vector.shape_cast %89 : vector<1x384x128xbf16> to vector<384x128xbf16>
    %cst_45 = arith.constant dense<0.000000e+00> : vector<256x128xf32>
    %91 = tpu.matmul %88, %90, %cst_45 {dimension_numbers = #tpu.dot_dimension_numbers<[1], [0], [0], [1], [0, 0, 1, 1], [], []>} : vector<256x384xbf16>, vector<384x128xbf16>, vector<256x128xf32> -> vector<256x128xf32>
    %92 = arith.addf %86, %91 : vector<256x128xf32>
    %93 = arith.truncf %92 : vector<256x128xf32> to vector<256x128xbf16>
    %94 = vector.shape_cast %50 : vector<16x16x128xf32> to vector<256x128xf32>
    %95 = arith.truncf %94 : vector<256x128xf32> to vector<256x128xbf16>
    %96 = tpu.concatenate %93, %95 in 1 : vector<256x128xbf16>, vector<256x128xbf16> -> vector<256x256xbf16>
    %c0_46 = arith.constant 0 : index
    %c0_47 = arith.constant 0 : index
    %97 = vector.load %arg10[%c0_46, %c0_47] : memref<256x128xbf16, #tpu.memory_space<vmem>>, vector<256x128xbf16>
    %cst_48 = arith.constant dense<0.000000e+00> : vector<256x128xf32>
    %98 = tpu.matmul %96, %97, %cst_48 {dimension_numbers = #tpu.dot_dimension_numbers<[1], [0], [0], [1], [0, 0, 1, 1], [], []>} : vector<256x256xbf16>, vector<256x128xbf16>, vector<256x128xf32> -> vector<256x128xf32>
    %99 = vector.shape_cast %98 : vector<256x128xf32> to vector<16x16x128xf32>
    %100 = arith.truncf %99 : vector<16x16x128xf32> to vector<16x16x128xbf16>
    %c0_49 = arith.constant 0 : index
    %c0_50 = arith.constant 0 : index
    %c0_51 = arith.constant 0 : index
    %c0_52 = arith.constant 0 : index
    %101 = vector.load %arg11[%c0_49, %c0_50, %c0_51, %c0_52] : memref<1x16x16x128xbf16, #tpu.memory_space<vmem>>, vector<1x16x16x128xbf16>
    %102 = vector.shape_cast %101 : vector<1x16x16x128xbf16> to vector<16x16x128xbf16>
    %103 = vector.shape_cast %100 : vector<16x16x128xbf16> to vector<1x16x16x128xbf16>
    tpu.vector_store %arg11[%c0_49, %c0_50, %c0_51, %c0_52], %103 {strides = array<i32>} : memref<1x16x16x128xbf16, #tpu.memory_space<vmem>>, vector<1x16x16x128xbf16>,
    %cst_53 = arith.constant dense<0.000000e+00> : vector<16x128xf32>
    %104 = vector.multi_reduction <add>, %99, %cst_53 [0] : vector<16x16x128xf32> to vector<16x128xf32>
    %cst_54 = arith.constant dense<0.000000e+00> : vector<128xf32>
    %105 = vector.multi_reduction <add>, %104, %cst_54 [0] : vector<16x128xf32> to vector<128xf32>
    %106 = vector.shape_cast %105 : vector<128xf32> to vector<1x128xf32>
    %cst_55 = arith.constant 1.250000e-01 : f32
    %107 = vector.broadcast %cst_55 : f32 to vector<1x128xf32>
    %108 = arith.mulf %106, %107 : vector<1x128xf32>
    %109 = vector.shape_cast %108 : vector<1x128xf32> to vector<1x128xf32>
    %110 = vector.broadcast %109 : vector<1x128xf32> to vector<8x128xf32>
    %c0_56 = arith.constant 0 : index
    %c0_57 = arith.constant 0 : index
    %c0_58 = arith.constant 0 : index
    %c0_59 = arith.constant 0 : index
    %111 = vector.load %arg12[%c0_56, %c0_57, %c0_58, %c0_59] : memref<1x1x8x128xf32, #tpu.memory_space<vmem>>, vector<1x1x8x128xf32>
    %112 = vector.shape_cast %111 : vector<1x1x8x128xf32> to vector<8x128xf32>
    %113 = vector.shape_cast %110 : vector<8x128xf32> to vector<1x1x8x128xf32>
    tpu.vector_store %arg12[%c0_56, %c0_57, %c0_58, %c0_59], %113 {strides = array<i32>} : memref<1x1x8x128xf32, #tpu.memory_space<vmem>>, vector<1x1x8x128xf32>,
    return
  }
  func.func @transform_0(%arg0: i32, %arg1: i32) -> (i32, i32, i32, i32) {
    %c0_i32 = arith.constant 0 : i32
    %c0_i32_0 = arith.constant 0 : i32
    %c0_i32_1 = arith.constant 0 : i32
    return %arg0, %arg1, %c0_i32, %c0_i32_0 : i32, i32, i32, i32
  }
  func.func @transform_1(%arg0: i32, %arg1: i32) -> (i32, i32, i32, i32) {
    %c16_i32 = arith.constant 16 : i32
    %0 = arith.muli %arg1, %c16_i32 : i32
    %c1_i32 = arith.constant 1 : i32
    %1 = arith.subi %0, %c1_i32 : i32
    %c0_i32 = arith.constant 0 : i32
    %2 = arith.maxsi %1, %c0_i32 : i32
    %c0_i32_0 = arith.constant 0 : i32
    %c0_i32_1 = arith.constant 0 : i32
    %c0_i32_2 = arith.constant 0 : i32
    return %arg0, %2, %c0_i32_0, %c0_i32_1 : i32, i32, i32, i32
  }
  func.func @transform_2(%arg0: i32, %arg1: i32) -> (i32, i32, i32, i32) {
    %c16_i32 = arith.constant 16 : i32
    %0 = arith.muli %arg1, %c16_i32 : i32
    %c16_i32_0 = arith.constant 16 : i32
    %1 = arith.addi %0, %c16_i32_0 : i32
    %c15_i32 = arith.constant 15 : i32
    %2 = arith.minsi %1, %c15_i32 : i32
    %c0_i32 = arith.constant 0 : i32
    %c0_i32_1 = arith.constant 0 : i32
    %c0_i32_2 = arith.constant 0 : i32
    return %arg0, %2, %c0_i32, %c0_i32_1 : i32, i32, i32, i32
  }
  func.func @transform_3(%arg0: i32, %arg1: i32) -> (i32, i32, i32, i32) {
    %c0_i32 = arith.constant 0 : i32
    %c0_i32_0 = arith.constant 0 : i32
    %c0_i32_1 = arith.constant 0 : i32
    return %arg0, %arg1, %c0_i32, %c0_i32_0 : i32, i32, i32, i32
  }
  func.func @transform_4(%arg0: i32, %arg1: i32) -> (i32, i32, i32, i32) {
    %c8_i32 = arith.constant 8 : i32
    %0 = arith.muli %arg1, %c8_i32 : i32
    %c1_i32 = arith.constant 1 : i32
    %1 = arith.subi %0, %c1_i32 : i32
    %c0_i32 = arith.constant 0 : i32
    %2 = arith.maxsi %1, %c0_i32 : i32
    %c0_i32_0 = arith.constant 0 : i32
    %c0_i32_1 = arith.constant 0 : i32
    %c0_i32_2 = arith.constant 0 : i32
    return %arg0, %2, %c0_i32_0, %c0_i32_1 : i32, i32, i32, i32
  }
  func.func @transform_5(%arg0: i32, %arg1: i32) -> (i32, i32, i32, i32) {
    %c8_i32 = arith.constant 8 : i32
    %0 = arith.muli %arg1, %c8_i32 : i32
    %c8_i32_0 = arith.constant 8 : i32
    %1 = arith.addi %0, %c8_i32_0 : i32
    %c7_i32 = arith.constant 7 : i32
    %2 = arith.minsi %1, %c7_i32 : i32
    %c0_i32 = arith.constant 0 : i32
    %c0_i32_1 = arith.constant 0 : i32
    %c0_i32_2 = arith.constant 0 : i32
    return %arg0, %2, %c0_i32, %c0_i32_1 : i32, i32, i32, i32
  }
  func.func @transform_6(%arg0: i32, %arg1: i32) -> (i32, i32, i32) {
    %c0_i32 = arith.constant 0 : i32
    %c0_i32_0 = arith.constant 0 : i32
    %c0_i32_1 = arith.constant 0 : i32
    %c0_i32_2 = arith.constant 0 : i32
    return %c0_i32, %c0_i32_0, %c0_i32_1 : i32, i32, i32
  }
  func.func @transform_7(%arg0: i32, %arg1: i32) -> (i32, i32) {
    %c0_i32 = arith.constant 0 : i32
    %c0_i32_0 = arith.constant 0 : i32
    %c0_i32_1 = arith.constant 0 : i32
    return %c0_i32, %c0_i32_0 : i32, i32
  }
  func.func @transform_8(%arg0: i32, %arg1: i32) -> (i32, i32) {
    %c0_i32 = arith.constant 0 : i32
    %c0_i32_0 = arith.constant 0 : i32
    %c0_i32_1 = arith.constant 0 : i32
    return %c0_i32, %c0_i32_0 : i32, i32
  }
  func.func @transform_9(%arg0: i32, %arg1: i32) -> (i32, i32, i32, i32) {
    %c0_i32 = arith.constant 0 : i32
    %c0_i32_0 = arith.constant 0 : i32
    %c0_i32_1 = arith.constant 0 : i32
    return %arg0, %arg1, %c0_i32, %c0_i32_0 : i32, i32, i32, i32
  }
  func.func @transform_10(%arg0: i32, %arg1: i32) -> (i32, i32, i32, i32) {
    %c0_i32 = arith.constant 0 : i32
    %c0_i32_0 = arith.constant 0 : i32
    %c0_i32_1 = arith.constant 0 : i32
    return %arg0, %arg1, %c0_i32, %c0_i32_0 : i32, i32, i32, i32
  }
}

</mosaic_0001>

<bundles_post_ra>
// kernel: du2_forward.3
= control target key start
LH: loop header
LB: loop body
LE: loop exit
PB: predicated region body
PF: predicated region fallthrough
CT: control target
= control target key end

     0   :  { %s1290_s24 = smov 0   ;;  %s1292_s25 = smov 0   ;;  %s1449_s0 = inlined_call_operand.vmem [shape: bf16[2,8,8,128], index: 0, kind: input, shape index: {}]   ;;  %s1450_s1 = inlined_call_operand.vmem [shape: bf16[2,8,8,128], index: 1, kind: input, shape index: {}]   ;;  %s1451_s2 = inlined_call_operand.vmem [shape: bf16[128,256], index: 2, kind: input, shape index: {}]   ;;  %s1452_s3 = inlined_call_operand.vmem [shape: bf16[128,128], index: 3, kind: input, shape index: {}]   ;;  %s1453_s4 = inlined_call_operand.vmem [shape: f32[1,128], index: 4, kind: input, shape index: {}]   ;;  %s1454_s5 = inlined_call_operand.vmem [shape: bf16[2,8,8,128], index: 5, kind: output, shape index: {0}]   ;;  %s1455_s6 = inlined_call_operand.vmem [shape: bf16[2,8,8,128], index: 6, kind: output, shape index: {1}]   ;;  %s1456_s7 = inlined_call_operand.vmem [shape: f32[2,1,8,128], index: 7, kind: output, shape index: {2}]  }
   0x1   :  { %s1294_s26 = smov 0  }
   0x2 LB: > { %s30_s27 = sadd.s32 1, %s1243_s25  ;;  %p1029_p0 = scmp.ge.s32.totalorder %s1247_s26, 1  ;;  %s1247_s26 = sphi %s1294_s26, %s18_s26   ;;  %s1243_s25 = sphi %s1292_s25, %s1458_s25   ;;  %s1239_s24 = sphi %s1290_s24, %s1457_s24  }
   0x3   : > { %p32_p1 = scmp.ge.s32.totalorder %s30_s27, 2  ;;  %p284_p2 = scmp.lt.s32.totalorder %s1247_s26, 3 }
   0x5   : > { %s1460_s27 = smov (%p32_p1, %s30_s27), 0  ;;  %p285_p3 = pnand %p1029_p0, %p284_p2 }
   0x6   : > { %v1185_v0 = vld [vmem:[%s1451_s2 + $0x4] ss:$8 sps:$4 sm:$0xff] (!%p285_p3)   ;;  %v1249_v2 = vmov (!%p285_p3), 0   ;;  %v1188_v3 = vld [vmem:[%s1451_s2] ss:$8 sps:$4 sm:$0xff] (!%p285_p3)   ;;  %p350_p4 = scmp.lt.s32.totalorder (!%p285_p3), %s1239_s24, 1 }
   0x7   : > { %288 = sbr.rel (%p285_p3) target bundleno = 299 (0x12b), region = 40  ;;  %v1187_v1 = vld [vmem:[%s1452_s3] sm:$0xff] (!%p285_p3)   ;;  %565 = vmatprep.mubr.bf16.mxu0 (!%p285_p3), %v1249_v2  ;;  %533 = vmatprep.subr.bf16.mxu0 (!%p285_p3), %v1185_v0  ;;  %v1189_v4 = vld [vmem:[%s1451_s2 + $0x14] ss:$8 sps:$4 sm:$0xff] (!%p285_p3)   ;;  %v1191_v5 = vld [vmem:[%s1452_s3 + $0x8] sm:$0xff] (!%p285_p3)  }
   0x8   : > { %1136 = vmatprep.subr.bf16.mxu1 (!%p285_p3), %v1187_v1  ;;  %534 = vmatpush1.bf16.msra.mxu0 (!%p285_p3), %v1188_v3  ;;  %v1192_v6 = vld [vmem:[%s1451_s2 + $0x10] ss:$8 sps:$4 sm:$0xff] (!%p285_p3)   ;;  %v1193_v7 = vld [vmem:[%s1451_s2 + $0x24] ss:$8 sps:$4 sm:$0xff] (!%p285_p3)   ;;  %v1196_v9 = vld [vmem:[%s1451_s2 + $0x20] ss:$8 sps:$4 sm:$0xff] (!%p285_p3)  }
   0x9   : > { %1137 = vmatpush3.bf16.msra.mxu1 (!%p285_p3), %v1187_v1  ;;  %535 = vmatprep.subr.bf16.mxu0 (!%p285_p3), %v1189_v4  ;;  %v1195_v8 = vld [vmem:[%s1452_s3 + $0x10] sm:$0xff] (!%p285_p3)   ;;  %v1199_v11 = vld [vmem:[%s1452_s3 + $0x18] sm:$0xff] (!%p285_p3)   ;;  %v1201_v13 = vld [vmem:[%s1451_s2 + $0x44] ss:$8 sps:$4 sm:$0xff] (!%p285_p3)  }
   0xa   : > { %1138 = vmatprep.subr.bf16.mxu1 (!%p285_p3), %v1191_v5  ;;  %v1197_v10 = vld [vmem:[%s1451_s2 + $0x34] ss:$8 sps:$4 sm:$0xff] (!%p285_p3)   ;;  %v1200_v12 = vld [vmem:[%s1451_s2 + $0x30] ss:$8 sps:$4 sm:$0xff] (!%p285_p3)   ;;  %v1203_v14 = vld [vmem:[%s1452_s3 + $0x20] sm:$0xff] (!%p285_p3)  }
   0xb   : > { %v1204_v15 = vld [vmem:[%s1451_s2 + $0x40] ss:$8 sps:$4 sm:$0xff] (!%p285_p3)   ;;  %v1205_v16 = vld [vmem:[%s1451_s2 + $0x54] ss:$8 sps:$4 sm:$0xff] (!%p285_p3)   ;;  %v1208_v18 = vld [vmem:[%s1451_s2 + $0x50] ss:$8 sps:$4 sm:$0xff] (!%p285_p3)  }
   0xc   : > { %536 = vmatpush1.bf16.msra.mxu0 (!%p285_p3), %v1192_v6  ;;  %v1207_v17 = vld [vmem:[%s1452_s3 + $0x28] sm:$0xff] (!%p285_p3)   ;;  %v1211_v21 = vld [vmem:[%s1452_s3 + $0x30] sm:$0xff] (!%p285_p3)   ;;  %v1215_v24 = vld [vmem:[%s1452_s3 + $0x38] sm:$0xff] (!%p285_p3)  }
   0xd   : > { %1139 = vmatpush3.bf16.msra.mxu1 (!%p285_p3), %v1191_v5  ;;  %537 = vmatprep.subr.bf16.mxu0 (!%p285_p3), %v1193_v7  ;;  %v1209_v20 = vld [vmem:[%s1451_s2 + $0x64] ss:$8 sps:$4 sm:$0xff] (!%p285_p3)   ;;  %v1212_v22 = vld [vmem:[%s1451_s2 + $0x60] ss:$8 sps:$4 sm:$0xff] (!%p285_p3)   ;;  %v1213_v23 = vld [vmem:[%s1451_s2 + $0x74] ss:$8 sps:$4 sm:$0xff] (!%p285_p3)  }
   0xe   : > { %1140 = vmatprep.subr.bf16.mxu1 %v1195_v8  ;;  %s1462_s24 = smov (!%p350_p4, %s1239_s24), 1  ;;  %v1216_v25 = vld [vmem:[%s1451_s2 + $0x70] ss:$8 sps:$4 sm:$0xff]   ;;  %v1071_v40 = vld [vmem:[%s1453_s4] ss:$0 sm:$0xff] }
   0xf   : > { %s1358_s14 = sshll.u32 %s1462_s24, 5 }
  0x10   : > { %538 = vmatpush1.bf16.msra.mxu0 %v1196_v9  ;;  %s1370_s21 = scalar_lea.vmem %s1450_s1, %s1358_s14  ;;  %s1382_s9 = scalar_lea.vmem %s1449_s0, %s1358_s14 }
  0x11   : > { %1141 = vmatpush3.bf16.msra.mxu1 %v1195_v8  ;;  %539 = vmatprep.subr.bf16.mxu0 %v1197_v10  ;;  %v1217_v19 = vld [vmem:[%s1370_s21] sm:$0xff]   ;;  %v1219_v27 = vld [vmem:[%s1370_s21 + $0x8] sm:$0xff]   ;;  %v1221_v28 = vld [vmem:[%s1370_s21 + $0x10] sm:$0xff]   ;;  %s1427_s11 = scalar_lea.vmem %s1455_s6, %s1358_s14 }
  0x12   : > { %1142 = vmatprep.subr.bf16.mxu1 %v1199_v11  ;;  %1152 = vmatprep.mubr.bf16.mxu1 %v1217_v19  ;;  %v1218_v26 = vld [vmem:[%s1382_s9] sm:$0xff]   ;;  %v1220_v29 = vld [vmem:[%s1382_s9 + $0x8] sm:$0xff]   ;;  %v1223_v30 = vld [vmem:[%s1370_s21 + $0x18] sm:$0xff]   ;;  %s1417_s21 = scalar_lea.vmem %s1454_s5, %s1358_s14  ;;  %s1038_s14 = sshll.u32 %s1462_s24, 3 }
  0x13   : > { %v1222_v31 = vld [vmem:[%s1382_s9 + $0x10] sm:$0xff]   ;;  %v1224_v32 = vld [vmem:[%s1382_s9 + $0x18] sm:$0xff]   ;;  %s395_s15 = scalar_lea.vmem %s1456_s7, %s1038_s14 }
  0x14   : > { %540 = vmatpush1.bf16.msra.mxu0 %v1200_v12 }
  0x15   : > { %1143 = vmatpush3.bf16.msra.mxu1 %v1199_v11  ;;  %541 = vmatprep.subr.bf16.mxu0 %v1201_v13 }
  0x16   : > { %1144 = vmatprep.subr.bf16.mxu1 %v1203_v14 }
  0x18   : > { %542 = vmatpush1.bf16.msra.mxu0 %v1204_v15 }
  0x19   : > { %1145 = vmatpush3.bf16.msra.mxu1 %v1203_v14  ;;  %543 = vmatprep.subr.bf16.mxu0 %v1205_v16 }
  0x1a   : > { %1146 = vmatprep.subr.bf16.mxu1 %v1207_v17 }
  0x1c   : > { %544 = vmatpush1.bf16.msra.mxu0 %v1208_v18 }
  0x1d   : > { %1147 = vmatpush3.bf16.msra.mxu1 %v1207_v17  ;;  %545 = vmatprep.subr.bf16.mxu0 %v1209_v20 }
  0x1e   : > { %1148 = vmatprep.subr.bf16.mxu1 %v1211_v21 }
  0x20   : > { %546 = vmatpush1.bf16.msra.mxu0 %v1212_v22 }
  0x21   : > { %1149 = vmatpush3.bf16.msra.mxu1 %v1211_v21  ;;  %547 = vmatprep.subr.bf16.mxu0 %v1213_v23 }
  0x22   : > { %1150 = vmatprep.subr.bf16.mxu1 %v1215_v24 }
  0x24   : > { %548 = vmatpush1.bf16.msra.mxu0 %v1216_v25 }
  0x25   : > { %1151 = vmatpush3.bf16.msra.mxu1 %v1215_v24 }
  0x27   : > { %566 = vmatmul.mubr.bf16.vlgmr.msra.gmra.mrb[0].mxu0 %v1218_v26 }
  0x28   : > { %1153 = vmatmul.mubr.bf16.vlgmr.msra.gmra.mrb[0].mxu1 %v1219_v27  ;;  %575 = vmatprep.mubr.bf16.mxu0 %v1249_v2 }
  0x29   : > { %1156 = vmatprep.mubr.bf16.mxu1 %v1221_v28 }
  0x2f   : > { %576 = vmatmul.mubr.bf16.gmra.mrb[4].mxu0 %v1220_v29 }
  0x30   : > { %1157 = vmatmul.mubr.bf16.gmra.mrb[4].mxu1 %v1223_v30  ;;  %585 = vmatprep.mubr.bf16.mxu0 %v1249_v2 }
  0x37   : > { %586 = vmatmul.mubr.bf16.gmra.mrb[8].mxu0 %v1222_v31 }
  0x38   : > { %595 = vmatprep.mubr.bf16.mxu0 %v1249_v2 }
  0x3f   : > { %596 = vmatmul.mubr.bf16.gmra.mrb[12].mxu0 %v1224_v32 }
  0xfa   : > { %v567_v33 = vpop.f32.mrb[0].mxu0 }
  0xfb   : > { %v1154_v34 = vpop.f32.mrb[0].mxu1  ;;  %v569_v35 = vpop.f32.mrb[1].mxu0 }
  0xfc   : > { %v728_v36 = vpop.f32.mrb[1].mxu1  ;;  %v571_v38 = vpop.f32.mrb[2].mxu0 }
  0xfd   : > { %v759_v37 = vadd.f32 %v728_v36, %v569_v35  ;;  %v1155_v39 = vpop.f32.mrb[2].mxu1  ;;  %v1081_v41 = vpack.c.bf16 %v571_v38, %v567_v33  ;;  %v573_v42 = vpop.f32.mrb[3].mxu0 }
  0xfe   : > { %v731_v43 = vpop.f32.mrb[3].mxu1 }
  0xff   : > { %v760_v44 = vadd.f32 %v731_v43, %v573_v42  ;;  %1082 = vst [vmem:[%s1417_s21] sm:$0xff] %v1081_v41   ;;  %v774_v45 = vadd.f32 %v1071_v40, %v759_v37 }
 0x101   : > { %v775_v46 = vadd.f32 %v1071_v40, %v760_v44 }
 0x102   : > { %v577_v49 = vpop.f32.mrb[4].mxu0 }
 0x103   : > { %v1101_v47 = vpack.c.bf16 %v775_v46, %v774_v45  ;;  %v814_v48 = vadd.f32 %v775_v46, %v774_v45  ;;  %v1158_v50 = vpop.f32.mrb[4].mxu1  ;;  %v579_v51 = vpop.f32.mrb[5].mxu0 }
 0x104   : > { %v744_v52 = vpop.f32.mrb[5].mxu1  ;;  %v761_v53 = vadd.f32 %v1154_v34, %v579_v51  ;;  %v581_v54 = vpop.f32.mrb[6].mxu0 }
 0x105   : > { %1102 = vst [vmem:[%s1427_s11] sm:$0xff] %v1101_v47   ;;  %v1159_v55 = vpop.f32.mrb[6].mxu1  ;;  %v1086_v56 = vpack.c.bf16 %v581_v54, %v577_v49  ;;  %v583_v57 = vpop.f32.mrb[7].mxu0 }
 0x106   : > { %v747_v58 = vpop.f32.mrb[7].mxu1  ;;  %v776_v59 = vadd.f32 %v1071_v40, %v761_v53  ;;  %v762_v60 = vadd.f32 %v1155_v39, %v583_v57 }
 0x107   : > { %1118 = vst [vmem:[%s1417_s21 + $0x8] sm:$0xff] %v1086_v56  }
 0x108   : > { %v815_v61 = vadd.f32 %v814_v48, %v776_v59  ;;  %v777_v62 = vadd.f32 %v1071_v40, %v762_v60 }
 0x10a   : > { %v1106_v63 = vpack.c.bf16 %v777_v62, %v776_v59  ;;  %v816_v0 = vadd.f32 %v815_v61, %v777_v62  ;;  %v587_v1 = vpop.f32.mrb[8].mxu0 }
 0x10b   : > { %v589_v2 = vpop.f32.mrb[9].mxu0 }
 0x10c   : > { %1121 = vst [vmem:[%s1427_s11 + $0x8] sm:$0xff] %v1106_v63   ;;  %v763_v3 = vadd.f32 %v744_v52, %v589_v2  ;;  %v591_v4 = vpop.f32.mrb[10].mxu0 }
 0x10d   : > { %v1091_v5 = vpack.c.bf16 %v591_v4, %v587_v1  ;;  %v593_v6 = vpop.f32.mrb[11].mxu0 }
 0x10e   : > { %v778_v7 = vadd.f32 %v1071_v40, %v763_v3  ;;  %v764_v8 = vadd.f32 %v747_v58, %v593_v6 }
 0x10f   : > { %1119 = vst [vmem:[%s1417_s21 + $0x10] sm:$0xff] %v1091_v5  }
 0x110   : > { %v817_v9 = vadd.f32 %v816_v0, %v778_v7  ;;  %v779_v10 = vadd.f32 %v1071_v40, %v764_v8 }
 0x112   : > { %v1111_v11 = vpack.c.bf16 %v779_v10, %v778_v7  ;;  %v818_v12 = vadd.f32 %v817_v9, %v779_v10  ;;  %v597_v13 = vpop.f32.mrb[12].mxu0 }
 0x113   : > { %v599_v14 = vpop.f32.mrb[13].mxu0 }
 0x114   : > { %1122 = vst [vmem:[%s1427_s11 + $0x10] sm:$0xff] %v1111_v11   ;;  %v765_v15 = vadd.f32 %v1158_v50, %v599_v14  ;;  %v601_v16 = vpop.f32.mrb[14].mxu0 }
 0x115   : > { %v1096_v17 = vpack.c.bf16 %v601_v16, %v597_v13  ;;  %v603_v18 = vpop.f32.mrb[15].mxu0 }
 0x116   : > { %v780_v19 = vadd.f32 %v1071_v40, %v765_v15  ;;  %v766_v20 = vadd.f32 %v1159_v55, %v603_v18 }
 0x117   : > { %1120 = vst [vmem:[%s1417_s21 + $0x18] sm:$0xff] %v1096_v17  }
 0x118   : > { %v819_v21 = vadd.f32 %v818_v12, %v780_v19  ;;  %v781_v22 = vadd.f32 %v1071_v40, %v766_v20 }
 0x11a   : > { %v1116_v23 = vpack.c.bf16 %v781_v22, %v780_v19  ;;  %v820_v24 = vadd.f32 %v819_v21, %v781_v22 }
 0x11c   : > { %1123 = vst [vmem:[%s1427_s11 + $0x18] sm:$0xff] %v1116_v23   ;;  %v821_v25 = vrot.slane %v820_v24, 4 }
 0x11e   : > { %v822_v26 = vadd.f32 %v821_v25, %v820_v24 }
 0x120   : > { %v823_v27 = vrot.slane %v822_v26, 2 }
 0x122   : > { %v824_v28 = vadd.f32 %v823_v27, %v822_v26 }
 0x124   : > { %v825_v29 = vrot.slane %v824_v28, 1 }
 0x126   : > { %v826_v30 = vadd.f32 %v825_v29, %v824_v28 }
 0x128   : > { %v827_v31 = vmul.f32 0.125, %v826_v30 }
 0x12a   : > { %828 = vst [vmem:[%s395_s15] sm:$0xff] %v827_v31 }
 0x12b PF: > { %s18_s26 = sadd.s32 1, %s1247_s26   ;;  %s1457_s24 = smov %s1243_s25 }
 0x12c   : > { %p15_p5 = scmp.ge.s32.totalorder %s18_s26, 4   ;;  %s1458_s25 = smov %s1460_s27 }
 0x12e   :  { %17 = sbr.rel (!%p15_p5) target bundleno = 2 (0x2), region = 97 }

// kernel: du2_forward.5
= control target key start
LH: loop header
LB: loop body
LE: loop exit
PB: predicated region body
PF: predicated region fallthrough
CT: control target
= control target key end

     0   :  { %s868_s12 = smov 0   ;;  %s870_s13 = smov 0   ;;  %s1011_s0 = inlined_call_operand.vmem [shape: bf16[2,16,16,128], index: 0, kind: input, shape index: {}]   ;;  %s1012_s1 = inlined_call_operand.vmem [shape: bf16[2,16,16,128], index: 1, kind: input, shape index: {}]   ;;  %s1013_s2 = inlined_call_operand.vmem [shape: f32[2,1,1,128], index: 2, kind: input, shape index: {}]   ;;  %s1014_s3 = inlined_call_operand.vmem [shape: f32[2,16,16,128], index: 3, kind: output, shape index: {}]  }
   0x1   :  { %s872_s14 = smov 0  }
   0x2 LB: > { %s25_s15 = sadd.s32 1, %s842_s13  ;;  %p629_p0 = scmp.ge.s32.totalorder %s846_s14, 1  ;;  %s846_s14 = sphi %s872_s14, %s13_s14   ;;  %s842_s13 = sphi %s870_s13, %s1016_s13   ;;  %s838_s12 = sphi %s868_s12, %s1015_s12  }
   0x3   : > { %p27_p1 = scmp.ge.s32.totalorder %s25_s15, 2  ;;  %p185_p2 = scmp.lt.s32.totalorder %s846_s14, 3 }
   0x5   : > { %s1018_s15 = smov (%p27_p1, %s25_s15), 0  ;;  %p186_p3 = pnand %p629_p0, %p185_p2 }
   0x6   : > { %p233_p4 = scmp.lt.s32.totalorder (!%p186_p3), %s838_s12, 1 }
   0x7   : > { %189 = sbr.rel (%p186_p3) target bundleno = 55 (0x37), region = 32 }
   0xe   : > { %s1020_s12 = smov (!%p233_p4, %s838_s12), 1 }
   0xf   : > { %s639_s16 = sshll.u32 %s1020_s12, 7  ;;  %s256_s19 = scalar_lea.vmem %s1013_s2, %s1020_s12 }
  0x10   : > { %s892_s22 = scalar_lea.vmem %s1011_s0, %s639_s16  ;;  %s897_s25 = scalar_lea.vmem %s1012_s1, %s639_s16  ;;  %v899_v0 = vld [vmem:[%s256_s19] ss:$0 sm:$0xff] }
  0x11   : > { %v643_v1 = vld [vmem:[%s892_s22] sm:$0xff]   ;;  %v770_v3 = vld [vmem:[%s892_s22 + $0x8] sm:$0xff]   ;;  %s641_s26 = sshll.u32 %s1020_s12, 8  ;;  %v771_v9 = vld [vmem:[%s892_s22 + $0x10] sm:$0xff]  }
  0x12   : > { %v707_v2 = vld [vmem:[%s897_s25] sm:$0xff]   ;;  %v644_v4 = vunpack.c.l.bf16 %v643_v1  ;;  %v645_v6 = vunpack.c.h.bf16 %v643_v1  ;;  %v785_v8 = vld [vmem:[%s897_s25 + $0x8] sm:$0xff]   ;;  %v786_v10 = vld [vmem:[%s897_s25 + $0x10] sm:$0xff]   ;;  %v648_v11 = vunpack.c.l.bf16 %v770_v3  ;;  %v649_v13 = vunpack.c.h.bf16 %v770_v3  ;;  %s914_s29 = scalar_lea.vmem %s1014_s3, %s641_s26 }
  0x13   : > { %v708_v5 = vunpack.c.l.bf16 %v707_v2  ;;  %v709_v7 = vunpack.c.h.bf16 %v707_v2  ;;  %v712_v12 = vunpack.c.l.bf16 %v785_v8  ;;  %v713_v14 = vunpack.c.h.bf16 %v785_v8  ;;  %v772_v15 = vld [vmem:[%s892_s22 + $0x18] sm:$0xff]   ;;  %v773_v29 = vld [vmem:[%s892_s22 + $0x20] sm:$0xff]   ;;  %v774_v35 = vld [vmem:[%s892_s22 + $0x28] sm:$0xff]  }
  0x14   : > { %v339_v16 = vmul.f32 %v644_v4, %v899_v0  ;;  %v340_v17 = vmul.f32 %v645_v6, %v899_v0  ;;  %v652_v18 = vunpack.c.l.bf16 %v771_v9  ;;  %v716_v19 = vunpack.c.l.bf16 %v786_v10  ;;  %v787_v20 = vld [vmem:[%s897_s25 + $0x18] sm:$0xff]   ;;  %v788_v30 = vld [vmem:[%s897_s25 + $0x20] sm:$0xff]   ;;  %v789_v40 = vld [vmem:[%s897_s25 + $0x28] sm:$0xff]  }
  0x15   : > { %v341_v21 = vmul.f32 %v648_v11, %v899_v0  ;;  %v342_v22 = vmul.f32 %v649_v13, %v899_v0  ;;  %v653_v23 = vunpack.c.h.bf16 %v771_v9  ;;  %v717_v24 = vunpack.c.h.bf16 %v786_v10  ;;  %v775_v45 = vld [vmem:[%s892_s22 + $0x30] sm:$0xff]   ;;  %v776_v59 = vld [vmem:[%s892_s22 + $0x38] sm:$0xff]   ;;  %v777_v2 = vld [vmem:[%s892_s22 + $0x40] sm:$0xff]  }
  0x16   : > { %v435_v25 = vadd.f32 %v708_v5, %v339_v16  ;;  %v436_v26 = vadd.f32 %v709_v7, %v340_v17  ;;  %v343_v27 = vmul.f32 %v652_v18, %v899_v0  ;;  %v656_v28 = vunpack.c.l.bf16 %v772_v15  ;;  %v790_v50 = vld [vmem:[%s897_s25 + $0x30] sm:$0xff]   ;;  %v791_v60 = vld [vmem:[%s897_s25 + $0x38] sm:$0xff]   ;;  %v792_v7 = vld [vmem:[%s897_s25 + $0x40] sm:$0xff]  }
  0x17   : > { %v437_v31 = vadd.f32 %v712_v12, %v341_v21  ;;  %v438_v32 = vadd.f32 %v713_v14, %v342_v22  ;;  %v344_v33 = vmul.f32 %v653_v23, %v899_v0  ;;  %v720_v34 = vunpack.c.l.bf16 %v787_v20  ;;  %v778_v12 = vld [vmem:[%s892_s22 + $0x48] sm:$0xff]  }
  0x18   : > { %467 = vst [vmem:[%s914_s29] sm:$0xff] %v435_v25  ;;  %468 = vst [vmem:[%s914_s29 + $0x8] sm:$0xff] %v436_v26  ;;  %v439_v36 = vadd.f32 %v716_v19, %v343_v27  ;;  %v345_v37 = vmul.f32 %v656_v28, %v899_v0  ;;  %v657_v38 = vunpack.c.h.bf16 %v772_v15  ;;  %v721_v39 = vunpack.c.h.bf16 %v787_v20  ;;  %v793_v17 = vld [vmem:[%s897_s25 + $0x48] sm:$0xff]   ;;  %v779_v26 = vld [vmem:[%s892_s22 + $0x50] sm:$0xff]  }
  0x19   : > { %469 = vst [vmem:[%s914_s29 + $0x10] sm:$0xff] %v437_v31  ;;  %470 = vst [vmem:[%s914_s29 + $0x18] sm:$0xff] %v438_v32  ;;  %v440_v41 = vadd.f32 %v717_v24, %v344_v33  ;;  %v660_v42 = vunpack.c.l.bf16 %v773_v29  ;;  %v724_v43 = vunpack.c.l.bf16 %v788_v30  ;;  %v661_v44 = vunpack.c.h.bf16 %v773_v29  ;;  %v794_v27 = vld [vmem:[%s897_s25 + $0x50] sm:$0xff]   ;;  %v780_v32 = vld [vmem:[%s892_s22 + $0x58] sm:$0xff]  }
  0x1a   : > { %471 = vst [vmem:[%s914_s29 + $0x20] sm:$0xff] %v439_v36  ;;  %v441_v46 = vadd.f32 %v720_v34, %v345_v37  ;;  %v346_v47 = vmul.f32 %v657_v38, %v899_v0  ;;  %v725_v48 = vunpack.c.h.bf16 %v788_v30  ;;  %v664_v49 = vunpack.c.l.bf16 %v774_v35  ;;  %v795_v37 = vld [vmem:[%s897_s25 + $0x58] sm:$0xff]  }
  0x1b   : > { %472 = vst [vmem:[%s914_s29 + $0x28] sm:$0xff] %v440_v41  ;;  %v347_v51 = vmul.f32 %v660_v42, %v899_v0  ;;  %v348_v52 = vmul.f32 %v661_v44, %v899_v0  ;;  %v728_v53 = vunpack.c.l.bf16 %v789_v40  ;;  %v665_v54 = vunpack.c.h.bf16 %v774_v35  ;;  %v781_v42 = vld [vmem:[%s892_s22 + $0x60] sm:$0xff]  }
  0x1c   : > { %473 = vst [vmem:[%s914_s29 + $0x30] sm:$0xff] %v441_v46  ;;  %v442_v55 = vadd.f32 %v721_v39, %v346_v47  ;;  %v349_v56 = vmul.f32 %v664_v49, %v899_v0  ;;  %v729_v57 = vunpack.c.h.bf16 %v789_v40  ;;  %v668_v58 = vunpack.c.l.bf16 %v775_v45  ;;  %v796_v47 = vld [vmem:[%s897_s25 + $0x60] sm:$0xff]  }
  0x1d   : > { %v443_v61 = vadd.f32 %v724_v43, %v347_v51  ;;  %v444_v62 = vadd.f32 %v725_v48, %v348_v52  ;;  %v350_v63 = vmul.f32 %v665_v54, %v899_v0  ;;  %v732_v1 = vunpack.c.l.bf16 %v790_v50 }
  0x1e   : > { %474 = vst [vmem:[%s914_s29 + $0x38] sm:$0xff] %v442_v55  ;;  %v445_v3 = vadd.f32 %v728_v53, %v349_v56  ;;  %v351_v4 = vmul.f32 %v668_v58, %v899_v0  ;;  %v669_v5 = vunpack.c.h.bf16 %v775_v45  ;;  %v733_v6 = vunpack.c.h.bf16 %v790_v50  ;;  %v782_v56 = vld [vmem:[%s892_s22 + $0x68] sm:$0xff]  }
  0x1f   : > { %475 = vst [vmem:[%s914_s29 + $0x40] sm:$0xff] %v443_v61  ;;  %476 = vst [vmem:[%s914_s29 + $0x48] sm:$0xff] %v444_v62  ;;  %v446_v8 = vadd.f32 %v729_v57, %v350_v63  ;;  %v672_v9 = vunpack.c.l.bf16 %v776_v59  ;;  %v736_v10 = vunpack.c.l.bf16 %v791_v60  ;;  %v673_v11 = vunpack.c.h.bf16 %v776_v59  ;;  %v797_v57 = vld [vmem:[%s897_s25 + $0x68] sm:$0xff]   ;;  %v783_v62 = vld [vmem:[%s892_s22 + $0x70] sm:$0xff]  }
  0x20   : > { %477 = vst [vmem:[%s914_s29 + $0x50] sm:$0xff] %v445_v3  ;;  %v447_v13 = vadd.f32 %v732_v1, %v351_v4  ;;  %v352_v14 = vmul.f32 %v669_v5, %v899_v0  ;;  %v737_v15 = vunpack.c.h.bf16 %v791_v60  ;;  %v676_v16 = vunpack.c.l.bf16 %v777_v2  ;;  %v798_v4 = vld [vmem:[%s897_s25 + $0x70] sm:$0xff]  }
  0x21   : > { %478 = vst [vmem:[%s914_s29 + $0x58] sm:$0xff] %v446_v8  ;;  %v353_v18 = vmul.f32 %v672_v9, %v899_v0  ;;  %v354_v19 = vmul.f32 %v673_v11, %v899_v0  ;;  %v740_v20 = vunpack.c.l.bf16 %v792_v7  ;;  %v677_v21 = vunpack.c.h.bf16 %v777_v2  ;;  %v784_v9 = vld [vmem:[%s892_s22 + $0x78] sm:$0xff]  }
  0x22   : > { %479 = vst [vmem:[%s914_s29 + $0x60] sm:$0xff] %v447_v13  ;;  %v448_v22 = vadd.f32 %v733_v6, %v352_v14  ;;  %v355_v23 = vmul.f32 %v676_v16, %v899_v0  ;;  %v741_v24 = vunpack.c.h.bf16 %v792_v7  ;;  %v680_v25 = vunpack.c.l.bf16 %v778_v12  ;;  %v799_v14 = vld [vmem:[%s897_s25 + $0x78] sm:$0xff]  }
  0x23   : > { %v449_v28 = vadd.f32 %v736_v10, %v353_v18  ;;  %v450_v29 = vadd.f32 %v737_v15, %v354_v19  ;;  %v356_v30 = vmul.f32 %v677_v21, %v899_v0  ;;  %v744_v31 = vunpack.c.l.bf16 %v793_v17 }
  0x24   : > { %480 = vst [vmem:[%s914_s29 + $0x68] sm:$0xff] %v448_v22  ;;  %v451_v33 = vadd.f32 %v740_v20, %v355_v23  ;;  %v357_v34 = vmul.f32 %v680_v25, %v899_v0  ;;  %v681_v35 = vunpack.c.h.bf16 %v778_v12  ;;  %v745_v36 = vunpack.c.h.bf16 %v793_v17 }
  0x25   : > { %481 = vst [vmem:[%s914_s29 + $0x70] sm:$0xff] %v449_v28  ;;  %482 = vst [vmem:[%s914_s29 + $0x78] sm:$0xff] %v450_v29  ;;  %v452_v38 = vadd.f32 %v741_v24, %v356_v30  ;;  %v684_v39 = vunpack.c.l.bf16 %v779_v26  ;;  %v748_v40 = vunpack.c.l.bf16 %v794_v27  ;;  %v685_v41 = vunpack.c.h.bf16 %v779_v26 }
  0x26   : > { %483 = vst [vmem:[%s914_s29 + $0x80] sm:$0xff] %v451_v33  ;;  %v453_v43 = vadd.f32 %v744_v31, %v357_v34  ;;  %v358_v44 = vmul.f32 %v681_v35, %v899_v0  ;;  %v749_v45 = vunpack.c.h.bf16 %v794_v27  ;;  %v688_v46 = vunpack.c.l.bf16 %v780_v32 }
  0x27   : > { %484 = vst [vmem:[%s914_s29 + $0x88] sm:$0xff] %v452_v38  ;;  %v359_v48 = vmul.f32 %v684_v39, %v899_v0  ;;  %v360_v49 = vmul.f32 %v685_v41, %v899_v0  ;;  %v752_v50 = vunpack.c.l.bf16 %v795_v37  ;;  %v689_v51 = vunpack.c.h.bf16 %v780_v32 }
  0x28   : > { %485 = vst [vmem:[%s914_s29 + $0x90] sm:$0xff] %v453_v43  ;;  %v454_v52 = vadd.f32 %v745_v36, %v358_v44  ;;  %v361_v53 = vmul.f32 %v688_v46, %v899_v0  ;;  %v753_v54 = vunpack.c.h.bf16 %v795_v37  ;;  %v692_v55 = vunpack.c.l.bf16 %v781_v42 }
  0x29   : > { %v455_v58 = vadd.f32 %v748_v40, %v359_v48  ;;  %v456_v59 = vadd.f32 %v749_v45, %v360_v49  ;;  %v362_v60 = vmul.f32 %v689_v51, %v899_v0  ;;  %v756_v61 = vunpack.c.l.bf16 %v796_v47 }
  0x2a   : > { %486 = vst [vmem:[%s914_s29 + $0x98] sm:$0xff] %v454_v52  ;;  %v457_v63 = vadd.f32 %v752_v50, %v361_v53  ;;  %v363_v1 = vmul.f32 %v692_v55, %v899_v0  ;;  %v693_v2 = vunpack.c.h.bf16 %v781_v42  ;;  %v757_v3 = vunpack.c.h.bf16 %v796_v47 }
  0x2b   : > { %487 = vst [vmem:[%s914_s29 + $0xa0] sm:$0xff] %v455_v58  ;;  %488 = vst [vmem:[%s914_s29 + $0xa8] sm:$0xff] %v456_v59  ;;  %v458_v5 = vadd.f32 %v753_v54, %v362_v60  ;;  %v696_v6 = vunpack.c.l.bf16 %v782_v56  ;;  %v760_v7 = vunpack.c.l.bf16 %v797_v57  ;;  %v697_v8 = vunpack.c.h.bf16 %v782_v56 }
  0x2c   : > { %489 = vst [vmem:[%s914_s29 + $0xb0] sm:$0xff] %v457_v63  ;;  %v459_v10 = vadd.f32 %v756_v61, %v363_v1  ;;  %v364_v11 = vmul.f32 %v693_v2, %v899_v0  ;;  %v761_v12 = vunpack.c.h.bf16 %v797_v57  ;;  %v700_v13 = vunpack.c.l.bf16 %v783_v62 }
  0x2d   : > { %490 = vst [vmem:[%s914_s29 + $0xb8] sm:$0xff] %v458_v5  ;;  %v365_v15 = vmul.f32 %v696_v6, %v899_v0  ;;  %v366_v16 = vmul.f32 %v697_v8, %v899_v0  ;;  %v764_v17 = vunpack.c.l.bf16 %v798_v4  ;;  %v701_v18 = vunpack.c.h.bf16 %v783_v62 }
  0x2e   : > { %491 = vst [vmem:[%s914_s29 + $0xc0] sm:$0xff] %v459_v10  ;;  %v460_v19 = vadd.f32 %v757_v3, %v364_v11  ;;  %v367_v20 = vmul.f32 %v700_v13, %v899_v0  ;;  %v765_v21 = vunpack.c.h.bf16 %v798_v4  ;;  %v704_v22 = vunpack.c.l.bf16 %v784_v9 }
  0x2f   : > { %v461_v23 = vadd.f32 %v760_v7, %v365_v15  ;;  %v462_v24 = vadd.f32 %v761_v12, %v366_v16  ;;  %v368_v25 = vmul.f32 %v701_v18, %v899_v0  ;;  %v768_v26 = vunpack.c.l.bf16 %v799_v14 }
  0x30   : > { %492 = vst [vmem:[%s914_s29 + $0xc8] sm:$0xff] %v460_v19  ;;  %v463_v27 = vadd.f32 %v764_v17, %v367_v20  ;;  %v369_v28 = vmul.f32 %v704_v22, %v899_v0  ;;  %v705_v29 = vunpack.c.h.bf16 %v784_v9  ;;  %v769_v30 = vunpack.c.h.bf16 %v799_v14 }
  0x31   : > { %493 = vst [vmem:[%s914_s29 + $0xd0] sm:$0xff] %v461_v23  ;;  %494 = vst [vmem:[%s914_s29 + $0xd8] sm:$0xff] %v462_v24  ;;  %v464_v31 = vadd.f32 %v765_v21, %v368_v25 }
  0x32   : > { %495 = vst [vmem:[%s914_s29 + $0xe0] sm:$0xff] %v463_v27  ;;  %v465_v32 = vadd.f32 %v768_v26, %v369_v28  ;;  %v370_v33 = vmul.f32 %v705_v29, %v899_v0 }
  0x33   : > { %496 = vst [vmem:[%s914_s29 + $0xe8] sm:$0xff] %v464_v31 }
  0x34   : > { %497 = vst [vmem:[%s914_s29 + $0xf0] sm:$0xff] %v465_v32  ;;  %v466_v34 = vadd.f32 %v769_v30, %v370_v33 }
  0x36   : > { %498 = vst [vmem:[%s914_s29 + $0xf8] sm:$0xff] %v466_v34 }
  0x37 PF: > { %s13_s14 = sadd.s32 1, %s846_s14   ;;  %s1015_s12 = smov %s842_s13 }
  0x38   : > { %p10_p5 = scmp.ge.s32.totalorder %s13_s14, 4   ;;  %s1016_s13 = smov %s1018_s15 }
  0x3a   :  { %12 = sbr.rel (!%p10_p5) target bundleno = 2 (0x2), region = 68 }

// kernel: du2_forward.4
= control target key start
LH: loop header
LB: loop body
LE: loop exit
PB: predicated region body
PF: predicated region fallthrough
CT: control target
= control target key end

     0   :  { %s5731_s11 = smov 0   ;;  %s5733_s12 = smov 0   ;;  %s7332_s0 = inlined_call_operand.vmem [shape: bf16[2,16,16,128], index: 0, kind: input, shape index: {}, may-alias: {0,1,2}]   ;;  %s7333_s1 = inlined_call_operand.vmem [shape: bf16[2,16,16,128], index: 1, kind: input, shape index: {}, may-alias: {0,1,2}]   ;;  %s7334_s2 = inlined_call_operand.vmem [shape: bf16[2,16,16,128], index: 2, kind: input, shape index: {}, may-alias: {0,1,2}]   ;;  %s7335_s3 = inlined_call_operand.vmem [shape: bf16[2,8,16,256], index: 3, kind: input, shape index: {}, may-alias: {3,4,5}]   ;;  %s7336_s4 = inlined_call_operand.vmem [shape: bf16[2,8,16,256], index: 4, kind: input, shape index: {}, may-alias: {3,4,5}]   ;;  %s7337_s5 = inlined_call_operand.vmem [shape: bf16[2,8,16,256], index: 5, kind: input, shape index: {}, may-alias: {3,4,5}]   ;;  %s7338_s6 = inlined_call_operand.vmem [shape: bf16[3,384,128], index: 6, kind: input, shape index: {}]   ;;  %s7339_s7 = inlined_call_operand.vmem [shape: f32[1,128], index: 7, kind: input, shape index: {}]   ;;  %s7340_s8 = inlined_call_operand.vmem [shape: bf16[256,128], index: 8, kind: input, shape index: {}]   ;;  %s7341_s9 = inlined_call_operand.vmem [shape: bf16[2,16,16,128], index: 9, kind: output, shape index: {0}]   ;;  %s7342_s10 = inlined_call_operand.vmem [shape: f32[2,1,8,128], index: 10, kind: output, shape index: {1}]  }
   0x1   :  { %s5735_s13 = smov 0  }
   0x2 LB: > { %s33_s14 = sadd.s32 1, %s5667_s12  ;;  %p3855_p0 = scmp.ge.s32.totalorder %s5671_s13, 1  ;;  %s5671_s13 = sphi %s5735_s13, %s21_s13   ;;  %s5667_s12 = sphi %s5733_s12, %s7403_s12   ;;  %s5663_s11 = sphi %s5731_s11, %s7402_s11  }
   0x3   : > { %p35_p1 = scmp.ge.s32.totalorder %s33_s14, 2  ;;  %p485_p2 = scmp.lt.s32.totalorder %s5671_s13, 3 }
   0x5   : > { %s7405_s14 = smov (%p35_p1, %s33_s14), 0  ;;  %p486_p3 = pnand %p3855_p0, %p485_p2 }
   0x7   : > { %489 = sbr.rel (%p486_p3) target bundleno = 910 (0x38e), region = 56 }
   0xe   : > { %v5541_v0 = vld [vmem:[%s7338_s6 + $0x40] sm:$0xff]   ;;  %v5543_v2 = vld [vmem:[%s7338_s6 + $0x48] sm:$0xff]   ;;  %p603_p4 = scmp.lt.s32.totalorder %s5663_s11, 1  ;;  %v5545_v4 = vld [vmem:[%s7338_s6 + $0x50] sm:$0xff]   ;;  %v7343_v5 = vmov 0.0|0.0   ;;  %v5674_v22 = vmov 0.0  }
   0xf   : > { %v5542_v1 = vld [vmem:[%s7338_s6] sm:$0xff]   ;;  %5306 = vmatprep.subr.bf16.mxu1 %v5541_v0  ;;  %4642 = vmatprep.subr.bf16.mxu0 %v5541_v0  ;;  %v5544_v3 = vld [vmem:[%s7338_s6 + $0x8] sm:$0xff]   ;;  %v5546_v6 = vld [vmem:[%s7338_s6 + $0x10] sm:$0xff]   ;;  %v1170_v23 = vrot.slane %v5674_v22, 7  ;;  %v1279_v27 = vrot.slane %v5674_v22, 1  ;;  %vm1169_vm0 = vcmask 1040384  }
  0x10   : > { %5314 = vmatpush3.bf16.msra.mxu1 %v5542_v1  ;;  %4643 = vmatpush3.bf16.msra.mxu0 %v5542_v1  ;;  %s7407_s11 = smov (!%p603_p4, %s5663_s11), 1  ;;  %v5547_v7 = vld [vmem:[%s7338_s6 + $0x58] sm:$0xff]   ;;  %v5549_v9 = vld [vmem:[%s7338_s6 + $0x60] sm:$0xff]   ;;  %v5551_v11 = vld [vmem:[%s7338_s6 + $0x68] sm:$0xff]   ;;  %vm5675_vm2 = vmmov 1   ;;  %vm1278_vm4 = vcmask 1046528  }
  0x11   : > { %5307 = vmatprep.subr.bf16.mxu1 %v5543_v2  ;;  %4644 = vmatprep.subr.bf16.mxu0 %v5543_v2  ;;  %v5548_v8 = vld [vmem:[%s7338_s6 + $0x18] sm:$0xff]   ;;  %s5777_s29 = sshll.u32 %s7407_s11, 7  ;;  %v5550_v10 = vld [vmem:[%s7338_s6 + $0x20] sm:$0xff]   ;;  %v5552_v19 = vld [vmem:[%s7338_s6 + $0x28] sm:$0xff]   ;;  %v5856_v49 = vpack.c.bf16 %v1170_v23, %v1170_v23  ;;  %v5867_v54 = vpack.c.bf16 %v1279_v27, %v1279_v27 }
  0x12   : > { %1673 = vmatprep.mubr.bf16.mxu0 %v7343_v5  ;;  %s5786_s18 = scalar_lea.vmem %s7335_s3, %s5777_s29  ;;  %s5795_s23 = scalar_lea.vmem %s7332_s0, %s5777_s29  ;;  %v5553_v24 = vld [vmem:[%s7338_s6 + $0x70] sm:$0xff]   ;;  %v5555_v38 = vld [vmem:[%s7338_s6 + $0x78] sm:$0xff]   ;;  %vm5887_vm1 = vmneg %vm1169_vm0 }
  0x13   : > { %v795_v12 = vld [vmem:[%s5786_s18 + $0x50] sm:$0xff]  ;;  %v796_v13 = vld [vmem:[%s5786_s18 + $0x58] sm:$0xff]  ;;  %v797_v15 = vld [vmem:[%s5786_s18 + $0x60] sm:$0xff]  ;;  %s5823_s15 = scalar_lea.vmem %s7336_s4, %s5777_s29  ;;  %7366 = vst [vmem:[#allocation2_spill] sm:$0xff] %v5856_v49  ;;  %s4433_s24 = sadd.s32 112, %s5777_s29 }
  0x14   : > { %5315 = vmatpush3.bf16.msra.mxu1 %v5544_v3  ;;  %4645 = vmatpush3.bf16.msra.mxu0 %v5544_v3  ;;  %v4622_v14 = vld [vmem:[%s5795_s23 + $0x58] sm:$0xff]   ;;  %v798_v16 = vld [vmem:[%s5786_s18 + $0x68] sm:$0xff]  ;;  %v827_v17 = vunpack.c.l.bf16 %v795_v12  ;;  %v829_v18 = vunpack.c.l.bf16 %v796_v13  ;;  %v831_v20 = vunpack.c.l.bf16 %v797_v15  ;;  %v4623_v32 = vld [vmem:[%s5795_s23 + $0x60] sm:$0xff]   ;;  %7367 = vst [vmem:[#allocation3_spill] sm:$0xff] %v5867_v54  ;;  %s6690_s27 = scalar_lea.vmem %s7337_s5, %s4433_s24 }
  0x15   : > { %5308 = vmatprep.subr.bf16.mxu1 %v5545_v4  ;;  %4646 = vmatprep.subr.bf16.mxu0 %v5545_v4  ;;  %v833_v21 = vunpack.c.l.bf16 %v798_v16  ;;  %v4513_v28 = vunpack.c.l.bf16 %v4622_v14  ;;  %v4514_v29 = vunpack.c.h.bf16 %v4622_v14  ;;  %v5554_v34 = vld [vmem:[%s7338_s6 + $0x30] sm:$0xff]   ;;  %v5836_v37 = vld [vmem:[%s5795_s23] sm:$0xff]   ;;  %v4517_v39 = vunpack.c.l.bf16 %v4623_v32  ;;  %v784_v47 = vld [vmem:[%s5823_s15 + $0x8] sm:$0xff] }
  0x16   : > { %v5811_v25 = vmul.f32 0.75, %v827_v17  ;;  %v5813_v26 = vmul.f32 0.75, %v829_v18  ;;  %v5815_v30 = vmul.f32 0.25, %v831_v20  ;;  %v5826_v33 = vmul.f32 0.25, %v827_v17  ;;  %v783_v42 = vld [vmem:[%s5823_s15] sm:$0xff]  ;;  %v5556_v48 = vld [vmem:[%s7338_s6 + $0x38] sm:$0xff]   ;;  %vm5920_vm3 = vmpackc.low %vm5675_vm2, %vm5887_vm1 }
  0x17   : > { %v5817_v31 = vmul.f32 0.25, %v833_v21  ;;  %v5841_v40 = vmul.f32 0.25, %v829_v18  ;;  %v5843_v41 = vmul.f32 0.75, %v831_v20  ;;  %v4518_v45 = vunpack.c.h.bf16 %v4623_v32  ;;  %v5862_v52 = vld [vmem:[%s5786_s18] sm:$0xff]  ;;  %v5865_v53 = vld [vmem:[%s5786_s18 + $0x8] sm:$0xff]  ;;  %v5870_v55 = vld [vmem:[%s5795_s23 + $0x50] sm:$0xff]  }
  0x18   : > { %5316 = vmatpush3.bf16.msra.mxu1 %v5546_v6  ;;  %4647 = vmatpush3.bf16.msra.mxu0 %v5546_v6  ;;  %v967_v35 = vadd.f32 %v5811_v25, %v5815_v30  ;;  %v5850_v46 = vmul.f32 0.75, %v833_v21  ;;  %v4469_v51 = vunpack.c.l.bf16 %v5836_v37  ;;  %v5873_v56 = vld [vmem:[%s5786_s18 + $0x40] sm:$0xff]  ;;  %v5884_v61 = vld [vmem:[%s5786_s18 + $0x48] sm:$0xff]  ;;  %v4470_v1 = vunpack.c.h.bf16 %v5836_v37  ;;  %v5898_v4 = vld [vmem:[%s5786_s18 + $0x70] sm:$0xff] }
  0x19   : > { %5309 = vmatprep.subr.bf16.mxu1 %v5547_v7  ;;  %4648 = vmatprep.subr.bf16.mxu0 %v5547_v7  ;;  %v969_v36 = vadd.f32 %v5813_v26, %v5817_v31  ;;  %v931_v50 = vadd.f32 %v5843_v41, %v5826_v33  ;;  %v5557_v63 = vld [vmem:[%s7338_s6 + $0x80] sm:$0xff]   ;;  %v803_v2 = vunpack.c.l.bf16 %v783_v42  ;;  %v805_v3 = vunpack.c.l.bf16 %v784_v47  ;;  %v5558_v12 = vld [vmem:[%s7338_s6 + $0x88] sm:$0xff]   ;;  %v5915_v17 = vld [vmem:[%s5786_s18 + $0x10] sm:$0xff] }
  0x1a   : > { %v5846_v43 = vsub.f32 %v4513_v28, %v967_v35  ;;  %v933_v60 = vadd.f32 %v5850_v46, %v5841_v40  ;;  %v4624_v16 = vld [vmem:[%s5795_s23 + $0x68] sm:$0xff]   ;;  %v5934_v23 = vld [vmem:[%s5786_s18 + $0x18] sm:$0xff]  ;;  %v823_v27 = vunpack.c.l.bf16 %v5873_v56  ;;  %v835_v28 = vunpack.c.l.bf16 %v5898_v4  ;;  %v4625_v37 = vld [vmem:[%s5795_s23 + $0x70] sm:$0xff]  }
  0x1b   : > { %v5848_v44 = vsub.f32 %v4514_v29, %v969_v36  ;;  %v5894_v0 = vsub.f32 %v4517_v39, %v931_v50  ;;  %v843_v14 = vmul.f32 0.25, %v803_v2  ;;  %v845_v15 = vmul.f32 0.25, %v805_v3  ;;  %vm6171_vm5 = vmpackc.low %vm1278_vm4, %vm5675_vm2 }
  0x1c   : > { %5317 = vmatpush3.bf16.msra.mxu1 %v5548_v8  ;;  %4649 = vmatpush3.bf16.msra.mxu0 %v5548_v8  ;;  %v1206_v58 = vrot.slane %v5846_v43, 7  ;;  %v5902_v7 = vsub.f32 %v4518_v45, %v933_v60  ;;  %v807_v8 = vunpack.c.l.bf16 %v5862_v52  ;;  %v825_v32 = vunpack.c.l.bf16 %v5884_v61 }
  0x1d   : > { %5310 = vmatprep.subr.bf16.mxu1 %v5549_v9  ;;  %4650 = vmatprep.subr.bf16.mxu0 %v5549_v9  ;;  %v5877_v57 = vpack.c.bf16 %v5848_v44, %v5846_v43  ;;  %v1207_v59 = vrot.slane %v5848_v44, 7  ;;  %v809_v9 = vunpack.c.l.bf16 %v5865_v53  ;;  %v1209_v13 = vrot.slane %v5894_v0, 7  ;;  %v5562_v53 = vld [vmem:[%s7338_s6 + $0xa8] sm:$0xff]  }
  0x1e   : > { %v1210_v20 = vrot.slane %v5902_v7, 7  ;;  %v875_v21 = vmul.f32 0.75, %v807_v8  ;;  %v4521_v36 = vunpack.c.l.bf16 %v4624_v16  ;;  %v4522_v42 = vunpack.c.h.bf16 %v4624_v16 }
  0x1f   : > { %7368 = vst [vmem:[#allocation4_spill] sm:$0xff] %v5877_v57  ;;  %1769 = vmatprep.mubr.bf16.mxu1 %v5877_v57  ;;  %v1208_v6 = vsel %vm1169_vm0, %v1206_v58, %v1207_v59  ;;  %v877_v22 = vmul.f32 0.75, %v809_v9  ;;  %v939_v45 = vmul.f32 0.25, %v835_v28  ;;  %v811_v59 = vunpack.c.l.bf16 %v5915_v17 }
  0x20   : > { %5318 = vmatpush3.bf16.msra.mxu1 %v5550_v10  ;;  %4651 = vmatpush3.bf16.msra.mxu0 %v5550_v10  ;;  %v800_v10 = vld [vmem:[%s5786_s18 + $0x78] sm:$0xff]  ;;  %v1211_v39 = vsel %vm1169_vm0, %v1209_v13, %v1210_v20  ;;  %v813_v60 = vunpack.c.l.bf16 %v5934_v23  ;;  %v5962_v62 = vmul.f32 0.25, %v823_v27  ;;  %v5984_v16 = vmul.f32 0.75, %v835_v28  ;;  %v5989_v20 = vld [vmem:[%s5795_s23 + $0x10] sm:$0xff]  }
  0x21   : > { %5311 = vmatprep.subr.bf16.mxu1 %v5551_v11  ;;  %4652 = vmatprep.subr.bf16.mxu0 %v5551_v11  ;;  %v5907_v11 = vpack.c.bf16 %v1208_v6, %v1206_v58  ;;  %v837_v29 = vunpack.c.l.bf16 %v800_v10  ;;  %v909_v35 = vadd.f32 %v877_v22, %v845_v15  ;;  %v849_v52 = vmul.f32 0.25, %v809_v9 }
  0x22   : > { %7376 = vst [vmem:[#allocation8_spill] sm:$0xff] %v5984_v16 }
  0x23   : > { %7371 = vst [vmem:[#allocation5_spill] sm:$0xff] %v5907_v11  ;;  %v941_v47 = vmul.f32 0.25, %v837_v29  ;;  %v5956_v58 = vsub.f32 %v4470_v1, %v909_v35  ;;  %v5986_v17 = vmul.f32 0.75, %v837_v29 }
  0x24   : > { %5319 = vmatpush3.bf16.msra.mxu1 %v5552_v19  ;;  %4653 = vmatpush3.bf16.msra.mxu0 %v5552_v19  ;;  %v5926_v19 = vpack.c.bf16 %v5902_v7, %v5894_v0 }
  0x25   : > { %5312 = vmatprep.subr.bf16.mxu1 %v5553_v24  ;;  %4654 = vmatprep.subr.bf16.mxu0 %v5553_v24  ;;  %v4509_v24 = vunpack.c.l.bf16 %v5870_v55  ;;  %v973_v2 = vadd.f32 %v941_v47, %v5850_v46  ;;  %v1174_v10 = vrot.slane %v5956_v58, 7  ;;  %v5982_v46 = vmul.f32 0.25, %v813_v60  ;;  %7377 = vst [vmem:[#allocation9_spill] sm:$0xff] %v5986_v17 }
  0x26   : > { %7374 = vst [vmem:[#allocation6_spill] sm:$0xff] %v5926_v19  ;;  %v937_v47 = vadd.f32 %v5986_v17, %v5817_v31  ;;  %v5561_v31 = vld [vmem:[%s7338_s6 + $0xa0] sm:$0xff]  }
  0x27   : > { %v5977_v15 = vsub.f32 %v4522_v42, %v973_v2  ;;  %v6007_v42 = vmul.f32 0.25, %v825_v32 }
  0x28   : > { %5320 = vmatpush3.bf16.msra.mxu1 %v5554_v34  ;;  %4655 = vmatpush3.bf16.msra.mxu0 %v5554_v34  ;;  %v907_v34 = vadd.f32 %v875_v21, %v843_v14 }
  0x29   : > { %5313 = vmatprep.subr.bf16.mxu1 %v5555_v38  ;;  %4656 = vmatprep.subr.bf16.mxu0 %v5555_v38  ;;  %v4612_v38 = vld [vmem:[%s5795_s23 + $0x8] sm:$0xff]   ;;  %v1213_v29 = vrot.slane %v5977_v15, 7 }
  0x2a   : > { %v5954_v50 = vsub.f32 %v4469_v51, %v907_v34  ;;  %v4473_v3 = vunpack.c.l.bf16 %v4612_v38  ;;  %v5967_v51 = vpack.c.bf16 %v1211_v39, %v1209_v13  ;;  %v4474_v6 = vunpack.c.h.bf16 %v4612_v38  ;;  %v5560_v34 = vld [vmem:[%s7338_s6 + $0x98] sm:$0xff]  }
  0x2b   : > { %v4525_v13 = vunpack.c.l.bf16 %v4625_v37  ;;  %v949_v39 = vadd.f32 %v877_v22, %v5982_v46 }
  0x2c   : > { %5321 = vmatpush3.bf16.msra.mxu1 %v5556_v48  ;;  %4657 = vmatpush3.bf16.msra.mxu0 %v5556_v48  ;;  %v5559_v48 = vld [vmem:[%s7338_s6 + $0x90] sm:$0xff]   ;;  %7375 = vst [vmem:[#allocation7_spill] sm:$0xff] %v5967_v51  ;;  %v5971_v1 = vpack.c.bf16 %v5956_v58, %v5954_v50  ;;  %v1173_v4 = vrot.slane %v5954_v50, 7 }
  0x2d   : > { %5162 = vmatprep.subr.bf16.mxu1 %v5557_v63  ;;  %v6023_v2 = vsub.f32 %v4474_v6, %v949_v39  ;;  %v927_v39 = vadd.f32 %v5811_v25, %v5962_v62 }
  0x2e   : > { %v1175_v23 = vsel %vm1169_vm0, %v1173_v4, %v1174_v10 }
  0x2f   : > { %3947 = vmatmul.mubr.msk.bf16.vlgmr.msra.gmra.mrb[0].mxu1 %vm5920_vm3, %v5907_v11  ;;  %3899 = vmatmul.mubr.msk.bf16.vlgmr.msra.gmra.mrb[0].mxu0 %vm5920_vm3, %v5856_v49  ;;  %v6000_v28 = vpack.c.bf16 %v1175_v23, %v1173_v4  ;;  %v1177_v10 = vrot.slane %v6023_v2, 7  ;;  %v879_v23 = vmul.f32 0.75, %v811_v59  ;;  %v5577_v49 = vld [vmem:[%s7338_s6 + $0x1c8] sm:$0xff]  }
  0x30   : > { %5163 = vmatpush3.bf16.msra.mxu1 %v5557_v63  ;;  %1777 = vmatprep.mubr.bf16.mxu1 %v5926_v19  ;;  %v971_v63 = vadd.f32 %v939_v45, %v5843_v41  ;;  %v5979_v41 = vmul.f32 0.25, %v811_v59  ;;  %v935_v45 = vadd.f32 %v5984_v16, %v5815_v30  ;;  %v847_v30 = vmul.f32 0.25, %v807_v8  ;;  %v5564_v16 = vld [vmem:[%s7338_s6 + $0xb8] sm:$0xff]   ;;  %v4616_v11 = vld [vmem:[%s5795_s23 + $0x28] sm:$0xff]  }
  0x31   : > { %5164 = vmatprep.subr.bf16.mxu1 %v5558_v12  ;;  %1681 = vmatprep.mubr.bf16.mxu0 %v5971_v1  ;;  %v6064_v59 = vmul.f32 0.75, %v823_v27  ;;  %v5575_v27 = vld [vmem:[%s7338_s6 + $0x1c0] sm:$0xff]  }
  0x32   : > { %v5975_v14 = vsub.f32 %v4521_v36, %v971_v63  ;;  %v4526_v36 = vunpack.c.h.bf16 %v4625_v37  ;;  %v947_v38 = vadd.f32 %v875_v21, %v5979_v41  ;;  %v4477_v63 = vunpack.c.l.bf16 %v5989_v20  ;;  %v6028_v37 = vld [vmem:[%s5795_s23 + $0x48] sm:$0xff]   ;;  %4914 = vmatprep.subr.bf16.mxu0 %v5575_v27  ;;  %v6127_v27 = vld [vmem:[%s5795_s23 + $0x20] sm:$0xff]  }
  0x33   : > { %v4486_v19 = vunpack.c.h.bf16 %v6127_v27 }
  0x34   : > { %5165 = vmatpush3.bf16.msra.mxu1 %v5558_v12  ;;  %v5997_v12 = vpack.c.bf16 %v5977_v15, %v5975_v14  ;;  %v1212_v35 = vrot.slane %v5975_v14, 7  ;;  %v6021_v22 = vsub.f32 %v4473_v3, %v947_v38  ;;  %v6036_v4 = vsub.f32 %v4526_v36, %v937_v47  ;;  %v6058_v38 = vld [vmem:[%s5786_s18 + $0x28] sm:$0xff]  ;;  %v4614_v47 = vld [vmem:[%s5795_s23 + $0x18] sm:$0xff]  }
  0x35   : > { %5166 = vmatprep.subr.bf16.mxu1 %v5559_v48  ;;  %v4478_v3 = vunpack.c.h.bf16 %v5989_v20  ;;  %v881_v36 = vmul.f32 0.75, %v813_v60 }
  0x36   : > { %7378 = vst [vmem:[#allocation10_spill] sm:$0xff] %v5997_v12  ;;  %v1214_v21 = vsel %vm1169_vm0, %v1212_v35, %v1213_v29  ;;  %v6043_v8 = vpack.c.bf16 %v6023_v2, %v6021_v22  ;;  %v1176_v6 = vrot.slane %v6021_v22, 7  ;;  %v6048_v29 = vld [vmem:[%s5786_s18 + $0x20] sm:$0xff]  ;;  %v1216_v20 = vrot.slane %v6036_v4, 7 }
  0x37   : > { %3951 = vmatmul.mubr.msk.bf16.gmra.mrb[4].mxu1 %vm5920_vm3, %v5967_v51  ;;  %3903 = vmatmul.mubr.msk.bf16.gmra.mrb[4].mxu0 %vm5920_vm3, %v6000_v28  ;;  %v913_v56 = vadd.f32 %v881_v36, %v849_v52  ;;  %v6092_v52 = vmul.f32 0.75, %v825_v32  ;;  %v4482_v32 = vunpack.c.h.bf16 %v4614_v47  ;;  %v5581_v51 = vld [vmem:[%s7338_s6 + $0x1d0] sm:$0xff]  }
  0x38   : > { %5167 = vmatpush3.bf16.msra.mxu1 %v5559_v48  ;;  %1785 = vmatprep.mubr.bf16.mxu1 %v5997_v12  ;;  %v6034_v48 = vsub.f32 %v4525_v13, %v935_v45  ;;  %v6050_v13 = vpack.c.bf16 %v1214_v21, %v1212_v35  ;;  %v1178_v35 = vsel %vm1169_vm0, %v1176_v6, %v1177_v10  ;;  %v817_v10 = vunpack.c.l.bf16 %v6058_v38  ;;  %v6145_v12 = vld [vmem:[%s5795_s23 + $0x30] sm:$0xff]  }
  0x39   : > { %5168 = vmatprep.subr.bf16.mxu1 %v5560_v34  ;;  %1689 = vmatprep.mubr.bf16.mxu0 %v6043_v8  ;;  %v911_v45 = vadd.f32 %v879_v23, %v847_v30  ;;  %v6071_v21 = vadd.f32 %v5813_v26, %v6007_v42  ;;  %v6073_v60 = vpack.c.bf16 %v1178_v35, %v1176_v6  ;;  %v815_v26 = vunpack.c.l.bf16 %v6048_v29  ;;  %v5576_v6 = vld [vmem:[%s7338_s6 + $0x180] sm:$0xff]   ;;  %v5563_v29 = vld [vmem:[%s7338_s6 + $0xb0] sm:$0xff]  }
  0x3a   : > { %7379 = vst [vmem:[#allocation11_spill] sm:$0xff] %v6050_v13  ;;  %v1215_v9 = vrot.slane %v6034_v48, 7  ;;  %v6077_v25 = vpack.c.bf16 %v6036_v4, %v6034_v48  ;;  %v6101_v35 = vsub.f32 %v4478_v3, %v913_v56  ;;  %v4481_v38 = vunpack.c.l.bf16 %v4614_v47  ;;  %4915 = vmatpush3.bf16.msra.mxu0 %v5576_v6 }
  0x3b   : > { %v6083_v30 = vsub.f32 %v4477_v63, %v911_v45  ;;  %v6104_v45 = vld [vmem:[%s5786_s18 + $0x30] sm:$0xff]  ;;  %v855_v5 = vmul.f32 0.25, %v815_v26  ;;  %v6117_v3 = vsub.f32 %v4509_v24, %v927_v39  ;;  %v1282_v56 = vrot.slane %v5954_v50, 1  ;;  %4916 = vmatprep.subr.bf16.mxu0 %v5577_v49 }
  0x3c   : > { %5169 = vmatpush3.bf16.msra.mxu1 %v5560_v34  ;;  %7380 = vst [vmem:[#allocation12_spill] sm:$0xff] %v6077_v25  ;;  %v1217_v63 = vsel %vm1169_vm0, %v1215_v9, %v1216_v20  ;;  %v6111_v20 = vld [vmem:[%s5786_s18 + $0x38] sm:$0xff]  ;;  %v6113_v34 = vmul.f32 0.25, %v817_v10  ;;  %v1180_v47 = vrot.slane %v6101_v35, 7  ;;  %v1283_v24 = vrot.slane %v5956_v58, 1  ;;  %v5582_v49 = vld [vmem:[%s7338_s6 + $0x190] sm:$0xff]  }
  0x3d   : > { %5170 = vmatprep.subr.bf16.mxu1 %v5561_v31  ;;  %v1179_v61 = vrot.slane %v6083_v30, 7  ;;  %v6133_v39 = vpack.c.bf16 %v1217_v63, %v1215_v9  ;;  %v951_v50 = vadd.f32 %v879_v23, %v855_v5  ;;  %v819_v58 = vunpack.c.l.bf16 %v6104_v45 }
  0x3e   : > { %v821_v23 = vunpack.c.l.bf16 %v6111_v20  ;;  %v1285_v9 = vrot.slane %v6021_v22, 1  ;;  %v6162_v45 = vadd.f32 %v6064_v59, %v5826_v33 }
  0x3f   : > { %3955 = vmatmul.mubr.msk.bf16.gmra.mrb[8].mxu1 %vm5920_vm3, %v6050_v13  ;;  %3907 = vmatmul.mubr.msk.bf16.gmra.mrb[8].mxu0 %vm5920_vm3, %v6073_v60  ;;  %7381 = vst [vmem:[#allocation13_spill] sm:$0xff] %v6133_v39  ;;  %v953_v13 = vadd.f32 %v881_v36, %v6113_v34  ;;  %v1181_v17 = vsel %vm1169_vm0, %v1179_v61, %v1180_v47  ;;  %v1286_v47 = vrot.slane %v6023_v2, 1  ;;  %v6164_v20 = vmul.f32 0.75, %v819_v58 }
  0x40   : > { %5171 = vmatpush3.bf16.msra.mxu1 %v5561_v31  ;;  %1793 = vmatprep.mubr.bf16.mxu1 %v6077_v25  ;;  %v6123_v31 = vpack.c.bf16 %v6101_v35, %v6083_v30  ;;  %v5578_v25 = vld [vmem:[%s7338_s6 + $0x188] sm:$0xff]   ;;  %v6150_v36 = vpack.c.bf16 %v1181_v17, %v1179_v61  ;;  %v6152_v6 = vsub.f32 %v4481_v38, %v951_v50  ;;  %v6166_v22 = vmul.f32 0.75, %v821_v23 }
  0x41   : > { %5172 = vmatprep.subr.bf16.mxu1 %v5562_v53  ;;  %v6154_v63 = vsub.f32 %v4482_v32, %v953_v13  ;;  %v4485_v17 = vunpack.c.l.bf16 %v6127_v27  ;;  %v883_v38 = vmul.f32 0.75, %v815_v26  ;;  %4917 = vmatpush3.bf16.msra.mxu0 %v5578_v25  ;;  %v1284_v61 = vsel %vm1278_vm4, %v1282_v56, %v1283_v24  ;;  %v5565_v32 = vld [vmem:[%s7338_s6 + $0x100] sm:$0xff]   ;;  %v5583_v26 = vld [vmem:[%s7338_s6 + $0x1d8] sm:$0xff]  }
  0x42   : > { %1697 = vmatprep.mubr.bf16.mxu0 %v6123_v31  ;;  %v1182_v33 = vrot.slane %v6152_v6, 7  ;;  %v1288_v50 = vrot.slane %v6083_v30, 1  ;;  %v885_v25 = vmul.f32 0.75, %v817_v10  ;;  %4918 = vmatprep.subr.bf16.mxu0 %v5581_v51  ;;  %v6198_v56 = vadd.f32 %v6092_v52, %v5841_v40 }
  0x43   : > { %v6177_v13 = vpack.c.bf16 %v6154_v63, %v6152_v6  ;;  %v4493_v30 = vunpack.c.l.bf16 %v6145_v12  ;;  %v1287_v27 = vsel %vm1278_vm4, %v1285_v9, %v1286_v47  ;;  %v915_v10 = vadd.f32 %v883_v38, %v5979_v41  ;;  %v5566_v9 = vld [vmem:[%s7338_s6 + $0xc0] sm:$0xff]  }
  0x44   : > { %5173 = vmatpush3.bf16.msra.mxu1 %v5562_v53  ;;  %v1183_v53 = vrot.slane %v6154_v63, 7  ;;  %v919_v51 = vadd.f32 %v6164_v20, %v855_v5  ;;  %v6214_v57 = vpack.c.bf16 %v1283_v24, %v1284_v61  ;;  %v921_v41 = vadd.f32 %v6166_v22, %v6113_v34  ;;  %v5567_v34 = vld [vmem:[%s7338_s6 + $0x108] sm:$0xff]  }
  0x45   : > { %5174 = vmatprep.subr.bf16.mxu1 %v5563_v29  ;;  %7384 = vst [vmem:[#allocation14_spill] sm:$0xff] %v6177_v13  ;;  %v6222_v5 = vsub.f32 %v4485_v17, %v915_v10  ;;  %4919 = vmatpush3.bf16.msra.mxu0 %v5582_v49  ;;  %v1291_v61 = vrot.slane %v6152_v6, 1  ;;  %v861_v17 = vmul.f32 0.25, %v821_v23  ;;  %v4490_v6 = vunpack.c.h.bf16 %v4616_v11 }
  0x46   : > { %v1184_v40 = vsel %vm1169_vm0, %v1182_v33, %v1183_v53  ;;  %v859_v53 = vmul.f32 0.25, %v819_v58  ;;  %4920 = vmatprep.subr.bf16.mxu0 %v5583_v26  ;;  %v5587_v58 = vld [vmem:[%s7338_s6 + $0x1e0] sm:$0xff]  }
  0x47   : > { %3959 = vmatmul.mubr.msk.bf16.gmra.mrb[12].mxu1 %vm5920_vm3, %v6133_v39  ;;  %3911 = vmatmul.mubr.msk.bf16.gmra.mrb[12].mxu0 %vm5920_vm3, %v6150_v36  ;;  %v917_v39 = vadd.f32 %v885_v25, %v5982_v46  ;;  %v5584_v46 = vld [vmem:[%s7338_s6 + $0x198] sm:$0xff]   ;;  %v6241_v49 = vpack.c.bf16 %v1184_v40, %v1182_v33  ;;  %v957_v33 = vadd.f32 %v885_v25, %v861_v17  ;;  %v7385_v25 = vunpack.c.l.bf16 %v6028_v37 }
  0x48   : > { %5175 = vmatpush3.bf16.msra.mxu1 %v5563_v29  ;;  %5178 = vmatprep.mubr.msk.bf16.mxu1 %vm6171_vm5, %v5867_v54  ;;  %v1289_v29 = vrot.slane %v6101_v35, 1  ;;  %v6227_v35 = vpack.c.bf16 %v1286_v47, %v1287_v27  ;;  %v6236_v54 = vld [vmem:[%s5795_s23 + $0x40] sm:$0xff]   ;;  %v1292_v47 = vrot.slane %v6154_v63, 1  ;;  %v4489_v27 = vunpack.c.l.bf16 %v4616_v11 }
  0x49   : > { %5176 = vmatprep.subr.bf16.mxu1 %v5564_v16  ;;  %1705 = vmatprep.mubr.bf16.mxu0 %v6177_v13  ;;  %v6232_v24 = vsub.f32 %v4486_v19, %v917_v39  ;;  %v955_v10 = vadd.f32 %v883_v38, %v859_v53  ;;  %v4618_v13 = vld [vmem:[%s5795_s23 + $0x38] sm:$0xff]   ;;  %v6245_v19 = vsub.f32 %v4493_v30, %v919_v51  ;;  %v1185_v39 = vrot.slane %v6222_v5, 7  ;;  %v5588_v38 = vld [vmem:[%s7338_s6 + $0x1a0] sm:$0xff]  }
  0x4a   : > { %v1290_v26 = vsel %vm1278_vm4, %v1288_v50, %v1289_v29  ;;  %v4494_v63 = vunpack.c.h.bf16 %v6145_v12  ;;  %4921 = vmatpush3.bf16.msra.mxu0 %v5584_v46  ;;  %v959_v11 = vadd.f32 %v6164_v20, %v5962_v62  ;;  %v923_v50 = vadd.f32 %v6064_v59, %v859_v53  ;;  %v5589_v12 = vld [vmem:[%s7338_s6 + $0x1e8] sm:$0xff]   ;;  %v5569_v53 = vld [vmem:[%s7338_s6 + $0x110] sm:$0xff]  }
  0x4b   : > { %v1186_v23 = vrot.slane %v6232_v24, 7  ;;  %v4497_v30 = vunpack.c.l.bf16 %v4618_v13  ;;  %4922 = vmatprep.subr.bf16.mxu0 %v5587_v58  ;;  %v6271_v51 = vsub.f32 %v7385_v25, %v6162_v45  ;;  %v5568_v62 = vld [vmem:[%s7338_s6 + $0xc8] sm:$0xff]   ;;  %v1293_v59 = vsel %vm1278_vm4, %v1291_v61, %v1292_v47 }
  0x4c   : > { %5177 = vmatpush3.bf16.msra.mxu1 %v5564_v16  ;;  %v6252_v16 = vpack.c.bf16 %v6232_v24, %v6222_v5  ;;  %v6280_v20 = vsub.f32 %v4489_v27, %v955_v10  ;;  %v4510_v40 = vunpack.c.h.bf16 %v5870_v55  ;;  %v6286_v45 = vpack.c.bf16 %v1289_v29, %v1290_v26  ;;  %v5593_v10 = vld [vmem:[%s7338_s6 + $0x1f0] sm:$0xff]  }
  0x4d   : > { %4778 = vmatprep.subr.bf16.mxu1 %v5565_v32  ;;  %v4501_v32 = vunpack.c.l.bf16 %v6236_v54  ;;  %v6292_v46 = vsub.f32 %v4490_v6, %v957_v33  ;;  %v1300_v61 = vrot.slane %v6245_v19, 1  ;;  %v1294_v55 = vrot.slane %v6222_v5, 1  ;;  %v5570_v5 = vld [vmem:[%s7338_s6 + $0xd0] sm:$0xff]  }
  0x4e   : > { %v1295_v58 = vrot.slane %v6232_v24, 1  ;;  %v6298_v27 = vsub.f32 %v4494_v63, %v921_v41  ;;  %v4498_v29 = vunpack.c.h.bf16 %v4618_v13  ;;  %4923 = vmatpush3.bf16.msra.mxu0 %v5588_v38  ;;  %v961_v13 = vadd.f32 %v6166_v22, %v6007_v42 }
  0x4f   : > { %5179 = vmatmul.mubr.msk.bf16.vlgmr.msra.gmra.mrb[16].mxu1 %vm6171_vm5, %v6214_v57  ;;  %3915 = vmatmul.mubr.msk.bf16.gmra.mrb[16].mxu0 %vm5920_vm3, %v6241_v49  ;;  %v6308_v6 = vsub.f32 %v4501_v32, %v923_v50  ;;  %v6315_v41 = vsub.f32 %v4497_v30, %v959_v11  ;;  %v925_v26 = vadd.f32 %v6092_v52, %v861_v17  ;;  %v1297_v33 = vrot.slane %v6280_v20, 1  ;;  %v5571_v52 = vld [vmem:[%s7338_s6 + $0x118] sm:$0xff]   ;;  %v5594_v50 = vld [vmem:[%s7338_s6 + $0x1b0] sm:$0xff]  }
  0x50   : > { %4779 = vmatpush3.bf16.msra.mxu1 %v5566_v9  ;;  %5182 = vmatprep.mubr.msk.bf16.mxu1 %vm6171_vm5, %v6227_v35  ;;  %v1187_v9 = vsel %vm1169_vm0, %v1185_v39, %v1186_v23  ;;  %v6306_v23 = vpack.c.bf16 %v1292_v47, %v1293_v59  ;;  %v1188_v47 = vrot.slane %v6280_v20, 7  ;;  %v6324_v63 = vpack.c.bf16 %v6292_v46, %v6280_v20  ;;  %v5572_v30 = vld [vmem:[%s7338_s6 + $0xd8] sm:$0xff]  }
  0x51   : > { %4780 = vmatprep.subr.bf16.mxu1 %v5567_v34  ;;  %1713 = vmatprep.mubr.bf16.mxu0 %v6252_v16  ;;  %v5590_v34 = vld [vmem:[%s7338_s6 + $0x1a8] sm:$0xff]   ;;  %v6317_v24 = vpack.c.bf16 %v1187_v9, %v1185_v39  ;;  %v1189_v38 = vrot.slane %v6292_v46, 7  ;;  %v1298_v42 = vrot.slane %v6292_v46, 1  ;;  %v6328_v22 = vsub.f32 %v4498_v29, %v961_v13  ;;  %v5595_v59 = vld [vmem:[%s7338_s6 + $0x1f8] sm:$0xff]   ;;  %v5573_v9 = vld [vmem:[%s7338_s6 + $0x120] sm:$0xff]  }
  0x52   : > { %4924 = vmatprep.subr.bf16.mxu0 %v5589_v12  ;;  %v1296_v39 = vsel %vm1278_vm4, %v1294_v55, %v1295_v58  ;;  %v1301_v11 = vrot.slane %v6298_v27, 1  ;;  %v1191_v17 = vrot.slane %v6245_v19, 7  ;;  %v4502_v32 = vunpack.c.h.bf16 %v6236_v54 }
  0x53   : > { %4925 = vmatpush3.bf16.msra.mxu0 %v5590_v34  ;;  %v1192_v12 = vrot.slane %v6298_v27, 7  ;;  %v1303_v25 = vrot.slane %v6315_v41, 1  ;;  %v4506_v54 = vunpack.c.h.bf16 %v6028_v37  ;;  %v1304_v20 = vrot.slane %v6328_v22, 1 }
  0x54   : > { %4781 = vmatpush3.bf16.msra.mxu1 %v5568_v62  ;;  %v1306_v62 = vrot.slane %v6308_v6, 1  ;;  %4926 = vmatprep.subr.bf16.mxu0 %v5593_v10  ;;  %v1190_v46 = vsel %vm1169_vm0, %v1188_v47, %v1189_v38  ;;  %v1299_v55 = vsel %vm1278_vm4, %v1297_v33, %v1298_v42  ;;  %v1195_v29 = vrot.slane %v6328_v22, 7 }
  0x55   : > { %4782 = vmatprep.subr.bf16.mxu1 %v5569_v53  ;;  %v6365_v53 = vsub.f32 %v4510_v40, %v6071_v21  ;;  %v1312_v34 = vrot.slane %v6117_v3, 1  ;;  %v6372_v10 = vpack.c.bf16 %v1295_v58, %v1296_v39  ;;  %v6374_v13 = vsub.f32 %v4502_v32, %v925_v26  ;;  %v5574_v40 = vld [vmem:[%s7338_s6 + $0xe0] sm:$0xff]   ;;  %v5596_v26 = vld [vmem:[%s7338_s6 + $0x1b8] sm:$0xff]  }
  0x56   : > { %v1309_v37 = vrot.slane %v6271_v51, 1  ;;  %v1315_v21 = vrot.slane %v5846_v43, 1  ;;  %v1197_v58 = vrot.slane %v6308_v6, 7  ;;  %v1316_v38 = vrot.slane %v5848_v44, 1 }
  0x57   : > { %5183 = vmatmul.mubr.msk.bf16.gmra.mrb[20].mxu1 %vm6171_vm5, %v6286_v45  ;;  %3919 = vmatmul.mubr.msk.bf16.gmra.mrb[20].mxu0 %vm5920_vm3, %v6317_v24  ;;  %v1313_v33 = vrot.slane %v6365_v53, 1  ;;  %v6390_v43 = vpack.c.bf16 %v1190_v46, %v1188_v47  ;;  %v6392_v39 = vpack.c.bf16 %v1298_v42, %v1299_v55  ;;  %v1319_v32 = vrot.slane %v5902_v7, 1 }
  0x58   : > { %5186 = vmatprep.mubr.msk.bf16.mxu1 %vm6171_vm5, %v6306_v23  ;;  %1721 = vmatprep.mubr.bf16.mxu0 %v6324_v63  ;;  %v1302_v44 = vsel %vm1278_vm4, %v1300_v61, %v1301_v11  ;;  %v6406_v47 = vpack.c.bf16 %v6298_v27, %v6245_v19  ;;  %v1193_v42 = vsel %vm1169_vm0, %v1191_v17, %v1192_v12  ;;  %v1198_v46 = vrot.slane %v6374_v13, 7  ;;  %v5592_v19 = vld [vmem:[%s7338_s6 + $0xf8] sm:$0xff]  }
  0x59   : > { %4783 = vmatpush3.bf16.msra.mxu1 %v5570_v5  ;;  %4927 = vmatpush3.bf16.msra.mxu0 %v5594_v50  ;;  %v6382_v5 = vsub.f32 %v4506_v54, %v6198_v56  ;;  %v5579_v56 = vld [vmem:[%s7338_s6 + $0x128] sm:$0xff]   ;;  %v1314_v50 = vsel %vm1278_vm4, %v1312_v34, %v1313_v33  ;;  %v1317_v61 = vsel %vm1278_vm4, %v1315_v21, %v1316_v38  ;;  %v1321_v55 = vrot.slane %v5975_v14, 1 }
  0x5a   : > { %4784 = vmatprep.subr.bf16.mxu1 %v5571_v52  ;;  %4928 = vmatprep.subr.bf16.mxu0 %v5595_v59  ;;  %v1318_v52 = vrot.slane %v5894_v0, 1  ;;  %v1305_v0 = vsel %vm1278_vm4, %v1303_v25, %v1304_v20  ;;  %v6415_v7 = vpack.c.bf16 %v1313_v33, %v1314_v50  ;;  %v5580_v59 = vld [vmem:[%s7338_s6 + $0xe8] sm:$0xff]   ;;  %v6427_v25 = vpack.c.bf16 %v1316_v38, %v1317_v61  ;;  %v5585_v33 = vld [vmem:[%s7338_s6 + $0x130] sm:$0xff]  }
  0x5b   : > { %v1310_v12 = vrot.slane %v6382_v5, 1  ;;  %v1322_v34 = vrot.slane %v5977_v15, 1  ;;  %v1324_v21 = vrot.slane %v6034_v48, 1  ;;  %v1325_v38 = vrot.slane %v6036_v4, 1 }
  0x5c   : > { %v1320_v54 = vsel %vm1278_vm4, %v1318_v52, %v1319_v32  ;;  %v1203_v52 = vrot.slane %v6117_v3, 7  ;;  %v1204_v14 = vrot.slane %v6365_v53, 7  ;;  %v6455_v48 = vpack.c.bf16 %v1301_v11, %v1302_v44  ;;  %v5591_v11 = vld [vmem:[%s7338_s6 + $0x138] sm:$0xff]  }
  0x5d   : > { %4785 = vmatpush3.bf16.msra.mxu1 %v5572_v30  ;;  %v1307_v30 = vrot.slane %v6374_v13, 1  ;;  %4929 = vmatpush3.bf16.msra.mxu0 %v5596_v26  ;;  %v6448_v26 = vpack.c.bf16 %v6365_v53, %v6117_v3  ;;  %v1323_v15 = vsel %vm1278_vm4, %v1321_v55, %v1322_v34  ;;  %v6466_v3 = vpack.c.bf16 %v1193_v42, %v1191_v17 }
  0x5e   : > { %4786 = vmatprep.subr.bf16.mxu1 %v5573_v9  ;;  %v6429_v9 = vpack.c.bf16 %v1319_v32, %v1320_v54  ;;  %v6460_v4 = vpack.c.bf16 %v1322_v34, %v1323_v15  ;;  %v1326_v32 = vsel %vm1278_vm4, %v1324_v21, %v1325_v38  ;;  %v1205_v50 = vsel %vm1169_vm0, %v1203_v52, %v1204_v14  ;;  %v7392_v34 = vld [vmem:[#allocation7_spill] sm:$0xff]  ;;  %v7393_v21 = vld [vmem:[#allocation10_spill] sm:$0xff]  ;;  %v7394_v15 = vld [vmem:[#allocation8_spill] sm:$0xff] }
  0x5f   : > { %5187 = vmatmul.mubr.msk.bf16.gmra.mrb[24].mxu1 %vm6171_vm5, %v6372_v10  ;;  %3923 = vmatmul.mubr.msk.bf16.gmra.mrb[24].mxu0 %vm5920_vm3, %v6390_v43  ;;  %v6470_v53 = vpack.c.bf16 %v1304_v20, %v1305_v0  ;;  %v6472_v27 = vpack.c.bf16 %v1325_v38, %v1326_v32  ;;  %v6481_v44 = vpack.c.bf16 %v6328_v22, %v6315_v41  ;;  %v5597_v20 = vld [vmem:[%s7338_s6 + $0x140] sm:$0xff]   ;;  %v7386_v42 = vrot.slane %v6315_v41, 7  ;;  %v7395_v32 = vld [vmem:[#allocation9_spill] sm:$0xff] }
  0x60   : > { %5190 = vmatprep.mubr.msk.bf16.mxu1 %vm6171_vm5, %v6392_v39  ;;  %1729 = vmatprep.mubr.bf16.mxu0 %v6406_v47  ;;  %v1308_v17 = vsel %vm1278_vm4, %v1306_v62, %v1307_v30  ;;  %v1311_v61 = vsel %vm1278_vm4, %v1309_v37, %v1310_v12  ;;  %v6520_v22 = vpack.c.bf16 %v6374_v13, %v6308_v6  ;;  %v1200_v13 = vrot.slane %v6271_v51, 7 }
  0x61   : > { %4787 = vmatpush3.bf16.msra.mxu1 %v5574_v40  ;;  %v5586_v40 = vld [vmem:[%s7338_s6 + $0xf0] sm:$0xff]   ;;  %v1196_v0 = vsel %vm1169_vm0, %v7386_v42, %v1195_v29  ;;  %v6510_v54 = vpack.c.bf16 %v1307_v30, %v1308_v17  ;;  %v7387_v62 = vmov %v7386_v42  ;;  %v6516_v55 = vpack.c.bf16 %v1310_v12, %v1311_v61  ;;  %v6632_v12 = vld [vmem:[%s7338_s6 + $0x200] sm:$0xff]   ;;  %v7398_v42 = vld [vmem:[#allocation13_spill] sm:$0xff] }
  0x62   : > { %4788 = vmatprep.subr.bf16.mxu1 %v5579_v56  ;;  %v6477_v56 = vpack.c.bf16 %v1205_v50, %v1203_v52  ;;  %v1199_v41 = vsel %vm1169_vm0, %v1197_v58, %v1198_v46  ;;  %v6541_v29 = vpack.c.bf16 %v6382_v5, %v6271_v51  ;;  %v1201_v30 = vrot.slane %v6382_v5, 7  ;;  %v5598_v51 = vld [vmem:[%s7338_s6 + $0x148] sm:$0xff]   ;;  %v5601_v5 = vld [vmem:[%s7338_s6 + $0x160] sm:$0xff]  }
  0x63   : > { %v6537_v37 = vpack.c.bf16 %v1199_v41, %v1197_v58 }
  0x64   : > { %v1202_v6 = vsel %vm1169_vm0, %v1200_v13, %v1201_v30 }
  0x65   : > { %4789 = vmatpush3.bf16.msra.mxu1 %v5580_v59  ;;  %v6514_v59 = vpack.c.bf16 %v1196_v0, %v7387_v62  ;;  %v6556_v58 = vpack.c.bf16 %v1202_v6, %v1200_v13  ;;  %v7399_v62 = vmov 0.0|0.0  }
  0x66   : > { %4790 = vmatprep.subr.bf16.mxu1 %v5585_v33 }
  0x67   : > { %5191 = vmatmul.mubr.msk.bf16.gmra.mrb[28].mxu1 %vm6171_vm5, %v6455_v48  ;;  %3927 = vmatmul.mubr.msk.bf16.gmra.mrb[28].mxu0 %vm5920_vm3, %v6466_v3 }
  0x68   : > { %5194 = vmatprep.mubr.msk.bf16.mxu1 %vm6171_vm5, %v6470_v53  ;;  %1737 = vmatprep.mubr.bf16.mxu0 %v6481_v44 }
  0x69   : > { %4791 = vmatpush3.bf16.msra.mxu1 %v5586_v40 }
  0x6a   : > { %4792 = vmatprep.subr.bf16.mxu1 %v5591_v11  ;;  %v7397_v11 = vld [vmem:[#allocation12_spill] sm:$0xff] }
  0x6d   : > { %4793 = vmatpush3.bf16.msra.mxu1 %v5592_v19 }
  0x6e   : > { %5210 = vmatprep.subr.bf16.mxu1 %v5597_v20 }
  0x6f   : > { %5195 = vmatmul.mubr.msk.bf16.gmra.mrb[32].mxu1 %vm6171_vm5, %v6510_v54  ;;  %3931 = vmatmul.mubr.msk.bf16.gmra.mrb[32].mxu0 %vm5920_vm3, %v6514_v59 }
  0x70   : > { %5198 = vmatprep.mubr.msk.bf16.mxu1 %vm6171_vm5, %v6516_v55  ;;  %1745 = vmatprep.mubr.bf16.mxu0 %v6520_v22 }
  0x77   : > { %5199 = vmatmul.mubr.msk.bf16.gmra.mrb[36].mxu1 %vm6171_vm5, %v6415_v7  ;;  %3935 = vmatmul.mubr.msk.bf16.gmra.mrb[36].mxu0 %vm5920_vm3, %v6537_v37 }
  0x78   : > { %5202 = vmatprep.mubr.msk.bf16.mxu1 %vm6171_vm5, %v6427_v25  ;;  %1753 = vmatprep.mubr.bf16.mxu0 %v6541_v29 }
  0x7f   : > { %5203 = vmatmul.mubr.msk.bf16.gmra.mrb[40].mxu1 %vm6171_vm5, %v6429_v9  ;;  %3939 = vmatmul.mubr.msk.bf16.gmra.mrb[40].mxu0 %vm5920_vm3, %v6556_v58 }
  0x80   : > { %5206 = vmatprep.mubr.msk.bf16.mxu1 %vm6171_vm5, %v6460_v4  ;;  %1761 = vmatprep.mubr.bf16.mxu0 %v6448_v26 }
  0x87   : > { %5207 = vmatmul.mubr.msk.bf16.gmra.mrb[44].mxu1 %vm6171_vm5, %v6472_v27  ;;  %3943 = vmatmul.mubr.msk.bf16.gmra.mrb[44].mxu0 %vm5920_vm3, %v6477_v56 }
  0x88   : > { %2220 = vmatprep.mubr.bf16.mxu1 %v5971_v1  ;;  %2767 = vmatprep.mubr.bf16.mxu0 %v6043_v8  ;;  %v5599_v1 = vld [vmem:[%s7338_s6 + $0x150] sm:$0xff]  }
  0x8f   : > { %4083 = vmatmul.mubr.msk.bf16.vlgmr.msra.gmra.mrb[48].mxu1 %vm5920_vm3, %v6000_v28  ;;  %4267 = vmatmul.mubr.msk.bf16.vlgmr.msra.gmra.mrb[48].mxu0 %vm5920_vm3, %v6073_v60  ;;  %v5600_v28 = vld [vmem:[%s7338_s6 + $0x158] sm:$0xff]  }
  0x90   : > { %5211 = vmatpush3.bf16.msra.mxu1 %v5597_v20  ;;  %2228 = vmatprep.mubr.bf16.mxu1 %v6043_v8  ;;  %v7388_v8 = vld [vmem:[#allocation14_spill] sm:$0xff] }
  0x91   : > { %2775 = vmatprep.mubr.bf16.mxu0 %v6123_v31  ;;  %5212 = vmatprep.subr.bf16.mxu1 %v5598_v51 }
  0x94   : > { %5213 = vmatpush3.bf16.msra.mxu1 %v5598_v51 }
  0x95   : > { %5214 = vmatprep.subr.bf16.mxu1 %v5599_v1 }
  0x97   : > { %4087 = vmatmul.mubr.msk.bf16.gmra.mrb[52].mxu1 %vm5920_vm3, %v6073_v60  ;;  %4271 = vmatmul.mubr.msk.bf16.gmra.mrb[52].mxu0 %vm5920_vm3, %v6150_v36  ;;  %v5602_v60 = vld [vmem:[%s7338_s6 + $0x168] sm:$0xff]  }
  0x98   : > { %2236 = vmatprep.mubr.bf16.mxu1 %v6123_v31  ;;  %2783 = vmatprep.mubr.bf16.mxu0 %v7388_v8  ;;  %v5603_v31 = vld [vmem:[%s7338_s6 + $0x170] sm:$0xff]  }
  0x99   : > { %5215 = vmatpush3.bf16.msra.mxu1 %v5599_v1 }
  0x9a   : > { %5216 = vmatprep.subr.bf16.mxu1 %v5600_v28 }
  0x9d   : > { %5217 = vmatpush3.bf16.msra.mxu1 %v5600_v28 }
  0x9e   : > { %5218 = vmatprep.subr.bf16.mxu1 %v5601_v5 }
  0x9f   : > { %4091 = vmatmul.mubr.msk.bf16.gmra.mrb[56].mxu1 %vm5920_vm3, %v6150_v36  ;;  %4275 = vmatmul.mubr.msk.bf16.gmra.mrb[56].mxu0 %vm5920_vm3, %v6241_v49  ;;  %v5604_v36 = vld [vmem:[%s7338_s6 + $0x178] sm:$0xff]  }
  0xa0   : > { %2244 = vmatprep.mubr.bf16.mxu1 %v7388_v8  ;;  %2791 = vmatprep.mubr.bf16.mxu0 %v6252_v16  ;;  %v7400_v8 = vld [vmem:[#allocation2_spill] sm:$0xff] }
  0xa1   : > { %5219 = vmatpush3.bf16.msra.mxu1 %v5601_v5 }
  0xa2   : > { %5220 = vmatprep.subr.bf16.mxu1 %v5602_v60 }
  0xa5   : > { %5221 = vmatpush3.bf16.msra.mxu1 %v5602_v60 }
  0xa6   : > { %5222 = vmatprep.subr.bf16.mxu1 %v5603_v31 }
  0xa7   : > { %4095 = vmatmul.mubr.msk.bf16.gmra.mrb[60].mxu1 %vm5920_vm3, %v6241_v49  ;;  %4279 = vmatmul.mubr.msk.bf16.gmra.mrb[60].mxu0 %vm5920_vm3, %v6317_v24  ;;  %v7389_v49 = vld [vmem:[#allocation4_spill] sm:$0xff] }
  0xa8   : > { %2252 = vmatprep.mubr.bf16.mxu1 %v6252_v16  ;;  %2799 = vmatprep.mubr.bf16.mxu0 %v6324_v63  ;;  %v7390_v16 = vld [vmem:[#allocation5_spill] sm:$0xff] }
  0xa9   : > { %5223 = vmatpush3.bf16.msra.mxu1 %v5603_v31 }
  0xaa   : > { %5224 = vmatprep.subr.bf16.mxu1 %v5604_v36 }
  0xad   : > { %5225 = vmatpush3.bf16.msra.mxu1 %v5604_v36 }
  0xae   : > { %5258 = vmatprep.subr.bf16.mxu1 %v6632_v12 }
  0xaf   : > { %4099 = vmatmul.mubr.msk.bf16.gmra.mrb[64].mxu1 %vm5920_vm3, %v6317_v24  ;;  %4283 = vmatmul.mubr.msk.bf16.gmra.mrb[64].mxu0 %vm5920_vm3, %v6390_v43  ;;  %v7391_v24 = vld [vmem:[#allocation6_spill] sm:$0xff] }
  0xb0   : > { %2260 = vmatprep.mubr.bf16.mxu1 %v6324_v63  ;;  %2807 = vmatprep.mubr.bf16.mxu0 %v6406_v47  ;;  %v801_v63 = vld [vmem:[%s6690_s27] sm:$0xff] }
  0xb7   : > { %4103 = vmatmul.mubr.msk.bf16.gmra.mrb[68].mxu1 %vm5920_vm3, %v6390_v43  ;;  %4287 = vmatmul.mubr.msk.bf16.gmra.mrb[68].mxu0 %vm5920_vm3, %v6466_v3  ;;  %v802_v43 = vld [vmem:[%s6690_s27 + $0x8] sm:$0xff] }
  0xb8   : > { %2268 = vmatprep.mubr.bf16.mxu1 %v6406_v47  ;;  %2815 = vmatprep.mubr.bf16.mxu0 %v6481_v44  ;;  %v839_v47 = vunpack.c.l.bf16 %v801_v63  ;;  %v841_v46 = vunpack.c.l.bf16 %v802_v43  ;;  %v5606_v63 = vld [vmem:[%s7338_s6 + $0x208] sm:$0xff]  }
  0xba   : > { %v943_v33 = vmul.f32 0.25, %v839_v47  ;;  %v945_v38 = vmul.f32 0.25, %v841_v46 }
  0xbc   : > { %v975_v40 = vadd.f32 %v943_v33, %v7394_v15  ;;  %v977_v50 = vadd.f32 %v945_v38, %v7395_v32 }
  0xbf   : > { %4107 = vmatmul.mubr.msk.bf16.gmra.mrb[72].mxu1 %vm5920_vm3, %v6466_v3  ;;  %4291 = vmatmul.mubr.msk.bf16.gmra.mrb[72].mxu0 %vm5920_vm3, %v6514_v59  ;;  %v7396_v3 = vld [vmem:[#allocation11_spill] sm:$0xff] }
  0xc0   : > { %2276 = vmatprep.mubr.bf16.mxu1 %v6481_v44  ;;  %2823 = vmatprep.mubr.bf16.mxu0 %v6520_v22 }
  0xc7   : > { %4111 = vmatmul.mubr.msk.bf16.gmra.mrb[76].mxu1 %vm5920_vm3, %v6514_v59  ;;  %4295 = vmatmul.mubr.msk.bf16.gmra.mrb[76].mxu0 %vm5920_vm3, %v6537_v37 }
  0xc8   : > { %2284 = vmatprep.mubr.bf16.mxu1 %v6520_v22  ;;  %2831 = vmatprep.mubr.bf16.mxu0 %v6541_v29 }
  0xcf   : > { %4115 = vmatmul.mubr.msk.bf16.gmra.mrb[80].mxu1 %vm5920_vm3, %v6537_v37  ;;  %4299 = vmatmul.mubr.msk.bf16.gmra.mrb[80].mxu0 %vm5920_vm3, %v6556_v58 }
  0xd0   : > { %2292 = vmatprep.mubr.bf16.mxu1 %v6541_v29  ;;  %2839 = vmatprep.mubr.bf16.mxu0 %v6448_v26 }
  0xd7   : > { %4119 = vmatmul.mubr.msk.bf16.gmra.mrb[84].mxu1 %vm5920_vm3, %v6556_v58  ;;  %4303 = vmatmul.mubr.msk.bf16.gmra.mrb[84].mxu0 %vm5920_vm3, %v6477_v56 }
  0xd8   : > { %2300 = vmatprep.mubr.bf16.mxu1 %v6448_v26  ;;  %2847 = vmatprep.mubr.bf16.mxu0 %v7389_v49  ;;  %v4626_v26 = vld [vmem:[%s5795_s23 + $0x78] sm:$0xff]  }
  0xd9   : > { %v4529_v52 = vunpack.c.l.bf16 %v4626_v26  ;;  %v4530_v14 = vunpack.c.h.bf16 %v4626_v26 }
  0xdb   : > { %v6720_v44 = vsub.f32 %v4530_v14, %v977_v50 }
  0xdd   : > { %v1219_v20 = vrot.slane %v6720_v44, 7 }
  0xdf   : > { %4123 = vmatmul.mubr.msk.bf16.gmra.mrb[88].mxu1 %vm5920_vm3, %v6477_v56  ;;  %4307 = vmatmul.mubr.msk.bf16.gmra.mrb[88].mxu0 %vm5920_vm3, %v7390_v16  ;;  %v6718_v56 = vsub.f32 %v4529_v52, %v975_v40 }
  0xe0   : > { %2308 = vmatprep.mubr.bf16.mxu1 %v7389_v49  ;;  %2855 = vmatprep.mubr.bf16.mxu0 %v7391_v24 }
  0xe1   : > { %v1436_v19 = vpack.c.bf16 %v6720_v44, %v6718_v56  ;;  %v1218_v17 = vrot.slane %v6718_v56, 7 }
  0xe3   : > { %v1220_v0 = vsel %vm1169_vm0, %v1218_v17, %v1219_v20 }
  0xe4   : > { %v4142_v61 = vpack.c.bf16 %v1220_v0, %v1218_v17 }
  0xe7   : > { %4127 = vmatmul.mubr.msk.bf16.gmra.mrb[92].mxu1 %vm5920_vm3, %v7390_v16  ;;  %4311 = vmatmul.mubr.msk.bf16.gmra.mrb[92].mxu0 %vm5920_vm3, %v7392_v34 }
  0xe8   : > { %2316 = vmatprep.mubr.bf16.mxu1 %v7391_v24  ;;  %2863 = vmatprep.mubr.bf16.mxu0 %v7393_v21 }
  0xef   : > { %4131 = vmatmul.mubr.msk.bf16.gmra.mrb[96].mxu1 %vm5920_vm3, %v7392_v34  ;;  %4315 = vmatmul.mubr.msk.bf16.gmra.mrb[96].mxu0 %vm5920_vm3, %v7396_v3  ;;  %v5607_v34 = vld [vmem:[%s7338_s6 + $0x210] sm:$0xff]  }
  0xf0   : > { %2324 = vmatprep.mubr.bf16.mxu1 %v7393_v21  ;;  %2871 = vmatprep.mubr.bf16.mxu0 %v7397_v11 }
  0xf7   : > { %4135 = vmatmul.mubr.msk.bf16.gmra.mrb[100].mxu1 %vm5920_vm3, %v7396_v3  ;;  %4319 = vmatmul.mubr.msk.bf16.gmra.mrb[100].mxu0 %vm5920_vm3, %v7398_v42 }
  0xf8   : > { %2332 = vmatprep.mubr.bf16.mxu1 %v7397_v11  ;;  %2879 = vmatprep.mubr.bf16.mxu0 %v1436_v19 }
  0xff   : > { %4139 = vmatmul.mubr.msk.bf16.gmra.mrb[104].mxu1 %vm5920_vm3, %v7398_v42  ;;  %4323 = vmatmul.mubr.msk.bf16.gmra.mrb[104].mxu0 %vm5920_vm3, %v4142_v61 }
 0x100   : > { %2340 = vmatprep.mubr.bf16.mxu1 %v1436_v19  ;;  %2887 = vmatprep.mubr.bf16.mxu0 %v7399_v62  ;;  %v5609_v19 = vld [vmem:[%s7338_s6 + $0x220] sm:$0xff]  }
 0x102   : > { %v4730_v59 = vpop.f32.mrb[0].mxu1  ;;  %v4658_v22 = vpop.f32.mrb[0].mxu0 }
 0x103   : > { %v4731_v41 = vpop.f32.mrb[1].mxu1  ;;  %v4659_v37 = vpop.f32.mrb[1].mxu0 }
 0x104   : > { %v6740_v29 = vadd.f32 %v4731_v41, %v4730_v59  ;;  %v4733_v13 = vpop.f32.mrb[2].mxu1  ;;  %v6742_v30 = vadd.f32 %v4659_v37, %v4658_v22  ;;  %v4661_v6 = vpop.f32.mrb[2].mxu0  ;;  %v5610_v22 = vld [vmem:[%s7338_s6 + $0x228] sm:$0xff]  }
 0x105   : > { %v4734_v58 = vpop.f32.mrb[3].mxu1  ;;  %v4662_v51 = vpop.f32.mrb[3].mxu0 }
 0x106   : > { %v6744_v1 = vadd.f32 %v4734_v58, %v4733_v13  ;;  %v6746_v28 = vadd.f32 %v4662_v51, %v4661_v6  ;;  %v5611_v51 = vld [vmem:[%s7338_s6 + $0x230] sm:$0xff]  }
 0x107   : > { %4143 = vmatmul.mubr.msk.bf16.gmra.mrb[108].mxu1 %vm5920_vm3, %v4142_v61  ;;  %4327 = vmatmul.mubr.msk.bf16.gmra.mrb[108].mxu0 %vm5920_vm3, %v7400_v8 }
 0x108   : > { %5226 = vmatprep.mubr.msk.bf16.mxu1 %vm6171_vm5, %v6214_v57 }
 0x10a   : > { %v4736_v5 = vpop.f32.mrb[4].mxu1  ;;  %v4664_v31 = vpop.f32.mrb[4].mxu0 }
 0x10b   : > { %v4737_v60 = vpop.f32.mrb[5].mxu1  ;;  %v4665_v16 = vpop.f32.mrb[5].mxu0 }
 0x10c   : > { %v6756_v36 = vadd.f32 %v4737_v60, %v4736_v5  ;;  %v4739_v49 = vpop.f32.mrb[6].mxu1  ;;  %v6761_v43 = vadd.f32 %v4665_v16, %v4664_v31  ;;  %v4667_v18 = vpop.f32.mrb[6].mxu0 }
 0x10d   : > { %v4740_v24 = vpop.f32.mrb[7].mxu1  ;;  %v4668_v46 = vpop.f32.mrb[7].mxu0 }
 0x10e   : > { %v6763_v47 = vadd.f32 %v4740_v24, %v4739_v49  ;;  %v6768_v57 = vadd.f32 %v4668_v46, %v4667_v18  ;;  %v5612_v49 = vld [vmem:[%s7338_s6 + $0x238] sm:$0xff]  }
 0x10f   : > { %5227 = vmatmul.mubr.msk.bf16.vlgmr.msra.gmra.mrb[16].mxu1 %vm6171_vm5, %v6227_v35 }
 0x110   : > { %5259 = vmatpush3.bf16.msra.mxu1 %v6632_v12  ;;  %5230 = vmatprep.mubr.msk.bf16.mxu1 %vm6171_vm5, %v6286_v45  ;;  %v5608_v12 = vld [vmem:[%s7338_s6 + $0x218] sm:$0xff]  }
 0x111   : > { %5260 = vmatprep.subr.bf16.mxu1 %v5606_v63 }
 0x112   : > { %v4742_v21 = vpop.f32.mrb[8].mxu1  ;;  %v4670_v38 = vpop.f32.mrb[8].mxu0 }
 0x113   : > { %v4743_v33 = vpop.f32.mrb[9].mxu1  ;;  %v4671_v14 = vpop.f32.mrb[9].mxu0 }
 0x114   : > { %v6777_v26 = vadd.f32 %v4743_v33, %v4742_v21  ;;  %v4745_v52 = vpop.f32.mrb[10].mxu1  ;;  %5261 = vmatpush3.bf16.msra.mxu1 %v5606_v63  ;;  %v6782_v40 = vadd.f32 %v4671_v14, %v4670_v38  ;;  %v4673_v32 = vpop.f32.mrb[10].mxu0  ;;  %v5613_v63 = vld [vmem:[%s7340_s8 + $0x40] sm:$0xff]  }
 0x115   : > { %v4746_v15 = vpop.f32.mrb[11].mxu1  ;;  %5262 = vmatprep.subr.bf16.mxu1 %v5607_v34  ;;  %v4674_v3 = vpop.f32.mrb[11].mxu0  ;;  %5050 = vmatprep.subr.bf16.mxu0 %v5613_v63  ;;  %v5614_v38 = vld [vmem:[%s7340_s8] sm:$0xff]  }
 0x116   : > { %v6784_v50 = vadd.f32 %v4746_v15, %v4745_v52  ;;  %v6789_v11 = vadd.f32 %v4674_v3, %v4673_v32  ;;  %5051 = vmatpush3.bf16.msra.mxu0 %v5614_v38 }
 0x117   : > { %5231 = vmatmul.mubr.msk.bf16.gmra.mrb[20].mxu1 %vm6171_vm5, %v6306_v23 }
 0x118   : > { %5234 = vmatprep.mubr.msk.bf16.mxu1 %vm6171_vm5, %v6372_v10  ;;  %5263 = vmatpush3.bf16.msra.mxu1 %v5607_v34 }
 0x119   : > { %5264 = vmatprep.subr.bf16.mxu1 %v5608_v12 }
 0x11a   : > { %v4748_v17 = vpop.f32.mrb[12].mxu1  ;;  %v4676_v42 = vpop.f32.mrb[12].mxu0 }
 0x11b   : > { %v4749_v20 = vpop.f32.mrb[13].mxu1  ;;  %v4677_v62 = vpop.f32.mrb[13].mxu0 }
 0x11c   : > { %v6797_v0 = vadd.f32 %v4749_v20, %v4748_v17  ;;  %v4751_v61 = vpop.f32.mrb[14].mxu1  ;;  %5265 = vmatpush3.bf16.msra.mxu1 %v5608_v12  ;;  %v6802_v41 = vadd.f32 %v4677_v62, %v4676_v42  ;;  %v4679_v37 = vpop.f32.mrb[14].mxu0  ;;  %v5615_v17 = vld [vmem:[%s7340_s8 + $0x48] sm:$0xff]   ;;  %v1327_v42 = vrot.slane %v6718_v56, 1 }
 0x11d   : > { %v4752_v59 = vpop.f32.mrb[15].mxu1  ;;  %5266 = vmatprep.subr.bf16.mxu1 %v5609_v19  ;;  %v4680_v6 = vpop.f32.mrb[15].mxu0  ;;  %5052 = vmatprep.subr.bf16.mxu0 %v5615_v17 }
 0x11e   : > { %v6804_v13 = vadd.f32 %v4752_v59, %v4751_v61  ;;  %v6809_v58 = vadd.f32 %v4680_v6, %v4679_v37  ;;  %v1328_v61 = vrot.slane %v6720_v44, 1  ;;  %v5616_v6 = vld [vmem:[%s7340_s8 + $0x8] sm:$0xff]  }
 0x11f   : > { %5235 = vmatmul.mubr.msk.bf16.gmra.mrb[24].mxu1 %vm6171_vm5, %v6392_v39  ;;  %5053 = vmatpush3.bf16.msra.mxu0 %v5616_v6 }
 0x120   : > { %5238 = vmatprep.mubr.msk.bf16.mxu1 %vm6171_vm5, %v6455_v48  ;;  %5267 = vmatpush3.bf16.msra.mxu1 %v5609_v19  ;;  %v1329_v56 = vsel %vm1278_vm4, %v1327_v42, %v1328_v61 }
 0x121   : > { %5268 = vmatprep.subr.bf16.mxu1 %v5610_v22  ;;  %v6875_v44 = vpack.c.bf16 %v1328_v61, %v1329_v56  ;;  %v5621_v56 = vld [vmem:[%s7340_s8 + $0x60] sm:$0xff]  }
 0x122   : > { %v4682_v8 = vpop.f32.mrb[16].mxu0 }
 0x123   : > { %v4683_v5 = vpop.f32.mrb[17].mxu0 }
 0x124   : > { %5269 = vmatpush3.bf16.msra.mxu1 %v5610_v22  ;;  %v6817_v60 = vadd.f32 %v4683_v5, %v4682_v8  ;;  %v4685_v31 = vpop.f32.mrb[18].mxu0 }
 0x125   : > { %5270 = vmatprep.subr.bf16.mxu1 %v5611_v51  ;;  %v4686_v16 = vpop.f32.mrb[19].mxu0 }
 0x126   : > { %v6825_v24 = vadd.f32 %v4686_v16, %v4685_v31 }
 0x127   : > { %5239 = vmatmul.mubr.msk.bf16.gmra.mrb[28].mxu1 %vm6171_vm5, %v6470_v53 }
 0x128   : > { %5242 = vmatprep.mubr.msk.bf16.mxu1 %vm6171_vm5, %v6510_v54  ;;  %5271 = vmatpush3.bf16.msra.mxu1 %v5611_v51 }
 0x129   : > { %5272 = vmatprep.subr.bf16.mxu1 %v5612_v49 }
 0x12a   : > { %v4688_v18 = vpop.f32.mrb[20].mxu0 }
 0x12b   : > { %v4689_v46 = vpop.f32.mrb[21].mxu0 }
 0x12c   : > { %5273 = vmatpush3.bf16.msra.mxu1 %v5612_v49  ;;  %v6833_v34 = vadd.f32 %v4689_v46, %v4688_v18  ;;  %v4691_v21 = vpop.f32.mrb[22].mxu0  ;;  %v5617_v18 = vld [vmem:[%s7340_s8 + $0x50] sm:$0xff]  }
 0x12d   : > { %v4692_v33 = vpop.f32.mrb[23].mxu0  ;;  %5054 = vmatprep.subr.bf16.mxu0 %v5617_v18 }
 0x12e   : > { %v6841_v52 = vadd.f32 %v4692_v33, %v4691_v21 }
 0x12f   : > { %5243 = vmatmul.mubr.msk.bf16.gmra.mrb[32].mxu1 %vm6171_vm5, %v6516_v55 }
 0x130   : > { %5246 = vmatprep.mubr.msk.bf16.mxu1 %vm6171_vm5, %v6415_v7 }
 0x132   : > { %v4694_v14 = vpop.f32.mrb[24].mxu0 }
 0x133   : > { %v4695_v15 = vpop.f32.mrb[25].mxu0 }
 0x134   : > { %v6846_v12 = vadd.f32 %v4695_v15, %v4694_v14  ;;  %v4697_v32 = vpop.f32.mrb[26].mxu0  ;;  %v5618_v15 = vld [vmem:[%s7340_s8 + $0x10] sm:$0xff]  }
 0x135   : > { %v4698_v3 = vpop.f32.mrb[27].mxu0  ;;  %5055 = vmatpush3.bf16.msra.mxu0 %v5618_v15  ;;  %v5624_v15 = vld [vmem:[%s7340_s8 + $0x28] sm:$0xff]  }
 0x136   : > { %v6851_v19 = vadd.f32 %v4698_v3, %v4697_v32 }
 0x137   : > { %5247 = vmatmul.mubr.msk.bf16.gmra.mrb[36].mxu1 %vm6171_vm5, %v6427_v25 }
 0x138   : > { %5250 = vmatprep.mubr.msk.bf16.mxu1 %vm6171_vm5, %v6429_v9 }
 0x13a   : > { %v4700_v20 = vpop.f32.mrb[28].mxu0 }
 0x13b   : > { %v4701_v62 = vpop.f32.mrb[29].mxu0 }
 0x13c   : > { %v6861_v59 = vadd.f32 %v4701_v62, %v4700_v20  ;;  %v4703_v22 = vpop.f32.mrb[30].mxu0 }
 0x13d   : > { %v4704_v37 = vpop.f32.mrb[31].mxu0 }
 0x13e   : > { %v6869_v51 = vadd.f32 %v4704_v37, %v4703_v22 }
 0x13f   : > { %5251 = vmatmul.mubr.msk.bf16.gmra.mrb[40].mxu1 %vm6171_vm5, %v6460_v4 }
 0x140   : > { %5254 = vmatprep.mubr.msk.bf16.mxu1 %vm6171_vm5, %v6472_v27 }
 0x142   : > { %v4706_v8 = vpop.f32.mrb[32].mxu0 }
 0x143   : > { %v4707_v5 = vpop.f32.mrb[33].mxu0 }
 0x144   : > { %v6877_v31 = vadd.f32 %v4707_v5, %v4706_v8  ;;  %v4709_v49 = vpop.f32.mrb[34].mxu0  ;;  %v5622_v8 = vld [vmem:[%s7340_s8 + $0x20] sm:$0xff]  }
 0x145   : > { %v4710_v16 = vpop.f32.mrb[35].mxu0  ;;  %v6938_v5 = vld [vmem:[%s7339_s7] ss:$0 sm:$0xff] }
 0x146   : > { %v6882_v63 = vadd.f32 %v4710_v16, %v4709_v49 }
 0x147   : > { %5255 = vmatmul.mubr.msk.bf16.gmra.mrb[44].mxu1 %vm6171_vm5, %v6875_v44 }
 0x148   : > { %5274 = vmatprep.mubr.msk.bf16.mxu1 %vm6171_vm5, %v6227_v35 }
 0x14a   : > { %v4712_v46 = vpop.f32.mrb[36].mxu0 }
 0x14b   : > { %v4713_v21 = vpop.f32.mrb[37].mxu0 }
 0x14c   : > { %v6890_v33 = vadd.f32 %v4713_v21, %v4712_v46  ;;  %v4715_v38 = vpop.f32.mrb[38].mxu0  ;;  %v5334_v46 = vadd.f32 %v6746_v28, %v6938_v5 }
 0x14d   : > { %v4716_v14 = vpop.f32.mrb[39].mxu0 }
 0x14e   : > { %v6898_v35 = vadd.f32 %v4716_v14, %v4715_v38 }
 0x14f   : > { %5275 = vmatmul.mubr.msk.bf16.vlgmr.msra.gmra.mrb[16].mxu1 %vm6171_vm5, %v6286_v45  ;;  %v5619_v45 = vld [vmem:[%s7340_s8 + $0x58] sm:$0xff]  }
 0x150   : > { %5278 = vmatprep.mubr.msk.bf16.mxu1 %vm6171_vm5, %v6306_v23  ;;  %5056 = vmatprep.subr.bf16.mxu0 %v5619_v45 }
 0x152   : > { %v4718_v32 = vpop.f32.mrb[40].mxu0 }
 0x153   : > { %v4719_v3 = vpop.f32.mrb[41].mxu0 }
 0x154   : > { %v6903_v17 = vadd.f32 %v4719_v3, %v4718_v32  ;;  %v4721_v20 = vpop.f32.mrb[42].mxu0 }
 0x155   : > { %v4722_v42 = vpop.f32.mrb[43].mxu0 }
 0x156   : > { %v6908_v61 = vadd.f32 %v4722_v42, %v4721_v20 }
 0x157   : > { %5279 = vmatmul.mubr.msk.bf16.gmra.mrb[20].mxu1 %vm6171_vm5, %v6372_v10  ;;  %v5620_v10 = vld [vmem:[%s7340_s8 + $0x18] sm:$0xff]  }
 0x158   : > { %5282 = vmatprep.mubr.msk.bf16.mxu1 %vm6171_vm5, %v6392_v39  ;;  %5057 = vmatpush3.bf16.msra.mxu0 %v5620_v10  ;;  %v5627_v10 = vld [vmem:[%s7340_s8 + $0x78] sm:$0xff]  }
 0x159   : > { %5058 = vmatprep.subr.bf16.mxu0 %v5621_v56 }
 0x15a   : > { %v4724_v23 = vpop.f32.mrb[44].mxu0 }
 0x15b   : > { %v4725_v62 = vpop.f32.mrb[45].mxu0 }
 0x15c   : > { %v6916_v22 = vadd.f32 %v4725_v62, %v4724_v23  ;;  %v4727_v37 = vpop.f32.mrb[46].mxu0  ;;  %5059 = vmatpush3.bf16.msra.mxu0 %v5622_v8 }
 0x15d   : > { %v4728_v6 = vpop.f32.mrb[47].mxu0 }
 0x15e   : > { %v6924_v39 = vadd.f32 %v4728_v6, %v4727_v37  ;;  %v5626_v37 = vld [vmem:[%s7340_s8 + $0x30] sm:$0xff]  }
 0x15f   : > { %5283 = vmatmul.mubr.msk.bf16.gmra.mrb[24].mxu1 %vm6171_vm5, %v6455_v48  ;;  %v5623_v48 = vld [vmem:[%s7340_s8 + $0x68] sm:$0xff]  }
 0x160   : > { %5286 = vmatprep.mubr.msk.bf16.mxu1 %vm6171_vm5, %v6470_v53  ;;  %v5326_v53 = vadd.f32 %v6742_v30, %v6938_v5  ;;  %5060 = vmatprep.subr.bf16.mxu0 %v5623_v48  ;;  %v5625_v30 = vld [vmem:[%s7340_s8 + $0x70] sm:$0xff]  }
 0x161   : > { %5061 = vmatpush3.bf16.msra.mxu0 %v5624_v15 }
 0x162   : > { %v4794_v49 = vpop.f32.mrb[48].mxu1  ;;  %v4930_v18 = vpop.f32.mrb[48].mxu0  ;;  %5062 = vmatprep.subr.bf16.mxu0 %v5625_v30  ;;  %v5342_v30 = vadd.f32 %v6782_v40, %v6938_v5 }
 0x163   : > { %v4795_v16 = vpop.f32.mrb[49].mxu1  ;;  %v4931_v14 = vpop.f32.mrb[49].mxu0 }
 0x164   : > { %v4796_v21 = vadd.f32 %v4795_v16, %v4794_v49  ;;  %v4797_v38 = vpop.f32.mrb[50].mxu1  ;;  %v4932_v3 = vadd.f32 %v4931_v14, %v4930_v18  ;;  %v4933_v20 = vpop.f32.mrb[50].mxu0 }
 0x165   : > { %v4798_v32 = vpop.f32.mrb[51].mxu1  ;;  %v4934_v23 = vpop.f32.mrb[51].mxu0  ;;  %5063 = vmatpush3.bf16.msra.mxu0 %v5626_v37 }
 0x166   : > { %v5327_v42 = vadd.f32 %v5326_v53, %v4796_v21  ;;  %v4799_v45 = vadd.f32 %v4798_v32, %v4797_v38  ;;  %v4935_v28 = vadd.f32 %v4934_v23, %v4933_v20  ;;  %v5330_v53 = vadd.f32 %v6768_v57, %v6938_v5  ;;  %5064 = vmatprep.subr.bf16.mxu0 %v5627_v10 }
 0x167   : > { %5287 = vmatmul.mubr.msk.bf16.gmra.mrb[28].mxu1 %vm6171_vm5, %v6510_v54  ;;  %v5322_v54 = vadd.f32 %v6761_v43, %v6938_v5 }
 0x168   : > { %v5335_v62 = vadd.f32 %v5334_v46, %v4799_v45  ;;  %5290 = vmatprep.mubr.msk.bf16.mxu1 %vm6171_vm5, %v6516_v55  ;;  %v6962_v6 = vadd.f32 %v5327_v42, %v4932_v3  ;;  %v5628_v46 = vld [vmem:[%s7340_s8 + $0x38] sm:$0xff]  }
 0x169   : > { %5065 = vmatpush3.bf16.msra.mxu0 %v5628_v46 }
 0x16a   : > { %v4800_v56 = vpop.f32.mrb[52].mxu1  ;;  %v6969_v8 = vadd.f32 %v5335_v62, %v4935_v28  ;;  %v4936_v55 = vpop.f32.mrb[52].mxu0  ;;  %v5350_v62 = vadd.f32 %v6789_v11, %v6938_v5 }
 0x16b   : > { %v4801_v48 = vpop.f32.mrb[53].mxu1  ;;  %v4937_v18 = vpop.f32.mrb[53].mxu0 }
 0x16c   : > { %v4802_v49 = vadd.f32 %v4801_v48, %v4800_v56  ;;  %v4803_v16 = vpop.f32.mrb[54].mxu1  ;;  %v4938_v38 = vadd.f32 %v4937_v18, %v4936_v55  ;;  %v4939_v14 = vpop.f32.mrb[54].mxu0 }
 0x16d   : > { %v4804_v21 = vpop.f32.mrb[55].mxu1  ;;  %v4940_v32 = vpop.f32.mrb[55].mxu0 }
 0x16e   : > { %v5323_v43 = vadd.f32 %v5322_v54, %v4802_v49  ;;  %v4805_v15 = vadd.f32 %v4804_v21, %v4803_v16  ;;  %v4941_v3 = vadd.f32 %v4940_v32, %v4939_v14  ;;  %v5338_v16 = vadd.f32 %v6802_v41, %v6938_v5 }
 0x16f   : > { %5291 = vmatmul.mubr.msk.bf16.gmra.mrb[32].mxu1 %vm6171_vm5, %v6415_v7  ;;  %v5346_v14 = vadd.f32 %v6809_v58, %v6938_v5 }
 0x170   : > { %v5331_v57 = vadd.f32 %v5330_v53, %v4805_v15  ;;  %5294 = vmatprep.mubr.msk.bf16.mxu1 %vm6171_vm5, %v6427_v25  ;;  %v6982_v20 = vadd.f32 %v5323_v43, %v4938_v38 }
 0x172   : > { %v4806_v42 = vpop.f32.mrb[56].mxu1  ;;  %v6986_v45 = vadd.f32 %v5331_v57, %v4941_v3  ;;  %v4942_v28 = vpop.f32.mrb[56].mxu0 }
 0x173   : > { %v4807_v23 = vpop.f32.mrb[57].mxu1  ;;  %v4943_v10 = vpop.f32.mrb[57].mxu0 }
 0x174   : > { %v4808_v7 = vadd.f32 %v4807_v23, %v4806_v42  ;;  %v4809_v37 = vpop.f32.mrb[58].mxu1  ;;  %v4944_v56 = vadd.f32 %v4943_v10, %v4942_v28  ;;  %v4945_v25 = vpop.f32.mrb[58].mxu0  ;;  %v5358_v28 = vadd.f32 %v6817_v60, %v6938_v5 }
 0x175   : > { %v4810_v54 = vpop.f32.mrb[59].mxu1  ;;  %v4946_v53 = vpop.f32.mrb[59].mxu0 }
 0x176   : > { %v5343_v48 = vadd.f32 %v5342_v30, %v4808_v7  ;;  %v4811_v55 = vadd.f32 %v4810_v54, %v4809_v37  ;;  %v4947_v49 = vadd.f32 %v4946_v53, %v4945_v25  ;;  %v5366_v54 = vadd.f32 %v6825_v24, %v6938_v5 }
 0x177   : > { %5295 = vmatmul.mubr.msk.bf16.gmra.mrb[36].mxu1 %vm6171_vm5, %v6429_v9  ;;  %v5354_v24 = vadd.f32 %v6833_v34, %v6938_v5 }
 0x178   : > { %v5351_v40 = vadd.f32 %v5350_v62, %v4811_v55  ;;  %5298 = vmatprep.mubr.msk.bf16.mxu1 %vm6171_vm5, %v6460_v4  ;;  %v6996_v11 = vadd.f32 %v5343_v48, %v4944_v56 }
 0x17a   : > { %v4812_v18 = vpop.f32.mrb[60].mxu1  ;;  %v7000_v46 = vadd.f32 %v5351_v40, %v4947_v49  ;;  %v4948_v38 = vpop.f32.mrb[60].mxu0 }
 0x17b   : > { %v4813_v21 = vpop.f32.mrb[61].mxu1  ;;  %v4949_v15 = vpop.f32.mrb[61].mxu0 }
 0x17c   : > { %v4814_v43 = vadd.f32 %v4813_v21, %v4812_v18  ;;  %v4815_v9 = vpop.f32.mrb[62].mxu1  ;;  %v4950_v3 = vadd.f32 %v4949_v15, %v4948_v38  ;;  %v4951_v57 = vpop.f32.mrb[62].mxu0  ;;  %v7401_v18 = vld [vmem:[#allocation3_spill] sm:$0xff]  ;;  %v5362_v15 = vadd.f32 %v6841_v52, %v6938_v5 }
 0x17d   : > { %v4816_v32 = vpop.f32.mrb[63].mxu1  ;;  %v4952_v42 = vpop.f32.mrb[63].mxu0 }
 0x17e   : > { %v5339_v4 = vadd.f32 %v5338_v16, %v4814_v43  ;;  %v4817_v30 = vadd.f32 %v4816_v32, %v4815_v9  ;;  %v4953_v23 = vadd.f32 %v4952_v42, %v4951_v57 }
 0x17f   : > { %5299 = vmatmul.mubr.msk.bf16.gmra.mrb[40].mxu1 %vm6171_vm5, %v6472_v27 }
 0x180   : > { %v5347_v41 = vadd.f32 %v5346_v14, %v4817_v30  ;;  %5302 = vmatprep.mubr.msk.bf16.mxu1 %vm6171_vm5, %v6875_v44  ;;  %v7010_v58 = vadd.f32 %v5339_v4, %v4950_v3 }
 0x182   : > { %v4818_v62 = vpop.f32.mrb[64].mxu1  ;;  %v7014_v7 = vadd.f32 %v5347_v41, %v4953_v23  ;;  %v4954_v10 = vpop.f32.mrb[64].mxu0 }
 0x183   : > { %v4819_v37 = vpop.f32.mrb[65].mxu1  ;;  %v4955_v25 = vpop.f32.mrb[65].mxu0 }
 0x184   : > { %v4820_v56 = vadd.f32 %v4819_v37, %v4818_v62  ;;  %v4821_v27 = vpop.f32.mrb[66].mxu1  ;;  %v4956_v55 = vadd.f32 %v4955_v25, %v4954_v10  ;;  %v4957_v53 = vpop.f32.mrb[66].mxu0  ;;  %v5374_v37 = vadd.f32 %v6846_v12, %v6938_v5 }
 0x185   : > { %v4822_v48 = vpop.f32.mrb[67].mxu1  ;;  %v4958_v40 = vpop.f32.mrb[67].mxu0 }
 0x186   : > { %v5359_v44 = vadd.f32 %v5358_v28, %v4820_v56  ;;  %v4823_v49 = vadd.f32 %v4822_v48, %v4821_v27  ;;  %v4959_v16 = vadd.f32 %v4958_v40, %v4957_v53  ;;  %v5382_v27 = vadd.f32 %v6851_v19, %v6938_v5 }
 0x187   : > { %5303 = vmatmul.mubr.msk.bf16.gmra.mrb[44].mxu1 %vm6171_vm5, %v7401_v18 }
 0x188   : > { %v5367_v60 = vadd.f32 %v5366_v54, %v4823_v49  ;;  %v7021_v21 = vadd.f32 %v5359_v44, %v4956_v55 }
 0x18a   : > { %v4824_v38 = vpop.f32.mrb[68].mxu1  ;;  %v7025_v14 = vadd.f32 %v5367_v60, %v4959_v16  ;;  %v4960_v9 = vpop.f32.mrb[68].mxu0 }
 0x18b   : > { %v4825_v43 = vpop.f32.mrb[69].mxu1  ;;  %v4961_v57 = vpop.f32.mrb[69].mxu0 }
 0x18c   : > { %v4826_v32 = vadd.f32 %v4825_v43, %v4824_v38  ;;  %v4827_v3 = vpop.f32.mrb[70].mxu1  ;;  %v4962_v2 = vadd.f32 %v4961_v57, %v4960_v9  ;;  %v4963_v30 = vpop.f32.mrb[70].mxu0  ;;  %v5370_v38 = vadd.f32 %v6861_v59, %v6938_v5 }
 0x18d   : > { %v4828_v4 = vpop.f32.mrb[71].mxu1  ;;  %v4964_v41 = vpop.f32.mrb[71].mxu0 }
 0x18e   : > { %v5355_v42 = vadd.f32 %v5354_v24, %v4826_v32  ;;  %v4829_v23 = vadd.f32 %v4828_v4, %v4827_v3  ;;  %v4965_v28 = vadd.f32 %v4964_v41, %v4963_v30  ;;  %v5378_v32 = vadd.f32 %v6869_v51, %v6938_v5  ;;  %v5631_v51 = vld [vmem:[%s5786_s18] sm:$0xff] }
 0x190   : > { %v5363_v62 = vadd.f32 %v5362_v15, %v4829_v23  ;;  %v7029_v34 = vadd.f32 %v5355_v42, %v4962_v2 }
 0x192   : > { %v4830_v10 = vpop.f32.mrb[72].mxu1  ;;  %v7033_v54 = vadd.f32 %v5363_v62, %v4965_v28  ;;  %v4966_v56 = vpop.f32.mrb[72].mxu0 }
 0x193   : > { %v4831_v52 = vpop.f32.mrb[73].mxu1  ;;  %v4967_v55 = vpop.f32.mrb[73].mxu0 }
 0x194   : > { %v4832_v25 = vadd.f32 %v4831_v52, %v4830_v10  ;;  %v4833_v48 = vpop.f32.mrb[74].mxu1  ;;  %v4968_v44 = vadd.f32 %v4967_v55, %v4966_v56  ;;  %v4969_v49 = vpop.f32.mrb[74].mxu0  ;;  %v5629_v10 = vld [vmem:[%s5823_s15] sm:$0xff]  ;;  %v5630_v56 = vld [vmem:[%s5823_s15 + $0x8] sm:$0xff] }
 0x195   : > { %v4834_v53 = vpop.f32.mrb[75].mxu1  ;;  %v4970_v18 = vpop.f32.mrb[75].mxu0  ;;  %v804_v52 = vunpack.c.h.bf16 %v5629_v10 }
 0x196   : > { %v5375_v40 = vadd.f32 %v5374_v37, %v4832_v25  ;;  %v4835_v16 = vadd.f32 %v4834_v53, %v4833_v48  ;;  %v4971_v60 = vadd.f32 %v4970_v18, %v4969_v49  ;;  %v808_v25 = vunpack.c.h.bf16 %v5631_v51  ;;  %v5632_v48 = vld [vmem:[%s5786_s18 + $0x8] sm:$0xff] }
 0x197   : > { %v810_v55 = vunpack.c.h.bf16 %v5632_v48  ;;  %v5390_v53 = vadd.f32 %v6877_v31, %v6938_v5  ;;  %v844_v18 = vmul.f32 0.25, %v804_v52  ;;  %v5634_v52 = vld [vmem:[%s5786_s18 + $0x18] sm:$0xff] }
 0x198   : > { %v5383_v24 = vadd.f32 %v5382_v27, %v4835_v16  ;;  %v7037_v12 = vadd.f32 %v5375_v40, %v4968_v44  ;;  %v806_v27 = vunpack.c.h.bf16 %v5630_v56  ;;  %v814_v56 = vunpack.c.h.bf16 %v5634_v52 }
 0x199   : > { %v850_v52 = vmul.f32 0.25, %v810_v55 }
 0x19a   : > { %v4836_v43 = vpop.f32.mrb[76].mxu1  ;;  %v7041_v9 = vadd.f32 %v5383_v24, %v4971_v60  ;;  %v4972_v15 = vpop.f32.mrb[76].mxu0  ;;  %v846_v60 = vmul.f32 0.25, %v806_v27  ;;  %v876_v24 = vmul.f32 0.75, %v808_v25  ;;  %v5386_v27 = vadd.f32 %v6890_v33, %v6938_v5 }
 0x19b   : > { %v4837_v19 = vpop.f32.mrb[77].mxu1  ;;  %v4973_v4 = vpop.f32.mrb[77].mxu0 }
 0x19c   : > { %v4838_v3 = vadd.f32 %v4837_v19, %v4836_v43  ;;  %v4839_v57 = vpop.f32.mrb[78].mxu1  ;;  %v4974_v30 = vadd.f32 %v4973_v4, %v4972_v15  ;;  %v4975_v42 = vpop.f32.mrb[78].mxu0  ;;  %v5398_v43 = vadd.f32 %v6882_v63, %v6938_v5  ;;  %v908_v4 = vadd.f32 %v876_v24, %v844_v18  ;;  %v5633_v63 = vld [vmem:[%s5786_s18 + $0x10] sm:$0xff] }
 0x19d   : > { %v4840_v2 = vpop.f32.mrb[79].mxu1  ;;  %v4976_v41 = vpop.f32.mrb[79].mxu0  ;;  %v812_v10 = vunpack.c.h.bf16 %v5633_v63  ;;  %v5394_v18 = vadd.f32 %v6898_v35, %v6938_v5 }
 0x19e   : > { %v5371_v23 = vadd.f32 %v5370_v38, %v4838_v3  ;;  %v4841_v59 = vadd.f32 %v4840_v2, %v4839_v57  ;;  %v4977_v28 = vadd.f32 %v4976_v41, %v4975_v42  ;;  %v878_v38 = vmul.f32 0.75, %v810_v55 }
 0x1a0   : > { %v5379_v62 = vadd.f32 %v5378_v32, %v4841_v59  ;;  %v7045_v37 = vadd.f32 %v5371_v23, %v4974_v30  ;;  %v910_v2 = vadd.f32 %v878_v38, %v846_v60 }
 0x1a2   : > { %v4842_v44 = vpop.f32.mrb[80].mxu1  ;;  %v7053_v49 = vadd.f32 %v5379_v62, %v4977_v28  ;;  %v4978_v16 = vpop.f32.mrb[80].mxu0  ;;  %v3105_v41 = vpack.c.bf16 %v910_v2, %v908_v4 }
 0x1a3   : > { %v4843_v40 = vpop.f32.mrb[81].mxu1  ;;  %v4979_v32 = vpop.f32.mrb[81].mxu0 }
 0x1a4   : > { %v4844_v19 = vadd.f32 %v4843_v40, %v4842_v44  ;;  %v4845_v15 = vpop.f32.mrb[82].mxu1  ;;  %v4980_v57 = vadd.f32 %v4979_v32, %v4978_v16  ;;  %v4981_v31 = vpop.f32.mrb[82].mxu0  ;;  %3281 = vmatprep.mubr.bf16.mxu0 %v3105_v41  ;;  %v7065_v40 = vmul.f32 0.25, %v812_v10  ;;  %v7067_v16 = vmul.f32 0.25, %v814_v56 }
 0x1a5   : > { %v4846_v3 = vpop.f32.mrb[83].mxu1  ;;  %v4982_v23 = vpop.f32.mrb[83].mxu0 }
 0x1a6   : > { %v5391_v30 = vadd.f32 %v5390_v53, %v4844_v19  ;;  %v4847_v42 = vadd.f32 %v4846_v3, %v4845_v15  ;;  %v4983_v59 = vadd.f32 %v4982_v23, %v4981_v31  ;;  %v7072_v33 = vadd.f32 %v876_v24, %v7065_v40 }
 0x1a8   : > { %v5399_v28 = vadd.f32 %v5398_v43, %v4847_v42  ;;  %v7057_v62 = vadd.f32 %v5391_v30, %v4980_v57  ;;  %v7075_v57 = vadd.f32 %v878_v38, %v7067_v16  ;;  %v848_v38 = vmul.f32 0.25, %v808_v25 }
 0x1aa   : > { %v4848_v51 = vpop.f32.mrb[84].mxu1  ;;  %v7063_v48 = vadd.f32 %v5399_v28, %v4983_v59  ;;  %v4984_v53 = vpop.f32.mrb[84].mxu0  ;;  %v3106_v42 = vpack.c.bf16 %v7075_v57, %v7072_v33  ;;  %v5406_v59 = vadd.f32 %v6903_v17, %v6938_v5 }
 0x1ab   : > { %v4849_v44 = vpop.f32.mrb[85].mxu1  ;;  %v4985_v19 = vpop.f32.mrb[85].mxu0 }
 0x1ac   : > { %v4850_v60 = vadd.f32 %v4849_v44, %v4848_v51  ;;  %v4851_v43 = vpop.f32.mrb[86].mxu1  ;;  %v4986_v32 = vadd.f32 %v4985_v19, %v4984_v53  ;;  %v4987_v3 = vpop.f32.mrb[86].mxu0  ;;  %v7087_v51 = vmul.f32 0.75, %v814_v56  ;;  %v5414_v44 = vadd.f32 %v6908_v61, %v6938_v5 }
 0x1ad   : > { %v4852_v15 = vpop.f32.mrb[87].mxu1  ;;  %v4988_v2 = vpop.f32.mrb[87].mxu0 }
 0x1ae   : > { %v5387_v31 = vadd.f32 %v5386_v27, %v4850_v60  ;;  %v4853_v4 = vadd.f32 %v4852_v15, %v4851_v43  ;;  %v4989_v30 = vadd.f32 %v4988_v2, %v4987_v3  ;;  %v7085_v27 = vmul.f32 0.75, %v812_v10 }
 0x1b0   : > { %v5395_v35 = vadd.f32 %v5394_v18, %v4853_v4  ;;  %v7079_v23 = vadd.f32 %v5387_v31, %v4986_v32  ;;  %v7092_v15 = vadd.f32 %v7085_v27, %v848_v38  ;;  %v7095_v32 = vadd.f32 %v7087_v51, %v850_v52 }
 0x1b1   : > { %v5402_v4 = vadd.f32 %v6916_v22, %v6938_v5 }
 0x1b2   : > { %v4854_v41 = vpop.f32.mrb[88].mxu1  ;;  %v7083_v28 = vadd.f32 %v5395_v35, %v4989_v30  ;;  %v4990_v63 = vpop.f32.mrb[88].mxu0  ;;  %v3107_v3 = vpack.c.bf16 %v7095_v32, %v7092_v15 }
 0x1b3   : > { %v4855_v24 = vpop.f32.mrb[89].mxu1  ;;  %v4991_v60 = vpop.f32.mrb[89].mxu0 }
 0x1b4   : > { %v4856_v53 = vadd.f32 %v4855_v24, %v4854_v41  ;;  %v4857_v18 = vpop.f32.mrb[90].mxu1  ;;  %v4992_v19 = vadd.f32 %v4991_v60, %v4990_v63  ;;  %v4993_v17 = vpop.f32.mrb[90].mxu0 }
 0x1b5   : > { %v4858_v43 = vpop.f32.mrb[91].mxu1  ;;  %v4994_v10 = vpop.f32.mrb[91].mxu0 }
 0x1b6   : > { %v5407_v25 = vadd.f32 %v5406_v59, %v4856_v53  ;;  %v4859_v55 = vadd.f32 %v4858_v43, %v4857_v18  ;;  %v4995_v56 = vadd.f32 %v4994_v10, %v4993_v17  ;;  %v5410_v59 = vadd.f32 %v6924_v39, %v6938_v5 }
 0x1b7   : > { %v5422_v39 = vadd.f32 %v6740_v29, %v6938_v5 }
 0x1b8   : > { %v5415_v61 = vadd.f32 %v5414_v44, %v4859_v55  ;;  %v7099_v31 = vadd.f32 %v5407_v25, %v4992_v19 }
 0x1ba   : > { %v4860_v2 = vpop.f32.mrb[92].mxu1  ;;  %v7103_v30 = vadd.f32 %v5415_v61, %v4995_v56  ;;  %v4996_v41 = vpop.f32.mrb[92].mxu0 }
 0x1bb   : > { %v4861_v35 = vpop.f32.mrb[93].mxu1  ;;  %v4997_v38 = vpop.f32.mrb[93].mxu0 }
 0x1bc   : > { %v4862_v24 = vadd.f32 %v4861_v35, %v4860_v2  ;;  %v4863_v63 = vpop.f32.mrb[94].mxu1  ;;  %v4998_v53 = vadd.f32 %v4997_v38, %v4996_v41  ;;  %v4999_v18 = vpop.f32.mrb[94].mxu0 }
 0x1bd   : > { %v4864_v52 = vpop.f32.mrb[95].mxu1  ;;  %v5000_v43 = vpop.f32.mrb[95].mxu0 }
 0x1be   : > { %v5403_v44 = vadd.f32 %v5402_v4, %v4862_v24  ;;  %v4865_v60 = vadd.f32 %v4864_v52, %v4863_v63  ;;  %v5001_v19 = vadd.f32 %v5000_v43, %v4999_v18  ;;  %v5430_v24 = vadd.f32 %v6744_v1, %v6938_v5 }
 0x1c0   : > { %v5411_v17 = vadd.f32 %v5410_v59, %v4865_v60  ;;  %v7107_v22 = vadd.f32 %v5403_v44, %v4998_v53 }
 0x1c2   : > { %v4866_v25 = vpop.f32.mrb[96].mxu1  ;;  %v7109_v55 = vadd.f32 %v5411_v17, %v5001_v19  ;;  %v5002_v56 = vpop.f32.mrb[96].mxu0  ;;  %v5418_v17 = vadd.f32 %v6756_v36, %v6938_v5 }
 0x1c3   : > { %v4867_v10 = vpop.f32.mrb[97].mxu1  ;;  %v5003_v35 = vpop.f32.mrb[97].mxu0 }
 0x1c4   : > { %v4868_v61 = vadd.f32 %v4867_v10, %v4866_v25  ;;  %v4869_v2 = vpop.f32.mrb[98].mxu1  ;;  %v5004_v38 = vadd.f32 %v5003_v35, %v5002_v56  ;;  %v5005_v4 = vpop.f32.mrb[98].mxu0 }
 0x1c5   : > { %v4870_v41 = vpop.f32.mrb[99].mxu1  ;;  %v5006_v52 = vpop.f32.mrb[99].mxu0 }
 0x1c6   : > { %v5423_v59 = vadd.f32 %v5422_v39, %v4868_v61  ;;  %v4871_v63 = vadd.f32 %v4870_v41, %v4869_v2  ;;  %v5007_v53 = vadd.f32 %v5006_v52, %v5005_v4  ;;  %v5426_v61 = vadd.f32 %v6763_v47, %v6938_v5 }
 0x1c8   : > { %v5431_v18 = vadd.f32 %v5430_v24, %v4871_v63  ;;  %v7115_v44 = vadd.f32 %v5423_v59, %v5004_v38 }
 0x1ca   : > { %v4872_v60 = vpop.f32.mrb[100].mxu1  ;;  %v7117_v43 = vadd.f32 %v5431_v18, %v5007_v53  ;;  %v5008_v19 = vpop.f32.mrb[100].mxu0  ;;  %v5438_v18 = vadd.f32 %v6777_v26, %v6938_v5 }
 0x1cb   : > { %v4873_v29 = vpop.f32.mrb[101].mxu1  ;;  %v5009_v56 = vpop.f32.mrb[101].mxu0 }
 0x1cc   : > { %v4874_v25 = vadd.f32 %v4873_v29, %v4872_v60  ;;  %v4875_v10 = vpop.f32.mrb[102].mxu1  ;;  %v5010_v1 = vadd.f32 %v5009_v56, %v5008_v19  ;;  %v5011_v39 = vpop.f32.mrb[102].mxu0 }
 0x1cd   : > { %v4876_v35 = vpop.f32.mrb[103].mxu1  ;;  %v5012_v38 = vpop.f32.mrb[103].mxu0 }
 0x1ce   : > { %v5419_v2 = vadd.f32 %v5418_v17, %v4874_v25  ;;  %v4877_v41 = vadd.f32 %v4876_v35, %v4875_v10  ;;  %v5013_v4 = vadd.f32 %v5012_v38, %v5011_v39  ;;  %v5446_v25 = vadd.f32 %v6784_v50, %v6938_v5 }
 0x1d0   : > { %v5427_v24 = vadd.f32 %v5426_v61, %v4877_v41  ;;  %v7123_v59 = vadd.f32 %v5419_v2, %v5010_v1 }
 0x1d2   : > { %v4878_v63 = vpop.f32.mrb[104].mxu1  ;;  %v7125_v52 = vadd.f32 %v5427_v24, %v5013_v4  ;;  %v5014_v53 = vpop.f32.mrb[104].mxu0  ;;  %v5434_v24 = vadd.f32 %v6797_v0, %v6938_v5 }
 0x1d3   : > { %v4879_v36 = vpop.f32.mrb[105].mxu1  ;;  %v5015_v19 = vpop.f32.mrb[105].mxu0 }
 0x1d4   : > { %v4880_v60 = vadd.f32 %v4879_v36, %v4878_v63  ;;  %v4881_v29 = vpop.f32.mrb[106].mxu1  ;;  %v5016_v47 = vadd.f32 %v5015_v19, %v5014_v53  ;;  %v5017_v17 = vpop.f32.mrb[106].mxu0 }
 0x1d5   : > { %v4882_v56 = vpop.f32.mrb[107].mxu1  ;;  %v5018_v1 = vpop.f32.mrb[107].mxu0 }
 0x1d6   : > { %v5439_v10 = vadd.f32 %v5438_v18, %v4880_v60  ;;  %v4883_v35 = vadd.f32 %v4882_v56, %v4881_v29  ;;  %v5019_v39 = vadd.f32 %v5018_v1, %v5017_v17  ;;  %v5442_v60 = vadd.f32 %v6804_v13, %v6938_v5 }
 0x1d8   : > { %v5447_v61 = vadd.f32 %v5446_v25, %v4883_v35  ;;  %v7131_v2 = vadd.f32 %v5439_v10, %v5016_v47 }
 0x1da   : > { %v4884_v41 = vpop.f32.mrb[108].mxu1  ;;  %v7133_v38 = vadd.f32 %v5447_v61, %v5019_v39  ;;  %v5020_v4 = vpop.f32.mrb[108].mxu0 }
 0x1db   : > { %v4885_v26 = vpop.f32.mrb[109].mxu1  ;;  %v5021_v53 = vpop.f32.mrb[109].mxu0 }
 0x1dc   : > { %v4886_v63 = vadd.f32 %v4885_v26, %v4884_v41  ;;  %v4887_v36 = vpop.f32.mrb[110].mxu1  ;;  %v5022_v50 = vadd.f32 %v5021_v53, %v5020_v4  ;;  %v5023_v18 = vpop.f32.mrb[110].mxu0 }
 0x1dd   : > { %v4888_v19 = vpop.f32.mrb[111].mxu1  ;;  %v5024_v47 = vpop.f32.mrb[111].mxu0 }
 0x1de   : > { %v5435_v29 = vadd.f32 %v5434_v24, %v4886_v63  ;;  %v4889_v56 = vadd.f32 %v4888_v19, %v4887_v36  ;;  %v5025_v17 = vadd.f32 %v5024_v47, %v5023_v18 }
 0x1e0   : > { %v5443_v25 = vadd.f32 %v5442_v60, %v4889_v56  ;;  %v7139_v10 = vadd.f32 %v5435_v29, %v5022_v50 }
 0x1e2   : > { %v7141_v35 = vadd.f32 %v5443_v25, %v5025_v17 }
 0x222   : > { %v5276_v0 = vpop.f32.mrb[16].mxu1 }
 0x223   : > { %v5325_v1 = vadd.f32 %v6982_v20, %v5276_v0  ;;  %v2930_v39 = vpop.f32.mrb[17].mxu1  ;;  %v5635_v20 = vld [vmem:[%s5786_s18 + $0x20] sm:$0xff] }
 0x224   : > { %v5329_v61 = vadd.f32 %v6962_v6, %v2930_v39  ;;  %v5277_v41 = vpop.f32.mrb[18].mxu1  ;;  %v816_v19 = vunpack.c.h.bf16 %v5635_v20  ;;  %v5636_v6 = vld [vmem:[%s5786_s18 + $0x28] sm:$0xff] }
 0x225   : > { %v5333_v13 = vadd.f32 %v6986_v45, %v5277_v41  ;;  %v2933_v5 = vpop.f32.mrb[19].mxu1  ;;  %v818_v50 = vunpack.c.h.bf16 %v5636_v6 }
 0x226   : > { %v5337_v26 = vadd.f32 %v6969_v8, %v2933_v5  ;;  %v856_v47 = vmul.f32 0.25, %v816_v19  ;;  %v884_v39 = vmul.f32 0.75, %v816_v19  ;;  %v5638_v5 = vld [vmem:[%s5786_s18 + $0x38] sm:$0xff] }
 0x227   : > { %v3090_v4 = vpack.c.bf16 %v5333_v13, %v5325_v1  ;;  %v5637_v13 = vld [vmem:[%s5786_s18 + $0x30] sm:$0xff] }
 0x228   : > { %v3089_v24 = vpack.c.bf16 %v5337_v26, %v5329_v61  ;;  %v822_v26 = vunpack.c.h.bf16 %v5638_v5 }
 0x22a   : > { %v5280_v63 = vpop.f32.mrb[20].mxu1  ;;  %3282 = vmatmul.mubr.bf16.vlgmr.msra.gmra.mrb[112].mxu0 %v3089_v24 }
 0x22b   : > { %v5341_v36 = vadd.f32 %v7010_v58, %v5280_v63  ;;  %v2946_v53 = vpop.f32.mrb[21].mxu1  ;;  %3289 = vmatprep.mubr.bf16.mxu0 %v3106_v42  ;;  %v7156_v58 = vmul.f32 0.25, %v818_v50 }
 0x22c   : > { %v5345_v45 = vadd.f32 %v6996_v11, %v2946_v53  ;;  %v5281_v18 = vpop.f32.mrb[22].mxu1  ;;  %v952_v11 = vadd.f32 %v7085_v27, %v856_v47  ;;  %v886_v27 = vmul.f32 0.75, %v818_v50 }
 0x22d   : > { %v5349_v8 = vadd.f32 %v7014_v7, %v5281_v18  ;;  %v2949_v60 = vpop.f32.mrb[23].mxu1 }
 0x22e   : > { %v5353_v29 = vadd.f32 %v7000_v46, %v2949_v60  ;;  %v954_v46 = vadd.f32 %v7087_v51, %v7156_v58  ;;  %v918_v41 = vadd.f32 %v886_v27, %v7067_v16  ;;  %v7190_v16 = vmul.f32 0.25, %v822_v26 }
 0x22f   : > { %v3092_v56 = vpack.c.bf16 %v5349_v8, %v5341_v36 }
 0x230   : > { %v3091_v17 = vpack.c.bf16 %v5353_v29, %v5345_v45  ;;  %v3108_v32 = vpack.c.bf16 %v954_v46, %v952_v11  ;;  %v958_v45 = vadd.f32 %v886_v27, %v7190_v16 }
 0x232   : > { %v5284_v25 = vpop.f32.mrb[24].mxu1  ;;  %3290 = vmatmul.mubr.bf16.gmra.mrb[116].mxu0 %v3090_v4 }
 0x233   : > { %v7159_v33 = vadd.f32 %v7029_v34, %v5284_v25  ;;  %v2962_v57 = vpop.f32.mrb[25].mxu1  ;;  %3297 = vmatprep.mubr.bf16.mxu0 %v3107_v3  ;;  %v890_v25 = vmul.f32 0.75, %v822_v26 }
 0x234   : > { %v5361_v7 = vadd.f32 %v7021_v21, %v2962_v57  ;;  %v5285_v42 = vpop.f32.mrb[26].mxu1  ;;  %v916_v21 = vadd.f32 %v884_v39, %v7065_v40 }
 0x235   : > { %v7169_v0 = vadd.f32 %v7033_v54, %v5285_v42  ;;  %v2965_v1 = vpop.f32.mrb[27].mxu1 }
 0x236   : > { %v5369_v34 = vadd.f32 %v7025_v14, %v2965_v1  ;;  %v820_v14 = vunpack.c.h.bf16 %v5637_v13  ;;  %v3109_v53 = vpack.c.bf16 %v918_v41, %v916_v21  ;;  %v5640_v1 = vld [vmem:[%s5786_s18 + $0x48] sm:$0xff] }
 0x237   : > { %v3094_v15 = vpack.c.bf16 %v7169_v0, %v7159_v33 }
 0x238   : > { %v3093_v3 = vpack.c.bf16 %v5369_v34, %v5361_v7  ;;  %v860_v20 = vmul.f32 0.25, %v820_v14  ;;  %v5639_v7 = vld [vmem:[%s5786_s18 + $0x40] sm:$0xff]  ;;  %v826_v34 = vunpack.c.h.bf16 %v5640_v1 }
 0x239   : > { %v824_v42 = vunpack.c.h.bf16 %v5639_v7 }
 0x23a   : > { %v5288_v61 = vpop.f32.mrb[28].mxu1  ;;  %3298 = vmatmul.mubr.bf16.gmra.mrb[120].mxu0 %v3091_v17  ;;  %v866_v21 = vmul.f32 0.25, %v826_v34 }
 0x23b   : > { %v7176_v51 = vadd.f32 %v7045_v37, %v5288_v61  ;;  %v2978_v54 = vpop.f32.mrb[29].mxu1  ;;  %3305 = vmatprep.mubr.bf16.mxu0 %v3108_v32  ;;  %v892_v0 = vmul.f32 0.75, %v824_v42 }
 0x23c   : > { %v7182_v4 = vadd.f32 %v7037_v12, %v2978_v54  ;;  %v5289_v24 = vpop.f32.mrb[30].mxu1  ;;  %v962_v13 = vadd.f32 %v890_v25, %v866_v21 }
 0x23d   : > { %v7185_v63 = vadd.f32 %v7053_v49, %v5289_v24  ;;  %v2981_v36 = vpop.f32.mrb[31].mxu1  ;;  %v956_v49 = vadd.f32 %v884_v39, %v860_v20  ;;  %v894_v24 = vmul.f32 0.75, %v826_v34  ;;  %v5644_v34 = vld [vmem:[%s5786_s18 + $0x68] sm:$0xff] }
 0x23e   : > { %v5385_v40 = vadd.f32 %v7041_v9, %v2981_v36 }
 0x23f   : > { %v3096_v37 = vpack.c.bf16 %v7185_v63, %v7176_v51  ;;  %v3110_v17 = vpack.c.bf16 %v958_v45, %v956_v49  ;;  %v5642_v49 = vld [vmem:[%s5786_s18 + $0x58] sm:$0xff] }
 0x240   : > { %v3095_v19 = vpack.c.bf16 %v5385_v40, %v7182_v4  ;;  %v924_v40 = vadd.f32 %v892_v0, %v860_v20  ;;  %v830_v45 = vunpack.c.h.bf16 %v5642_v49 }
 0x242   : > { %v5292_v6 = vpop.f32.mrb[32].mxu1  ;;  %3306 = vmatmul.mubr.bf16.gmra.mrb[124].mxu0 %v3092_v56 }
 0x243   : > { %v7194_v12 = vadd.f32 %v7079_v23, %v5292_v6  ;;  %v2994_v50 = vpop.f32.mrb[33].mxu1  ;;  %3313 = vmatprep.mubr.bf16.mxu0 %v3109_v53  ;;  %v888_v23 = vmul.f32 0.75, %v820_v14  ;;  %v5641_v6 = vld [vmem:[%s5786_s18 + $0x50] sm:$0xff] }
 0x244   : > { %v7198_v9 = vadd.f32 %v7057_v62, %v2994_v50  ;;  %v5293_v18 = vpop.f32.mrb[34].mxu1  ;;  %v828_v50 = vunpack.c.h.bf16 %v5641_v6 }
 0x245   : > { %v7201_v8 = vadd.f32 %v7083_v28, %v5293_v18  ;;  %v2997_v60 = vpop.f32.mrb[35].mxu1  ;;  %v920_v11 = vadd.f32 %v888_v23, %v856_v47 }
 0x246   : > { %v7204_v29 = vadd.f32 %v7063_v48, %v2997_v60  ;;  %v922_v48 = vadd.f32 %v890_v25, %v7156_v58  ;;  %v864_v58 = vmul.f32 0.25, %v824_v42  ;;  %v870_v25 = vmul.f32 0.25, %v830_v45  ;;  %v5643_v42 = vld [vmem:[%s5786_s18 + $0x60] sm:$0xff] }
 0x247   : > { %v3098_v56 = vpack.c.bf16 %v7201_v8, %v7194_v12  ;;  %v832_v1 = vunpack.c.h.bf16 %v5643_v42 }
 0x248   : > { %v3097_v62 = vpack.c.bf16 %v7204_v29, %v7198_v9  ;;  %v3111_v61 = vpack.c.bf16 %v922_v48, %v920_v11  ;;  %v896_v11 = vmul.f32 0.75, %v828_v50 }
 0x249   : > { %v872_v63 = vmul.f32 0.25, %v832_v1 }
 0x24a   : > { %v5296_v57 = vpop.f32.mrb[36].mxu1  ;;  %3314 = vmatmul.mubr.bf16.gmra.mrb[128].mxu0 %v3093_v3  ;;  %v928_v48 = vadd.f32 %v896_v11, %v864_v58 }
 0x24b   : > { %v7211_v28 = vadd.f32 %v7107_v22, %v5296_v57  ;;  %v3010_v46 = vpop.f32.mrb[37].mxu1  ;;  %3321 = vmatprep.mubr.bf16.mxu0 %v3110_v17  ;;  %v868_v17 = vmul.f32 0.25, %v828_v50  ;;  %v966_v57 = vadd.f32 %v894_v24, %v870_v25 }
 0x24c   : > { %v7217_v39 = vadd.f32 %v7099_v31, %v3010_v46  ;;  %v5297_v32 = vpop.f32.mrb[38].mxu1  ;;  %v898_v46 = vmul.f32 0.75, %v830_v45 }
 0x24d   : > { %v7220_v27 = vadd.f32 %v7109_v55, %v5297_v32  ;;  %v3013_v3 = vpop.f32.mrb[39].mxu1  ;;  %v834_v32 = vunpack.c.h.bf16 %v5644_v34 }
 0x24e   : > { %v7223_v47 = vadd.f32 %v7103_v30, %v3013_v3  ;;  %v960_v30 = vadd.f32 %v888_v23, %v864_v58  ;;  %v930_v7 = vadd.f32 %v898_v46, %v866_v21  ;;  %v968_v3 = vadd.f32 %v896_v11, %v872_v63 }
 0x24f   : > { %v3100_v22 = vpack.c.bf16 %v7220_v27, %v7211_v28 }
 0x250   : > { %v3099_v54 = vpack.c.bf16 %v7223_v47, %v7217_v39  ;;  %v3115_v51 = vpack.c.bf16 %v930_v7, %v928_v48 }
 0x252   : > { %v5300_v41 = vpop.f32.mrb[40].mxu1  ;;  %3322 = vmatmul.mubr.bf16.gmra.mrb[132].mxu0 %v3094_v15  ;;  %v3112_v15 = vpack.c.bf16 %v962_v13, %v960_v30  ;;  %v5646_v30 = vld [vmem:[%s5786_s18 + $0x78] sm:$0xff] }
 0x253   : > { %v7233_v31 = vadd.f32 %v7123_v59, %v5300_v41  ;;  %v3026_v55 = vpop.f32.mrb[41].mxu1  ;;  %3329 = vmatprep.mubr.bf16.mxu0 %v3111_v61  ;;  %v902_v61 = vmul.f32 0.75, %v834_v32  ;;  %v5645_v41 = vld [vmem:[%s5786_s18 + $0x70] sm:$0xff]  ;;  %v838_v13 = vunpack.c.h.bf16 %v5646_v30 }
 0x254   : > { %v7236_v14 = vadd.f32 %v7115_v44, %v3026_v55  ;;  %v5301_v5 = vpop.f32.mrb[42].mxu1  ;;  %v836_v55 = vunpack.c.h.bf16 %v5645_v41 }
 0x255   : > { %v7239_v26 = vadd.f32 %v7125_v52, %v5301_v5  ;;  %v3029_v4 = vpop.f32.mrb[43].mxu1  ;;  %v934_v21 = vadd.f32 %v902_v61, %v870_v25 }
 0x256   : > { %v7242_v33 = vadd.f32 %v7117_v43, %v3029_v4  ;;  %v926_v43 = vadd.f32 %v894_v24, %v7190_v16  ;;  %v940_v8 = vmul.f32 0.25, %v836_v55  ;;  %v906_v4 = vmul.f32 0.75, %v838_v13  ;;  %v5647_v24 = vld [vmem:[%s6690_s27] sm:$0xff] }
 0x257   : > { %v3102_v59 = vpack.c.bf16 %v7239_v26, %v7233_v31 }
 0x258   : > { %v3101_v44 = vpack.c.bf16 %v7242_v33, %v7236_v14  ;;  %v3113_v16 = vpack.c.bf16 %v926_v43, %v924_v40  ;;  %v5648_v40 = vld [vmem:[%s6690_s27 + $0x8] sm:$0xff]  ;;  %s7301_s27 = scalar_lea.vmem %s7341_s9, %s5777_s29  ;;  %s3870_s29 = sshll.u32 %s7407_s11, 3 }
 0x259   : > { %s709_s20 = scalar_lea.vmem %s7342_s10, %s3870_s29 }
 0x25a   : > { %v5304_v36 = vpop.f32.mrb[44].mxu1  ;;  %3330 = vmatmul.mubr.bf16.gmra.mrb[136].mxu0 %v3095_v19 }
 0x25b   : > { %v7249_v52 = vadd.f32 %v7139_v10, %v5304_v36  ;;  %v3042_v53 = vpop.f32.mrb[45].mxu1  ;;  %3337 = vmatprep.mubr.bf16.mxu0 %v3112_v15  ;;  %v840_v36 = vunpack.c.h.bf16 %v5647_v24 }
 0x25c   : > { %v7255_v18 = vadd.f32 %v7131_v2, %v3042_v53  ;;  %v5305_v60 = vpop.f32.mrb[46].mxu1  ;;  %v842_v53 = vunpack.c.h.bf16 %v5648_v40 }
 0x25d   : > { %v7258_v23 = vadd.f32 %v7141_v35, %v5305_v60  ;;  %v3045_v19 = vpop.f32.mrb[47].mxu1  ;;  %v964_v35 = vadd.f32 %v892_v0, %v868_v17  ;;  %v944_v28 = vmul.f32 0.25, %v840_v36 }
 0x25e   : > { %v7261_v20 = vadd.f32 %v7133_v38, %v3045_v19  ;;  %v946_v27 = vmul.f32 0.25, %v842_v53 }
 0x25f   : > { %v3104_v10 = vpack.c.bf16 %v7258_v23, %v7249_v52  ;;  %v3114_v38 = vpack.c.bf16 %v966_v57, %v964_v35 }
 0x260   : > { %v3103_v2 = vpack.c.bf16 %v7261_v20, %v7255_v18  ;;  %v978_v6 = vadd.f32 %v946_v27, %v906_v4 }
 0x262   : > { %3338 = vmatmul.mubr.bf16.gmra.mrb[140].mxu0 %v3096_v37  ;;  %v874_v37 = vmul.f32 0.25, %v834_v32 }
 0x263   : > { %3345 = vmatprep.mubr.bf16.mxu0 %v3113_v16 }
 0x264   : > { %v970_v9 = vadd.f32 %v898_v46, %v874_v37  ;;  %v938_v15 = vadd.f32 %v906_v4, %v874_v37 }
 0x266   : > { %v3116_v29 = vpack.c.bf16 %v970_v9, %v968_v3 }
 0x26a   : > { %3346 = vmatmul.mubr.bf16.gmra.mrb[144].mxu0 %v3097_v62  ;;  %v900_v62 = vmul.f32 0.75, %v832_v1 }
 0x26b   : > { %3353 = vmatprep.mubr.bf16.mxu0 %v3114_v38 }
 0x26c   : > { %v932_v58 = vadd.f32 %v900_v62, %v868_v17  ;;  %v972_v5 = vadd.f32 %v940_v8, %v900_v62 }
 0x26e   : > { %v3117_v12 = vpack.c.bf16 %v934_v21, %v932_v58 }
 0x272   : > { %3354 = vmatmul.mubr.bf16.gmra.mrb[148].mxu0 %v3098_v56  ;;  %v942_v56 = vmul.f32 0.25, %v838_v13 }
 0x273   : > { %3361 = vmatprep.mubr.bf16.mxu0 %v3115_v51 }
 0x274   : > { %v974_v39 = vadd.f32 %v942_v56, %v902_v61 }
 0x276   : > { %v3118_v47 = vpack.c.bf16 %v974_v39, %v972_v5 }
 0x27a   : > { %3362 = vmatmul.mubr.bf16.gmra.mrb[152].mxu0 %v3099_v54  ;;  %v904_v54 = vmul.f32 0.75, %v836_v55 }
 0x27b   : > { %3369 = vmatprep.mubr.bf16.mxu0 %v3116_v29 }
 0x27c   : > { %v936_v0 = vadd.f32 %v904_v54, %v872_v63 }
 0x27e   : > { %v3119_v43 = vpack.c.bf16 %v938_v15, %v936_v0 }
 0x282   : > { %3370 = vmatmul.mubr.bf16.gmra.mrb[156].mxu0 %v3100_v22  ;;  %v976_v22 = vadd.f32 %v944_v28, %v904_v54 }
 0x283   : > { %3377 = vmatprep.mubr.bf16.mxu0 %v3117_v12 }
 0x284   : > { %v3120_v14 = vpack.c.bf16 %v978_v6, %v976_v22 }
 0x28a   : > { %3378 = vmatmul.mubr.bf16.gmra.mrb[160].mxu0 %v3101_v44 }
 0x28b   : > { %3385 = vmatprep.mubr.bf16.mxu0 %v3118_v47 }
 0x292   : > { %3386 = vmatmul.mubr.bf16.gmra.mrb[164].mxu0 %v3102_v59 }
 0x293   : > { %3393 = vmatprep.mubr.bf16.mxu0 %v3119_v43 }
 0x29a   : > { %3394 = vmatmul.mubr.bf16.gmra.mrb[168].mxu0 %v3103_v2 }
 0x29b   : > { %3401 = vmatprep.mubr.bf16.mxu0 %v3120_v14 }
 0x2a2   : > { %3402 = vmatmul.mubr.bf16.gmra.mrb[172].mxu0 %v3104_v10 }
 0x2fd   : > { %v5066_v33 = vpop.f32.mrb[112].mxu0 }
 0x2fe   : > { %v5067_v44 = vpop.f32.mrb[113].mxu0 }
 0x2ff   : > { %v5068_v50 = vadd.f32 %v5067_v44, %v5066_v33  ;;  %v5069_v49 = vpop.f32.mrb[114].mxu0 }
 0x300   : > { %v5070_v45 = vpop.f32.mrb[115].mxu0 }
 0x301   : > { %v5071_v18 = vadd.f32 %v5070_v45, %v5069_v49 }
 0x303   : > { %v4534_v31 = vpack.c.bf16 %v5071_v18, %v5068_v50 }
 0x305   : > { %4535 = vst [vmem:[%s7301_s27] sm:$0xff] %v4534_v31   ;;  %v5072_v26 = vpop.f32.mrb[116].mxu0 }
 0x306   : > { %v5073_v59 = vpop.f32.mrb[117].mxu0 }
 0x307   : > { %v5074_v60 = vadd.f32 %v5073_v59, %v5072_v26  ;;  %v5075_v52 = vpop.f32.mrb[118].mxu0 }
 0x308   : > { %v5076_v23 = vpop.f32.mrb[119].mxu0 }
 0x309   : > { %v3570_v19 = vadd.f32 %v5074_v60, %v5068_v50  ;;  %v5077_v20 = vadd.f32 %v5076_v23, %v5075_v52 }
 0x30b   : > { %v4539_v10 = vpack.c.bf16 %v5077_v20, %v5074_v60  ;;  %v3585_v16 = vadd.f32 %v5077_v20, %v5071_v18 }
 0x30d   : > { %4627 = vst [vmem:[%s7301_s27 + $0x8] sm:$0xff] %v4539_v10   ;;  %v5078_v17 = vpop.f32.mrb[120].mxu0 }
 0x30e   : > { %v5079_v25 = vpop.f32.mrb[121].mxu0 }
 0x30f   : > { %v5080_v2 = vadd.f32 %v5079_v25, %v5078_v17  ;;  %v5081_v35 = vpop.f32.mrb[122].mxu0 }
 0x310   : > { %v5082_v57 = vpop.f32.mrb[123].mxu0 }
 0x311   : > { %v3571_v38 = vadd.f32 %v5080_v2, %v3570_v19  ;;  %v5083_v11 = vadd.f32 %v5082_v57, %v5081_v35 }
 0x313   : > { %v4544_v46 = vpack.c.bf16 %v5083_v11, %v5080_v2  ;;  %v3586_v48 = vadd.f32 %v5083_v11, %v3585_v16 }
 0x315   : > { %4628 = vst [vmem:[%s7301_s27 + $0x10] sm:$0xff] %v4544_v46   ;;  %v5084_v7 = vpop.f32.mrb[124].mxu0 }
 0x316   : > { %v5085_v42 = vpop.f32.mrb[125].mxu0 }
 0x317   : > { %v5086_v1 = vadd.f32 %v5085_v42, %v5084_v7  ;;  %v5087_v34 = vpop.f32.mrb[126].mxu0 }
 0x318   : > { %v5088_v32 = vpop.f32.mrb[127].mxu0 }
 0x319   : > { %v3572_v51 = vadd.f32 %v5086_v1, %v3571_v38  ;;  %v5089_v63 = vadd.f32 %v5088_v32, %v5087_v34 }
 0x31b   : > { %v4549_v37 = vpack.c.bf16 %v5089_v63, %v5086_v1  ;;  %v3587_v3 = vadd.f32 %v5089_v63, %v3586_v48 }
 0x31d   : > { %4629 = vst [vmem:[%s7301_s27 + $0x18] sm:$0xff] %v4549_v37   ;;  %v5090_v9 = vpop.f32.mrb[128].mxu0 }
 0x31e   : > { %v5091_v29 = vpop.f32.mrb[129].mxu0 }
 0x31f   : > { %v5092_v62 = vadd.f32 %v5091_v29, %v5090_v9  ;;  %v5093_v61 = vpop.f32.mrb[130].mxu0 }
 0x320   : > { %v5094_v58 = vpop.f32.mrb[131].mxu0 }
 0x321   : > { %v3573_v21 = vadd.f32 %v5092_v62, %v3572_v51  ;;  %v5095_v41 = vadd.f32 %v5094_v58, %v5093_v61 }
 0x323   : > { %v4554_v55 = vpack.c.bf16 %v5095_v41, %v5092_v62  ;;  %v3588_v30 = vadd.f32 %v5095_v41, %v3587_v3 }
 0x325   : > { %4630 = vst [vmem:[%s7301_s27 + $0x20] sm:$0xff] %v4554_v55   ;;  %v5096_v13 = vpop.f32.mrb[132].mxu0 }
 0x326   : > { %v5097_v12 = vpop.f32.mrb[133].mxu0 }
 0x327   : > { %v5098_v8 = vadd.f32 %v5097_v12, %v5096_v13  ;;  %v5099_v56 = vpop.f32.mrb[134].mxu0 }
 0x328   : > { %v5100_v5 = vpop.f32.mrb[135].mxu0 }
 0x329   : > { %v3574_v39 = vadd.f32 %v5098_v8, %v3573_v21  ;;  %v5101_v47 = vadd.f32 %v5100_v5, %v5099_v56 }
 0x32b   : > { %v4559_v54 = vpack.c.bf16 %v5101_v47, %v5098_v8  ;;  %v3589_v4 = vadd.f32 %v5101_v47, %v3588_v30 }
 0x32d   : > { %4631 = vst [vmem:[%s7301_s27 + $0x28] sm:$0xff] %v4559_v54   ;;  %v5102_v0 = vpop.f32.mrb[136].mxu0 }
 0x32e   : > { %v5103_v15 = vpop.f32.mrb[137].mxu0 }
 0x32f   : > { %v5104_v24 = vadd.f32 %v5103_v15, %v5102_v0  ;;  %v5105_v36 = vpop.f32.mrb[138].mxu0 }
 0x330   : > { %v5106_v40 = vpop.f32.mrb[139].mxu0 }
 0x331   : > { %v3575_v53 = vadd.f32 %v5104_v24, %v3574_v39  ;;  %v5107_v43 = vadd.f32 %v5106_v40, %v5105_v36 }
 0x333   : > { %v4564_v28 = vpack.c.bf16 %v5107_v43, %v5104_v24  ;;  %v3590_v27 = vadd.f32 %v5107_v43, %v3589_v4 }
 0x335   : > { %4632 = vst [vmem:[%s7301_s27 + $0x30] sm:$0xff] %v4564_v28   ;;  %v5108_v22 = vpop.f32.mrb[140].mxu0 }
 0x336   : > { %v5109_v6 = vpop.f32.mrb[141].mxu0 }
 0x337   : > { %v5110_v14 = vadd.f32 %v5109_v6, %v5108_v22  ;;  %v5111_v33 = vpop.f32.mrb[142].mxu0 }
 0x338   : > { %v5112_v44 = vpop.f32.mrb[143].mxu0 }
 0x339   : > { %v3576_v50 = vadd.f32 %v5110_v14, %v3575_v53  ;;  %v5113_v49 = vadd.f32 %v5112_v44, %v5111_v33 }
 0x33b   : > { %v4569_v45 = vpack.c.bf16 %v5113_v49, %v5110_v14  ;;  %v3591_v18 = vadd.f32 %v5113_v49, %v3590_v27 }
 0x33d   : > { %4633 = vst [vmem:[%s7301_s27 + $0x38] sm:$0xff] %v4569_v45   ;;  %v5114_v31 = vpop.f32.mrb[144].mxu0 }
 0x33e   : > { %v5115_v26 = vpop.f32.mrb[145].mxu0 }
 0x33f   : > { %v5116_v59 = vadd.f32 %v5115_v26, %v5114_v31  ;;  %v5117_v60 = vpop.f32.mrb[146].mxu0 }
 0x340   : > { %v5118_v52 = vpop.f32.mrb[147].mxu0 }
 0x341   : > { %v3577_v23 = vadd.f32 %v5116_v59, %v3576_v50  ;;  %v5119_v19 = vadd.f32 %v5118_v52, %v5117_v60 }
 0x343   : > { %v4574_v20 = vpack.c.bf16 %v5119_v19, %v5116_v59  ;;  %v3592_v10 = vadd.f32 %v5119_v19, %v3591_v18 }
 0x345   : > { %4634 = vst [vmem:[%s7301_s27 + $0x40] sm:$0xff] %v4574_v20   ;;  %v5120_v16 = vpop.f32.mrb[148].mxu0 }
 0x346   : > { %v5121_v17 = vpop.f32.mrb[149].mxu0 }
 0x347   : > { %v5122_v25 = vadd.f32 %v5121_v17, %v5120_v16  ;;  %v5123_v2 = vpop.f32.mrb[150].mxu0 }
 0x348   : > { %v5124_v35 = vpop.f32.mrb[151].mxu0 }
 0x349   : > { %v3578_v57 = vadd.f32 %v5122_v25, %v3577_v23  ;;  %v5125_v38 = vadd.f32 %v5124_v35, %v5123_v2 }
 0x34b   : > { %v4579_v11 = vpack.c.bf16 %v5125_v38, %v5122_v25  ;;  %v3593_v46 = vadd.f32 %v5125_v38, %v3592_v10 }
 0x34d   : > { %4635 = vst [vmem:[%s7301_s27 + $0x48] sm:$0xff] %v4579_v11   ;;  %v5126_v48 = vpop.f32.mrb[152].mxu0 }
 0x34e   : > { %v5127_v7 = vpop.f32.mrb[153].mxu0 }
 0x34f   : > { %v5128_v42 = vadd.f32 %v5127_v7, %v5126_v48  ;;  %v5129_v1 = vpop.f32.mrb[154].mxu0 }
 0x350   : > { %v5130_v34 = vpop.f32.mrb[155].mxu0 }
 0x351   : > { %v3579_v32 = vadd.f32 %v5128_v42, %v3578_v57  ;;  %v5131_v51 = vadd.f32 %v5130_v34, %v5129_v1 }
 0x353   : > { %v4584_v63 = vpack.c.bf16 %v5131_v51, %v5128_v42  ;;  %v3594_v37 = vadd.f32 %v5131_v51, %v3593_v46 }
 0x355   : > { %4636 = vst [vmem:[%s7301_s27 + $0x50] sm:$0xff] %v4584_v63   ;;  %v5132_v3 = vpop.f32.mrb[156].mxu0 }
 0x356   : > { %v5133_v9 = vpop.f32.mrb[157].mxu0 }
 0x357   : > { %v5134_v29 = vadd.f32 %v5133_v9, %v5132_v3  ;;  %v5135_v62 = vpop.f32.mrb[158].mxu0 }
 0x358   : > { %v5136_v61 = vpop.f32.mrb[159].mxu0 }
 0x359   : > { %v3580_v58 = vadd.f32 %v5134_v29, %v3579_v32  ;;  %v5137_v21 = vadd.f32 %v5136_v61, %v5135_v62 }
 0x35b   : > { %v4589_v41 = vpack.c.bf16 %v5137_v21, %v5134_v29  ;;  %v3595_v55 = vadd.f32 %v5137_v21, %v3594_v37 }
 0x35d   : > { %4637 = vst [vmem:[%s7301_s27 + $0x58] sm:$0xff] %v4589_v41   ;;  %v5138_v30 = vpop.f32.mrb[160].mxu0 }
 0x35e   : > { %v5139_v13 = vpop.f32.mrb[161].mxu0 }
 0x35f   : > { %v5140_v12 = vadd.f32 %v5139_v13, %v5138_v30  ;;  %v5141_v8 = vpop.f32.mrb[162].mxu0 }
 0x360   : > { %v5142_v56 = vpop.f32.mrb[163].mxu0 }
 0x361   : > { %v3581_v5 = vadd.f32 %v5140_v12, %v3580_v58  ;;  %v5143_v39 = vadd.f32 %v5142_v56, %v5141_v8 }
 0x363   : > { %v4594_v47 = vpack.c.bf16 %v5143_v39, %v5140_v12  ;;  %v3596_v54 = vadd.f32 %v5143_v39, %v3595_v55 }
 0x365   : > { %4638 = vst [vmem:[%s7301_s27 + $0x60] sm:$0xff] %v4594_v47   ;;  %v5144_v4 = vpop.f32.mrb[164].mxu0 }
 0x366   : > { %v5145_v0 = vpop.f32.mrb[165].mxu0 }
 0x367   : > { %v5146_v15 = vadd.f32 %v5145_v0, %v5144_v4  ;;  %v5147_v24 = vpop.f32.mrb[166].mxu0 }
 0x368   : > { %v5148_v36 = vpop.f32.mrb[167].mxu0 }
 0x369   : > { %v3582_v40 = vadd.f32 %v5146_v15, %v3581_v5  ;;  %v5149_v53 = vadd.f32 %v5148_v36, %v5147_v24 }
 0x36b   : > { %v4599_v43 = vpack.c.bf16 %v5149_v53, %v5146_v15  ;;  %v3597_v28 = vadd.f32 %v5149_v53, %v3596_v54 }
 0x36d   : > { %4639 = vst [vmem:[%s7301_s27 + $0x68] sm:$0xff] %v4599_v43   ;;  %v5150_v27 = vpop.f32.mrb[168].mxu0 }
 0x36e   : > { %v5151_v22 = vpop.f32.mrb[169].mxu0 }
 0x36f   : > { %v5152_v6 = vadd.f32 %v5151_v22, %v5150_v27  ;;  %v5153_v14 = vpop.f32.mrb[170].mxu0 }
 0x370   : > { %v5154_v33 = vpop.f32.mrb[171].mxu0 }
 0x371   : > { %v3583_v44 = vadd.f32 %v5152_v6, %v3582_v40  ;;  %v5155_v50 = vadd.f32 %v5154_v33, %v5153_v14 }
 0x373   : > { %v4604_v49 = vpack.c.bf16 %v5155_v50, %v5152_v6  ;;  %v3598_v45 = vadd.f32 %v5155_v50, %v3597_v28 }
 0x375   : > { %4640 = vst [vmem:[%s7301_s27 + $0x70] sm:$0xff] %v4604_v49   ;;  %v5156_v18 = vpop.f32.mrb[172].mxu0 }
 0x376   : > { %v5157_v31 = vpop.f32.mrb[173].mxu0 }
 0x377   : > { %v5158_v26 = vadd.f32 %v5157_v31, %v5156_v18  ;;  %v5159_v59 = vpop.f32.mrb[174].mxu0 }
 0x378   : > { %v5160_v60 = vpop.f32.mrb[175].mxu0 }
 0x379   : > { %v3584_v52 = vadd.f32 %v5158_v26, %v3583_v44  ;;  %v5161_v23 = vadd.f32 %v5160_v60, %v5159_v59 }
 0x37b   : > { %v4609_v19 = vpack.c.bf16 %v5161_v23, %v5158_v26  ;;  %v3599_v20 = vadd.f32 %v5161_v23, %v3598_v45 }
 0x37d   : > { %4641 = vst [vmem:[%s7301_s27 + $0x78] sm:$0xff] %v4609_v19   ;;  %v3600_v10 = vadd.f32 %v3599_v20, %v3584_v52 }
 0x37f   : > { %v3601_v16 = vrot.slane %v3600_v10, 4 }
 0x381   : > { %v3602_v17 = vadd.f32 %v3601_v16, %v3600_v10 }
 0x383   : > { %v3603_v25 = vrot.slane %v3602_v17, 2 }
 0x385   : > { %v3604_v2 = vadd.f32 %v3603_v25, %v3602_v17 }
 0x387   : > { %v3605_v35 = vrot.slane %v3604_v2, 1 }
 0x389   : > { %v3606_v57 = vadd.f32 %v3605_v35, %v3604_v2 }
 0x38b   : > { %v3607_v38 = vmul.f32 0.125, %v3606_v57 }
 0x38d   : > { %3608 = vst [vmem:[%s709_s20] sm:$0xff] %v3607_v38 }
 0x38e PF: > { %s21_s13 = sadd.s32 1, %s5671_s13   ;;  %s7402_s11 = smov %s5667_s12 }
 0x38f   : > { %p18_p5 = scmp.ge.s32.totalorder %s21_s13, 4   ;;  %s7403_s12 = smov %s7405_s14 }
 0x391   :  { %20 = sbr.rel (!%p18_p5) target bundleno = 2 (0x2), region = 115 }

</bundles_post_ra>
